<compile_context>
chip_gen: v7x
topology: tpu7x:2x2x1
jax: 0.10.0
libtpu: 0.0.40
codegen_flags: <defaults>
</compile_context>

<pallas_src>
import jax
import jax.numpy as jnp
import numpy as np
from jax import lax
from jax.experimental import pallas as pl
from jax.experimental.pallas import tpu as pltpu

KSIZE = 5            # num_channels=5 -> 5x5 kernel
PAD = KSIZE // 2     # padding=2
C_OUT = 8            # Conv2d(1, 8, ...)
DEC_HID = 256        # decoder_hidden_layer out_features


# --------------------------------------------------------------------------
# Fused kernel: conv(as one matmul) + bias + ReLU + 2x2 maxpool + 3-layer ReLU MLP
# --------------------------------------------------------------------------
def _fused_ae_kernel(x_ref, wc_ref, bpool_ref, wenc_ref, benc_ref,
                     wd1_ref, bd1_ref, wd2_ref, bd2_ref, o_ref):
    flat = bpool_ref.shape[1]                 # C_OUT * (W//2) * (H//2)

    # Conv as one matmul: result lanes enumerate
    # (row parity, col parity) x (channel, pooled row, pooled col).
    acc = jnp.dot(x_ref[...], wc_ref[...],
                  preferred_element_type=jnp.float32)            # [B, 4*flat] f32

    # 2x2 max-pool == max over the four parity quarters (same (c,ip,jp) per lane).
    m = jnp.maximum(
        jnp.maximum(acc[:, 0 * flat:1 * flat], acc[:, 1 * flat:2 * flat]),
        jnp.maximum(acc[:, 2 * flat:3 * flat], acc[:, 3 * flat:4 * flat]))
    # conv bias (identical across quarters) + ReLU; lanes already match PyTorch's
    # (C, W/2, H/2) flatten order, so pooled feeds the encoder matmul directly.
    pooled = jnp.maximum(m + bpool_ref[...], 0.0)                # [B, flat] f32
    # TODO(synk): nn.Dropout is identity in eval/inference; training-mode random mask not implemented.

    code = jnp.maximum(
        jnp.dot(pooled.astype(jnp.bfloat16), wenc_ref[...],
                preferred_element_type=jnp.float32) + benc_ref[...], 0.0)
    hid = jnp.maximum(
        jnp.dot(code.astype(jnp.bfloat16), wd1_ref[...],
                preferred_element_type=jnp.float32) + bd1_ref[...], 0.0)
    out = jnp.maximum(
        jnp.dot(hid.astype(jnp.bfloat16), wd2_ref[...],
                preferred_element_type=jnp.float32) + bd2_ref[...], 0.0)
    o_ref[...] = out                                             # [B, W*H] lane-dense


# --------------------------------------------------------------------------
# Host-side operand preparation (tiny, one-time numpy index math)
# --------------------------------------------------------------------------
def _prepare_operands(params, W, H):
    C = C_OUT
    Wh, Hh = W // 2, H // 2
    flat = C * Wh * Hh
    rows_p, cols_p = W + 2 * PAD, H + 2 * PAD
    k_real = rows_p * cols_p
    k_pad = int(np.ceil(k_real / 128)) * 128
    comp = params["enc_w"].shape[0]
    comp_pad = int(np.ceil(comp / 128)) * 128

    conv_w = np.asarray(params["conv_w"], np.float32)   # [C, 1, 5, 5]
    conv_b = np.asarray(params["conv_b"], np.float32)   # [C]

    # Conv-output lane L = (rp*2 + cp)*flat + g, g = c*(Wh*Hh) + ip*Hh + jp
    # (g is exactly PyTorch's flatten order of the pooled activation).
    L = np.arange(4 * flat)
    rp = L // (2 * flat)                 # output-row parity
    cp = (L // flat) % 2                 # output-col parity
    g = L % flat
    c_idx = g // (Wh * Hh)
    ip = (g % (Wh * Hh)) // Hh
    jp = g % Hh
    i_out = 2 * ip + rp                  # conv output row
    j_out = 2 * jp + cp                  # conv output col

    pr = np.arange(rows_p)[:, None, None]          # padded-image row
    pc = np.arange(cols_p)[None, :, None]          # padded-image col
    di = pr - i_out[None, None, :]
    dj = pc - j_out[None, None, :]
    valid = (di >= 0) & (di < KSIZE) & (dj >= 0) & (dj < KSIZE)
    wc = conv_w[c_idx[None, None, :], 0,
                np.clip(di, 0, KSIZE - 1), np.clip(dj, 0, KSIZE - 1)]
    wc = np.where(valid, wc, 0.0).reshape(k_real, 4 * flat)
    wc = np.pad(wc, ((0, k_pad - k_real), (0, 0)))              # [k_pad, 4*flat]

    bpool = conv_b[np.arange(flat) // (Wh * Hh)][None, :]       # [1, flat]

    wenc = np.asarray(params["enc_w"], np.float32).T            # [flat, comp]
    wenc = np.pad(wenc, ((0, 0), (0, comp_pad - comp)))
    benc = np.pad(np.asarray(params["enc_b"], np.float32),
                  (0, comp_pad - comp))[None, :]
    wd1 = np.pad(np.asarray(params["dec1_w"], np.float32).T,
                 ((0, comp_pad - comp), (0, 0)))                # [comp_pad, 256]
    bd1 = np.asarray(params["dec1_b"], np.float32)[None, :]
    wd2 = np.asarray(params["dec2_w"], np.float32).T            # [256, W*H]
    bd2 = np.asarray(params["dec2_b"], np.float32)[None, :]

    bf, f32 = jnp.bfloat16, jnp.float32
    return (jnp.asarray(wc, bf), jnp.asarray(bpool, f32),
            jnp.asarray(wenc, bf), jnp.asarray(benc, f32),
            jnp.asarray(wd1, bf), jnp.asarray(bd1, f32),
            jnp.asarray(wd2, bf), jnp.asarray(bd2, f32),
            k_pad, comp_pad, flat)


def _choose_block(n, block_batch):
    if n <= 8:
        return n                              # single block == full array dims
    # >=2 grid steps so the "parallel" batch axis can feed both v7x TensorCores;
    # blocks are multiples of 8 sublanes.
    target = min(block_batch, -(-n // 2))
    return max(8, ((target + 7) // 8) * 8)


# --------------------------------------------------------------------------
# Wrapper
# --------------------------------------------------------------------------
def ae_conv5x5_forward(x, params, W, H, block_batch=256):
    assert W % 2 == 0 and H % 2 == 0
    N = x.shape[0]
    (wc, bpool, wenc, benc, wd1, bd1, wd2, bd2,
     k_pad, comp_pad, flat) = _prepare_operands(params, W, H)

    rows_p, cols_p = W + 2 * PAD, H + 2 * PAD
    k_real = rows_p * cols_p

    # Single kernel input: zero-padded image flattened to the conv-matmul K dim.
    xpad = jnp.pad(x.reshape(N, W, H).astype(jnp.float32),
                   ((0, 0), (PAD, PAD), (PAD, PAD)))
    x_flat = jnp.pad(xpad.reshape(N, k_real),
                     ((0, 0), (0, k_pad - k_real))).astype(jnp.bfloat16)

    B_BLK = _choose_block(N, block_batch)
    pad_n = (-N) % B_BLK
    if pad_n:
        x_flat = jnp.pad(x_flat, ((0, pad_n), (0, 0)))
    Np = N + pad_n

    out = pl.pallas_call(
        _fused_ae_kernel,
        out_shape=jax.ShapeDtypeStruct((Np, W * H), jnp.float32),
        grid=(Np // B_BLK,),
        in_specs=[
            pl.BlockSpec((B_BLK, k_pad), lambda b: (b, 0)),          # x (padded img)
            pl.BlockSpec((k_pad, 4 * flat), lambda b: (0, 0)),       # conv weight
            pl.BlockSpec((1, flat), lambda b: (0, 0)),               # conv bias/lane
            pl.BlockSpec((flat, comp_pad), lambda b: (0, 0)),        # encoder W
            pl.BlockSpec((1, comp_pad), lambda b: (0, 0)),           # encoder b
            pl.BlockSpec((comp_pad, DEC_HID), lambda b: (0, 0)),     # decoder1 W
            pl.BlockSpec((1, DEC_HID), lambda b: (0, 0)),            # decoder1 b
            pl.BlockSpec((DEC_HID, W * H), lambda b: (0, 0)),        # decoder2 W
            pl.BlockSpec((1, W * H), lambda b: (0, 0)),              # decoder2 b
        ],
        out_specs=pl.BlockSpec((B_BLK, W * H), lambda b: (b, 0)),
        compiler_params=pltpu.CompilerParams(
            dimension_semantics=("parallel",)),      # batch axis -> 2 TCs on v7x
    )(x_flat, wc, bpool, wenc, benc, wd1, bd1, wd2, bd2)
    return out[:N]


# --------------------------------------------------------------------------
# Pure-JAX reference (mirrors the PyTorch forward in eval mode)
# --------------------------------------------------------------------------
def reference_forward(x, p, W, H):
    N = x.shape[0]
    img = x.reshape(N, 1, W, H).astype(jnp.float32)
    conv = lax.conv_general_dilated(
        img, p["conv_w"], window_strides=(1, 1),
        padding=((PAD, PAD), (PAD, PAD)),
        dimension_numbers=("NCHW", "OIHW", "NCHW"))
    act = jnp.maximum(conv + p["conv_b"].reshape(1, C_OUT, 1, 1), 0.0)
    pooled = lax.reduce_window(act, -jnp.inf, lax.max,
                               (1, 1, 2, 2), (1, 1, 2, 2), "VALID")
    flat = pooled.reshape(N, -1)
    code = jnp.maximum(flat @ p["enc_w"].T + p["enc_b"], 0.0)
    hid = jnp.maximum(code @ p["dec1_w"].T + p["dec1_b"], 0.0)
    return jnp.maximum(hid @ p["dec2_w"].T + p["dec2_b"], 0.0)


def init_params(key, W, H, compression_dim):
    ks = jax.random.split(key, 8)
    flat_dim = (W // 2) * (H // 2) * C_OUT
    f32 = jnp.float32
    return {
        # PyTorch shapes: Conv2d weight [out, in, kH, kW], Linear weight [out, in]
        "conv_w": jax.random.normal(ks[0], (C_OUT, 1, KSIZE, KSIZE), f32) * 0.1,
        "conv_b": jax.random.normal(ks[1], (C_OUT,), f32) * 0.1,
        "enc_w": jax.random.normal(ks[2], (compression_dim, flat_dim), f32) * 0.05,
        "enc_b": jax.random.normal(ks[3], (compression_dim,), f32) * 0.05,
        "dec1_w": jax.random.normal(ks[4], (DEC_HID, compression_dim), f32) * 0.05,
        "dec1_b": jax.random.normal(ks[5], (DEC_HID,), f32) * 0.05,
        "dec2_w": jax.random.normal(ks[6], (W * H, DEC_HID), f32) * 0.05,
        "dec2_b": jax.random.normal(ks[7], (W * H,), f32) * 0.05,
    }


if __name__ == "__main__":
    W = H = 16
    COMPRESSION_DIM = 32

    key = jax.random.PRNGKey(0)
    k_param, k_x1, k_x2 = jax.random.split(key, 3)
    params = init_params(k_param, W, H, COMPRESSION_DIM)

    # Small batch (single grid step).
    x = jax.random.normal(k_x1, (2, W * H), jnp.float32)
    recon = jax.block_until_ready(ae_conv5x5_forward(x, params, W, H))
    ref = jax.block_until_ready(reference_forward(x, params, W, H))
    np.testing.assert_allclose(np.asarray(recon), np.asarray(ref),
                               rtol=1e-2, atol=1e-2)
    assert recon.shape == (2, W * H)

    # Larger batch: exercises the multi-block grid (>=2 steps, batch padding).
    x2 = jax.random.normal(k_x2, (20, W * H), jnp.float32)
    recon2 = jax.block_until_ready(ae_conv5x5_forward(x2, params, W, H))
    ref2 = jax.block_until_ready(reference_forward(x2, params, W, H))
    np.testing.assert_allclose(np.asarray(recon2), np.asarray(ref2),
                               rtol=1e-2, atol=1e-2)
    assert recon2.shape == (20, W * H)

    print("KERNEL_OK")
</pallas_src>

<mosaic_0001>
module attributes {stable_mosaic.version = 11 : i64} {
  func.func @_fused_ae_kernel(%arg0: i32, %arg1: memref<2x512xbf16, #tpu.memory_space<vmem>>, %arg2: memref<512x2048xbf16, #tpu.memory_space<vmem>>, %arg3: memref<1x512xf32, #tpu.memory_space<vmem>>, %arg4: memref<512x128xbf16, #tpu.memory_space<vmem>>, %arg5: memref<1x128xf32, #tpu.memory_space<vmem>>, %arg6: memref<128x256xbf16, #tpu.memory_space<vmem>>, %arg7: memref<1x256xf32, #tpu.memory_space<vmem>>, %arg8: memref<256x256xbf16, #tpu.memory_space<vmem>>, %arg9: memref<1x256xf32, #tpu.memory_space<vmem>>, %arg10: memref<2x256xf32, #tpu.memory_space<vmem>>) attributes {dimension_semantics = [#tpu.dimension_semantics<parallel>], iteration_bounds = array<i64: 1>, scalar_prefetch = 0 : i64, scratch_operands = 0 : i64, tpu.core_type = #tpu.core_type<tc>, window_params = [{transform_indices = @transform_0, window_bounds = array<i64: 2, 512>}, {pipeline_mode = #tpu.pipeline_mode<synchronous>, transform_indices = @transform_1, window_bounds = array<i64: 512, 2048>}, {pipeline_mode = #tpu.pipeline_mode<synchronous>, transform_indices = @transform_2, window_bounds = array<i64: 1, 512>}, {pipeline_mode = #tpu.pipeline_mode<synchronous>, transform_indices = @transform_3, window_bounds = array<i64: 512, 128>}, {pipeline_mode = #tpu.pipeline_mode<synchronous>, transform_indices = @transform_4, window_bounds = array<i64: 1, 128>}, {pipeline_mode = #tpu.pipeline_mode<synchronous>, transform_indices = @transform_5, window_bounds = array<i64: 128, 256>}, {pipeline_mode = #tpu.pipeline_mode<synchronous>, transform_indices = @transform_6, window_bounds = array<i64: 1, 256>}, {pipeline_mode = #tpu.pipeline_mode<synchronous>, transform_indices = @transform_7, window_bounds = array<i64: 256, 256>}, {pipeline_mode = #tpu.pipeline_mode<synchronous>, transform_indices = @transform_8, window_bounds = array<i64: 1, 256>}, {transform_indices = @transform_9, window_bounds = array<i64: 2, 256>}]} {
    %c0 = arith.constant 0 : index
    %c0_0 = arith.constant 0 : index
    %0 = vector.load %arg1[%c0, %c0_0] : memref<2x512xbf16, #tpu.memory_space<vmem>>, vector<2x512xbf16>
    %c0_1 = arith.constant 0 : index
    %c0_2 = arith.constant 0 : index
    %1 = vector.load %arg2[%c0_1, %c0_2] : memref<512x2048xbf16, #tpu.memory_space<vmem>>, vector<512x2048xbf16>
    %cst = arith.constant dense<0.000000e+00> : vector<2x2048xf32>
    %2 = tpu.matmul %0, %1, %cst {dimension_numbers = #tpu.dot_dimension_numbers<[1], [0], [0], [1], [0, 0, 1, 1], [], []>} : vector<2x512xbf16>, vector<512x2048xbf16>, vector<2x2048xf32> -> vector<2x2048xf32>
    %3 = vector.extract_strided_slice %2 {offsets = [0, 0], sizes = [2, 512], strides = [1, 1]} : vector<2x2048xf32> to vector<2x512xf32>
    %4 = vector.extract_strided_slice %2 {offsets = [0, 512], sizes = [2, 512], strides = [1, 1]} : vector<2x2048xf32> to vector<2x512xf32>
    %5 = arith.maximumf %3, %4 : vector<2x512xf32>
    %6 = vector.extract_strided_slice %2 {offsets = [0, 1024], sizes = [2, 512], strides = [1, 1]} : vector<2x2048xf32> to vector<2x512xf32>
    %7 = vector.extract_strided_slice %2 {offsets = [0, 1536], sizes = [2, 512], strides = [1, 1]} : vector<2x2048xf32> to vector<2x512xf32>
    %8 = arith.maximumf %6, %7 : vector<2x512xf32>
    %9 = arith.maximumf %5, %8 : vector<2x512xf32>
    %c0_3 = arith.constant 0 : index
    %c0_4 = arith.constant 0 : index
    %10 = vector.load %arg3[%c0_3, %c0_4] : memref<1x512xf32, #tpu.memory_space<vmem>>, vector<1x512xf32>
    %11 = vector.broadcast %10 : vector<1x512xf32> to vector<2x512xf32>
    %12 = arith.addf %9, %11 : vector<2x512xf32>
    %cst_5 = arith.constant 0.000000e+00 : f32
    %13 = vector.broadcast %cst_5 : f32 to vector<2x512xf32>
    %14 = arith.maximumf %12, %13 : vector<2x512xf32>
    %15 = arith.truncf %14 : vector<2x512xf32> to vector<2x512xbf16>
    %c0_6 = arith.constant 0 : index
    %c0_7 = arith.constant 0 : index
    %16 = vector.load %arg4[%c0_6, %c0_7] : memref<512x128xbf16, #tpu.memory_space<vmem>>, vector<512x128xbf16>
    %cst_8 = arith.constant dense<0.000000e+00> : vector<2x128xf32>
    %17 = tpu.matmul %15, %16, %cst_8 {dimension_numbers = #tpu.dot_dimension_numbers<[1], [0], [0], [1], [0, 0, 1, 1], [], []>} : vector<2x512xbf16>, vector<512x128xbf16>, vector<2x128xf32> -> vector<2x128xf32>
    %c0_9 = arith.constant 0 : index
    %c0_10 = arith.constant 0 : index
    %18 = vector.load %arg5[%c0_9, %c0_10] : memref<1x128xf32, #tpu.memory_space<vmem>>, vector<1x128xf32>
    %19 = vector.broadcast %18 : vector<1x128xf32> to vector<2x128xf32>
    %20 = arith.addf %17, %19 : vector<2x128xf32>
    %cst_11 = arith.constant 0.000000e+00 : f32
    %21 = vector.broadcast %cst_11 : f32 to vector<2x128xf32>
    %22 = arith.maximumf %20, %21 : vector<2x128xf32>
    %23 = arith.truncf %22 : vector<2x128xf32> to vector<2x128xbf16>
    %c0_12 = arith.constant 0 : index
    %c0_13 = arith.constant 0 : index
    %24 = vector.load %arg6[%c0_12, %c0_13] : memref<128x256xbf16, #tpu.memory_space<vmem>>, vector<128x256xbf16>
    %cst_14 = arith.constant dense<0.000000e+00> : vector<2x256xf32>
    %25 = tpu.matmul %23, %24, %cst_14 {dimension_numbers = #tpu.dot_dimension_numbers<[1], [0], [0], [1], [0, 0, 1, 1], [], []>} : vector<2x128xbf16>, vector<128x256xbf16>, vector<2x256xf32> -> vector<2x256xf32>
    %c0_15 = arith.constant 0 : index
    %c0_16 = arith.constant 0 : index
    %26 = vector.load %arg7[%c0_15, %c0_16] : memref<1x256xf32, #tpu.memory_space<vmem>>, vector<1x256xf32>
    %27 = vector.broadcast %26 : vector<1x256xf32> to vector<2x256xf32>
    %28 = arith.addf %25, %27 : vector<2x256xf32>
    %cst_17 = arith.constant 0.000000e+00 : f32
    %29 = vector.broadcast %cst_17 : f32 to vector<2x256xf32>
    %30 = arith.maximumf %28, %29 : vector<2x256xf32>
    %31 = arith.truncf %30 : vector<2x256xf32> to vector<2x256xbf16>
    %c0_18 = arith.constant 0 : index
    %c0_19 = arith.constant 0 : index
    %32 = vector.load %arg8[%c0_18, %c0_19] : memref<256x256xbf16, #tpu.memory_space<vmem>>, vector<256x256xbf16>
    %cst_20 = arith.constant dense<0.000000e+00> : vector<2x256xf32>
    %33 = tpu.matmul %31, %32, %cst_20 {dimension_numbers = #tpu.dot_dimension_numbers<[1], [0], [0], [1], [0, 0, 1, 1], [], []>} : vector<2x256xbf16>, vector<256x256xbf16>, vector<2x256xf32> -> vector<2x256xf32>
    %c0_21 = arith.constant 0 : index
    %c0_22 = arith.constant 0 : index
    %34 = vector.load %arg9[%c0_21, %c0_22] : memref<1x256xf32, #tpu.memory_space<vmem>>, vector<1x256xf32>
    %35 = vector.broadcast %34 : vector<1x256xf32> to vector<2x256xf32>
    %36 = arith.addf %33, %35 : vector<2x256xf32>
    %cst_23 = arith.constant 0.000000e+00 : f32
    %37 = vector.broadcast %cst_23 : f32 to vector<2x256xf32>
    %38 = arith.maximumf %36, %37 : vector<2x256xf32>
    %c0_24 = arith.constant 0 : index
    %c0_25 = arith.constant 0 : index
    %39 = vector.load %arg10[%c0_24, %c0_25] : memref<2x256xf32, #tpu.memory_space<vmem>>, vector<2x256xf32>
    tpu.vector_store %arg10[%c0_24, %c0_25], %38 {strides = array<i32>} : memref<2x256xf32, #tpu.memory_space<vmem>>, vector<2x256xf32>,
    return
  }
  func.func @transform_0(%arg0: i32) -> (i32, i32) {
    %c0_i32 = arith.constant 0 : i32
    %c0_i32_0 = arith.constant 0 : i32
    return %arg0, %c0_i32 : i32, i32
  }
  func.func @transform_1(%arg0: i32) -> (i32, i32) {
    %c0_i32 = arith.constant 0 : i32
    %c0_i32_0 = arith.constant 0 : i32
    %c0_i32_1 = arith.constant 0 : i32
    return %c0_i32, %c0_i32_0 : i32, i32
  }
  func.func @transform_2(%arg0: i32) -> (i32, i32) {
    %c0_i32 = arith.constant 0 : i32
    %c0_i32_0 = arith.constant 0 : i32
    %c0_i32_1 = arith.constant 0 : i32
    return %c0_i32, %c0_i32_0 : i32, i32
  }
  func.func @transform_3(%arg0: i32) -> (i32, i32) {
    %c0_i32 = arith.constant 0 : i32
    %c0_i32_0 = arith.constant 0 : i32
    %c0_i32_1 = arith.constant 0 : i32
    return %c0_i32, %c0_i32_0 : i32, i32
  }
  func.func @transform_4(%arg0: i32) -> (i32, i32) {
    %c0_i32 = arith.constant 0 : i32
    %c0_i32_0 = arith.constant 0 : i32
    %c0_i32_1 = arith.constant 0 : i32
    return %c0_i32, %c0_i32_0 : i32, i32
  }
  func.func @transform_5(%arg0: i32) -> (i32, i32) {
    %c0_i32 = arith.constant 0 : i32
    %c0_i32_0 = arith.constant 0 : i32
    %c0_i32_1 = arith.constant 0 : i32
    return %c0_i32, %c0_i32_0 : i32, i32
  }
  func.func @transform_6(%arg0: i32) -> (i32, i32) {
    %c0_i32 = arith.constant 0 : i32
    %c0_i32_0 = arith.constant 0 : i32
    %c0_i32_1 = arith.constant 0 : i32
    return %c0_i32, %c0_i32_0 : i32, i32
  }
  func.func @transform_7(%arg0: i32) -> (i32, i32) {
    %c0_i32 = arith.constant 0 : i32
    %c0_i32_0 = arith.constant 0 : i32
    %c0_i32_1 = arith.constant 0 : i32
    return %c0_i32, %c0_i32_0 : i32, i32
  }
  func.func @transform_8(%arg0: i32) -> (i32, i32) {
    %c0_i32 = arith.constant 0 : i32
    %c0_i32_0 = arith.constant 0 : i32
    %c0_i32_1 = arith.constant 0 : i32
    return %c0_i32, %c0_i32_0 : i32, i32
  }
  func.func @transform_9(%arg0: i32) -> (i32, i32) {
    %c0_i32 = arith.constant 0 : i32
    %c0_i32_0 = arith.constant 0 : i32
    return %arg0, %c0_i32 : i32, i32
  }
}

</mosaic_0001>

<bundles_post_ra>
// kernel: tpu_custom_call.1
= control target key start
LH: loop header
LB: loop body
LE: loop exit
PB: predicated region body
PF: predicated region fallthrough
CT: control target
= control target key end

     0   :  { %14 = vsyncpa [#allocation3], 0  ;;  %s6043_s0 = inlined_call_operand.hbm [shape: bf16[2,512], index: 0, kind: input, shape index: {}]   ;;  %s6044_s1 = inlined_call_operand.hbm [shape: bf16[512,2048], index: 1, kind: input, shape index: {}]   ;;  %s6045_s2 = inlined_call_operand.hbm [shape: f32[1,512], index: 2, kind: input, shape index: {}]   ;;  %s6046_s3 = inlined_call_operand.hbm [shape: bf16[512,128], index: 3, kind: input, shape index: {}]   ;;  %s6047_s4 = inlined_call_operand.hbm [shape: f32[1,128], index: 4, kind: input, shape index: {}]   ;;  %s6048_s5 = inlined_call_operand.hbm [shape: bf16[128,256], index: 5, kind: input, shape index: {}]   ;;  %s6049_s6 = inlined_call_operand.hbm [shape: f32[1,256], index: 6, kind: input, shape index: {}]   ;;  %s6050_s7 = inlined_call_operand.hbm [shape: bf16[256,256], index: 7, kind: input, shape index: {}]   ;;  %s6051_s8 = inlined_call_operand.hbm [shape: f32[1,256], index: 8, kind: input, shape index: {}]   ;;  %s6052_s9 = inlined_call_operand.hbm [shape: f32[2,256], index: 9, kind: output, shape index: {}]  }
   0x1   :  { %15 = vsyncpa [#allocation6], 0 }
   0x2   :  { %16 = vsyncpa [#allocation9], 0 }
   0x3   :  { %17 = vsyncpa [#allocation12], 0 }
   0x4   :  { %18 = vsyncpa [#allocation15], 0 }
   0x5   :  { %19 = vsyncpa [#allocation4], 0  ;;  %s5750_s30 = smov [#allocation5]   ;;  %s5518_s13 = scalar_lea.hbm %s6044_s1, 65536 }
   0x6   :  { %s35_s10 = sshll.u32 %s5750_s30, 4  ;;  %p5519_p0 = scmp.ne.s32.totalorder %s6044_s1, %s5518_s13  ;;  %s36_s10 = int_to_ptr.vmem [resolvable:$true] %s35_s10 }
   0x7   :  { %p5522_p1 = scmp.lt.u32.totalorder %s5518_s13, %s6044_s1 }
   0x9   :  { %p5524_p2 = pnand %p5522_p1, %p5519_p0 }
   0xb   :  { %5527 = shalt.err (!%p5524_p2)
}
   0xc   :  { %s5528_s18 = scalar_lea.vmem %s36_s10, 65536  ;;  %p5533_p4 = scmp.lt.s32.totalorder %s36_s10, %s36_s10 }
   0xd   :  { %p5529_p3 = scmp.ne.s32.totalorder %s36_s10, %s5528_s18  ;;  %p5534_p5 = scmp.lt.s32.totalorder %s5528_s18, %s5528_s18 }
   0xf   :  { %p5535_p6 = por %p5534_p5, %p5533_p4 }
  0x11   :  { %p5536_p7 = pnand %p5535_p6, %p5529_p3 }
  0x13   :  { %5539 = shalt.err (!%p5536_p7)
}
  0x14   :  { %s5751_s19 = smov 1024   ;;  %s5752_s20 = smov 64  }
  0x15   :  { %41 = dma.hbm_to_vmem [thread:$0]  %s6044_s1, 65536, %s36_s10, [#allocation6], %s5751_s19, %s5751_s19, %s5752_s20  }
  0x16   :  { %s5753_s23 = smov [#allocation8]   ;;  %s5540_s27 = scalar_lea.hbm %s6046_s3, 4096 }
  0x17   :  { %s57_s24 = sshll.u32 %s5753_s23, 4  ;;  %p5541_p8 = scmp.ne.s32.totalorder %s6046_s3, %s5540_s27  ;;  %s58_s24 = int_to_ptr.vmem [resolvable:$true] %s57_s24 }
  0x18   :  { %p5544_p9 = scmp.lt.u32.totalorder %s5540_s27, %s6046_s3 }
  0x1a   :  { %p5546_p10 = pnand %p5544_p9, %p5541_p8 }
  0x1c   :  { %5549 = shalt.err (!%p5546_p10)
}
  0x1d   :  { %s5550_s12 = scalar_lea.vmem %s58_s24, 4096  ;;  %p5555_p12 = scmp.lt.s32.totalorder %s58_s24, %s58_s24 }
  0x1e   :  { %p5551_p11 = scmp.ne.s32.totalorder %s58_s24, %s5550_s12  ;;  %p5556_p13 = scmp.lt.s32.totalorder %s5550_s12, %s5550_s12 }
  0x20   :  { %p5557_p0 = por %p5556_p13, %p5555_p12 }
  0x22   :  { %p5558_p1 = pnand %p5557_p0, %p5551_p11 }
  0x24   :  { %5561 = shalt.err (!%p5558_p1)
}
  0x25   :  { %s5754_s1 = smov 4   ;;  %s5755_s14 = smov [#allocation11]  }
  0x26   :  { %63 = dma.hbm_to_vmem [thread:$0]  %s6046_s3, 4096, %s58_s24, [#allocation9], %s5752_s20, %s5752_s20, %s5754_s1  }
  0x27   :  { %s79_s15 = sshll.u32 %s5755_s14, 4  ;;  %s5562_s18 = scalar_lea.hbm %s6048_s5, 2048  ;;  %s80_s15 = int_to_ptr.vmem [resolvable:$true] %s79_s15 }
  0x28   :  { %p5563_p2 = scmp.ne.s32.totalorder %s6048_s5, %s5562_s18  ;;  %p5566_p3 = scmp.lt.u32.totalorder %s5562_s18, %s6048_s5 }
  0x2a   :  { %p5568_p4 = pnand %p5566_p3, %p5563_p2 }
  0x2c   :  { %5571 = shalt.err (!%p5568_p4)
}
  0x2d   :  { %s5572_s25 = scalar_lea.vmem %s80_s15, 2048  ;;  %p5577_p6 = scmp.lt.s32.totalorder %s80_s15, %s80_s15 }
  0x2e   :  { %p5573_p5 = scmp.ne.s32.totalorder %s80_s15, %s5572_s25  ;;  %p5578_p7 = scmp.lt.s32.totalorder %s5572_s25, %s5572_s25 }
  0x30   :  { %p5579_p8 = por %p5578_p7, %p5577_p6 }
  0x32   :  { %p5580_p9 = pnand %p5579_p8, %p5573_p5 }
  0x34   :  { %5583 = shalt.err (!%p5580_p9)
}
  0x35   :  { %s5756_s3 = smov 128   ;;  %s5757_s20 = smov 8  }
  0x36   :  { %85 = dma.hbm_to_vmem [thread:$0]  %s6048_s5, 2048, %s80_s15, [#allocation12], %s5756_s3, %s5756_s3, %s5757_s20  }
  0x37   :  { %s5758_s27 = smov [#allocation14]   ;;  %s5759_s29 = smov [#allocation2]  }
  0x38   :  { %s101_s28 = sshll.u32 %s5758_s27, 4  ;;  %s26_s30 = sshll.u32 %s5759_s29, 4  ;;  %s102_s28 = int_to_ptr.vmem [resolvable:$true] %s101_s28  ;;  %s27_s30 = int_to_ptr.vmem [resolvable:$true] %s26_s30 }
  0x39   :  { %s5584_s1 = scalar_lea.hbm %s6050_s7, 4096 }
  0x3a   :  { %p5585_p10 = scmp.ne.s32.totalorder %s6050_s7, %s5584_s1  ;;  %p5588_p11 = scmp.lt.u32.totalorder %s5584_s1, %s6050_s7 }
  0x3c   :  { %p5590_p12 = pnand %p5588_p11, %p5585_p10 }
  0x3e   :  { %5593 = shalt.err (!%p5590_p12)
}
  0x3f   :  { %s5594_s5 = scalar_lea.vmem %s102_s28, 4096  ;;  %p5599_p0 = scmp.lt.s32.totalorder %s102_s28, %s102_s28 }
  0x40   :  { %p5595_p13 = scmp.ne.s32.totalorder %s102_s28, %s5594_s5  ;;  %p5600_p1 = scmp.lt.s32.totalorder %s5594_s5, %s5594_s5 }
  0x42   :  { %p5601_p2 = por %p5600_p1, %p5599_p0 }
  0x44   :  { %p5602_p3 = pnand %p5601_p2, %p5595_p13 }
  0x46   :  { %5605 = shalt.err (!%p5602_p3)
}
  0x47   :  { %107 = dma.hbm_to_vmem [thread:$0]  %s6050_s7, 4096, %s102_s28, [#allocation15], %s5756_s3, %s5756_s3, %s5757_s20  }
  0x48   :  { %s5606_s21 = scalar_lea.hbm %s6043_s0, 64 }
  0x49   :  { %p5607_p4 = scmp.ne.s32.totalorder %s6043_s0, %s5606_s21  ;;  %p5610_p5 = scmp.lt.u32.totalorder %s5606_s21, %s6043_s0 }
  0x4b   :  { %p5612_p6 = pnand %p5610_p5, %p5607_p4 }
  0x4d   :  { %5615 = shalt.err (!%p5612_p6)
}
  0x4e   :  { %s5616_s26 = scalar_lea.vmem %s27_s30, 64  ;;  %p5621_p8 = scmp.lt.s32.totalorder %s27_s30, %s27_s30 }
  0x4f   :  { %p5617_p7 = scmp.ne.s32.totalorder %s27_s30, %s5616_s26  ;;  %p5622_p9 = scmp.lt.s32.totalorder %s5616_s26, %s5616_s26 }
  0x51   :  { %p5623_p10 = por %p5622_p9, %p5621_p8 }
  0x53   :  { %p5624_p11 = pnand %p5623_p10, %p5617_p7 }
  0x55   :  { %5627 = shalt.err (!%p5624_p11)
}
  0x56   :  { %29 = dma.hbm_to_vmem [thread:$0]  %s6043_s0, 64, %s27_s30, [#allocation3]  }
  0x57   :  { %s5760_s20 = smov [#allocation7]   ;;  %s5761_s28 = smov [#allocation10]  }
  0x58   :  { %s48_s27 = sshll.u32 %s5760_s20, 4  ;;  %s70_s29 = sshll.u32 %s5761_s28, 4  ;;  %s49_s27 = int_to_ptr.vmem [resolvable:$true] %s48_s27  ;;  %s71_s29 = int_to_ptr.vmem [resolvable:$true] %s70_s29 }
  0x59   :  { %s5628_s1 = scalar_lea.hbm %s6045_s2, 64 }
  0x5a   :  { %p5629_p12 = scmp.ne.s32.totalorder %s6045_s2, %s5628_s1  ;;  %p5632_p13 = scmp.lt.u32.totalorder %s5628_s1, %s6045_s2 }
  0x5c   :  { %p5634_p0 = pnand %p5632_p13, %p5629_p12 }
  0x5e   :  { %5637 = shalt.err (!%p5634_p0)
}
  0x5f   :  { %s5638_s0 = scalar_lea.vmem %s49_s27, 64  ;;  %p5643_p2 = scmp.lt.s32.totalorder %s49_s27, %s49_s27 }
  0x60   :  { %p5639_p1 = scmp.ne.s32.totalorder %s49_s27, %s5638_s0  ;;  %p5644_p3 = scmp.lt.s32.totalorder %s5638_s0, %s5638_s0 }
  0x62   :  { %p5645_p4 = por %p5644_p3, %p5643_p2 }
  0x64   :  { %p5646_p5 = pnand %p5645_p4, %p5639_p1 }
  0x66   :  { %5649 = shalt.err (!%p5646_p5)
}
  0x67   :  { %51 = dma.hbm_to_vmem [thread:$0]  %s6045_s2, 64, %s49_s27, [#allocation6]  }
  0x68   :  { %s5650_s18 = scalar_lea.hbm %s6047_s4, 16 }
  0x69   :  { %p5651_p6 = scmp.ne.s32.totalorder %s6047_s4, %s5650_s18  ;;  %p5654_p7 = scmp.lt.u32.totalorder %s5650_s18, %s6047_s4 }
  0x6b   :  { %p5656_p8 = pnand %p5654_p7, %p5651_p6 }
  0x6d   :  { %5659 = shalt.err (!%p5656_p8)
}
  0x6e   :  { %s5660_s25 = scalar_lea.vmem %s71_s29, 16  ;;  %s5664_s24 = scalar_lea.vmem %s71_s29, 32 }
  0x6f   :  { %p5661_p9 = scmp.ne.s32.totalorder %s71_s29, %s5660_s25  ;;  %p5665_p10 = scmp.lt.s32.totalorder %s71_s29, %s71_s29 }
  0x70   :  { %p5666_p11 = scmp.lt.s32.totalorder %s5664_s24, %s5660_s25 }
  0x72   :  { %p5667_p12 = por %p5666_p11, %p5665_p10 }
  0x74   :  { %p5668_p13 = pnand %p5667_p12, %p5661_p9 }
  0x76   :  { %5671 = shalt.err (!%p5668_p13)
}
  0x77   :  { %73 = dma.hbm_to_vmem [thread:$0]  %s6047_s4, 16, %s71_s29, [#allocation9]  }
  0x78   :  { %s5762_s7 = smov [#allocation13]   ;;  %s5763_s20 = smov [#allocation16]  }
  0x79   :  { %s92_s3 = sshll.u32 %s5762_s7, 4  ;;  %s114_s27 = sshll.u32 %s5763_s20, 4  ;;  %s93_s3 = int_to_ptr.vmem [resolvable:$true] %s92_s3  ;;  %s115_s27 = int_to_ptr.vmem [resolvable:$true] %s114_s27 }
  0x7a   :  { %s5672_s12 = scalar_lea.hbm %s6049_s6, 32 }
  0x7b   :  { %p5673_p0 = scmp.ne.s32.totalorder %s6049_s6, %s5672_s12  ;;  %p5676_p1 = scmp.lt.u32.totalorder %s5672_s12, %s6049_s6 }
  0x7d   :  { %p5678_p2 = pnand %p5676_p1, %p5673_p0 }
  0x7f   :  { %5681 = shalt.err (!%p5678_p2)
}
  0x80   :  { %s5682_s4 = scalar_lea.vmem %s93_s3, 32  ;;  %p5687_p4 = scmp.lt.s32.totalorder %s93_s3, %s93_s3 }
  0x81   :  { %p5683_p3 = scmp.ne.s32.totalorder %s93_s3, %s5682_s4  ;;  %p5688_p5 = scmp.lt.s32.totalorder %s5682_s4, %s5682_s4 }
  0x83   :  { %p5689_p6 = por %p5688_p5, %p5687_p4 }
  0x85   :  { %p5690_p7 = pnand %p5689_p6, %p5683_p3 }
  0x87   :  { %5693 = shalt.err (!%p5690_p7)
}
  0x88   :  { %95 = dma.hbm_to_vmem [thread:$0]  %s6049_s6, 32, %s93_s3, [#allocation12]  }
  0x89   :  { %s5694_s5 = scalar_lea.hbm %s6051_s8, 32 }
  0x8a   :  { %p5695_p8 = scmp.ne.s32.totalorder %s6051_s8, %s5694_s5  ;;  %p5698_p9 = scmp.lt.u32.totalorder %s5694_s5, %s6051_s8 }
  0x8c   :  { %p5700_p10 = pnand %p5698_p9, %p5695_p8 }
  0x8e   :  { %5703 = shalt.err (!%p5700_p10)
}
  0x8f   :  { %s5704_s21 = scalar_lea.vmem %s115_s27, 32  ;;  %p5709_p12 = scmp.lt.s32.totalorder %s115_s27, %s115_s27 }
  0x90   :  { %p5705_p11 = scmp.ne.s32.totalorder %s115_s27, %s5704_s21  ;;  %p5710_p13 = scmp.lt.s32.totalorder %s5704_s21, %s5704_s21 }
  0x92   :  { %p5711_p0 = por %p5710_p13, %p5709_p12 }
  0x94   :  { %p5712_p1 = pnand %p5711_p0, %p5705_p11 }
  0x96   :  { %5715 = shalt.err (!%p5712_p1)
}
  0x97   :  { %117 = dma.hbm_to_vmem [thread:$0]  %s6051_s8, 32, %s115_s27, [#allocation15]  }
  0x98   :  { %5738 = dma.done.wait [#allocation3], 64  }
  0x99   :  { %5739 = vsyncadd [#allocation3], 4294967232 }
  0x9a   :  { %5740 = dma.done.wait [#allocation6], 65600  }
  0x9b   :  { %5741 = vsyncadd [#allocation6], 4294901696 }
  0x9c   :  { %5742 = dma.done.wait [#allocation9], 4112  }
  0x9d   :  { %5743 = vsyncadd [#allocation9], 4294963184 }
  0x9e   :  { %5744 = dma.done.wait [#allocation12], 2080  }
  0x9f   :  { %5745 = vsyncadd [#allocation12], 4294965216 }
  0xa0   :  { %5746 = dma.done.wait [#allocation15], 4128  }
  0xa1   :  { %5747 = vsyncadd [#allocation15], 4294963168  ;;  %v147_v0 = vld [vmem:[#allocation5] sm:$0xff]  ;;  %v148_v2 = vld [vmem:[#allocation5 + $0x8] sm:$0xff]  ;;  %v5764_v35 = vmov 1966171168   ;;  %v671_v37 = vlaneseq }
  0xa2   :  { %v155_v1 = vld [vmem:[#allocation5 + $0x40] sm:$0xff]  ;;  %v156_v4 = vld [vmem:[#allocation5 + $0x48] sm:$0xff]  ;;  %v669_v36 = vunpack.c.l.s4 %v5764_v35  ;;  %v5930_v59 = vld.sshfl [vmem:[#allocation2] sm:$0x33 pattern:$0x75316420] }
  0xa3   :  { %v4728_v3 = vcombine.high %v147_v0, %v155_v1  ;;  %v4727_v5 = vcombine.low %v147_v0, %v155_v1  ;;  %v163_v6 = vld [vmem:[#allocation5 + $0x80] sm:$0xff]  ;;  %v4730_v8 = vcombine.high %v148_v2, %v156_v4  ;;  %v4729_v9 = vcombine.low %v148_v2, %v156_v4  ;;  %v164_v11 = vld [vmem:[#allocation5 + $0x88] sm:$0xff]  ;;  %s5766_s8 = smov [#allocation17]  }
  0xa4   :  { %v171_v7 = vld [vmem:[#allocation5 + $0xc0] sm:$0xff]  ;;  %v172_v12 = vld [vmem:[#allocation5 + $0xc8] sm:$0xff]  ;;  %v670_v46 = vunpack.c.0.s8 %v669_v36  ;;  %v5925_v47 = vshrl.u32 %v671_v37, 7  ;;  %v667_v63 = vcombine.high %v5930_v59, %v5930_v59  ;;  %s4713_s23 = sshll.u32 %s5766_s8, 4  ;;  %s4714_s23 = int_to_ptr.vmem [resolvable:$true] %s4713_s23 }
  0xa5   :  { %v4744_v10 = vcombine.high %v163_v6, %v171_v7  ;;  %v179_v13 = vld [vmem:[#allocation5 + $0x100] sm:$0xff]  ;;  %3248 = vmatprep.subr.bf16.mxu0 %v4728_v3  ;;  %v4746_v14 = vcombine.high %v164_v11, %v172_v12  ;;  %v180_v16 = vld [vmem:[#allocation5 + $0x108] sm:$0xff]  ;;  %3330 = vmatprep.subr.bf16.mxu1 %v4730_v8  ;;  %v4743_v18 = vcombine.low %v163_v6, %v171_v7  ;;  %s5716_s25 = scalar_lea.vmem %s4714_s23, 64  ;;  %p5721_p3 = scmp.lt.s32.totalorder %s4714_s23, %s4714_s23 }
  0xa6   :  { %v187_v15 = vld [vmem:[#allocation5 + $0x140] sm:$0xff]  ;;  %v188_v17 = vld [vmem:[#allocation5 + $0x148] sm:$0xff]  ;;  %3249 = vmatpush1.bf16.msra.mxu0 %v4727_v5  ;;  %3331 = vmatpush1.bf16.msra.mxu1 %v4729_v9  ;;  %v4745_v19 = vcombine.low %v164_v11, %v172_v12  ;;  %v5928_v56 = vsub.s32 %v670_v46, %v5925_v47  ;;  %p5717_p2 = scmp.ne.s32.totalorder %s4714_s23, %s5716_s25  ;;  %p5722_p4 = scmp.lt.s32.totalorder %s5716_s25, %s5716_s25 }
  0xa7   :  { %3250 = vmatprep.subr.bf16.mxu0 %v4744_v10  ;;  %v4760_v20 = vcombine.high %v179_v13, %v187_v15  ;;  %3332 = vmatprep.subr.bf16.mxu1 %v4746_v14  ;;  %v4762_v21 = vcombine.high %v180_v16, %v188_v17  ;;  %v195_v22 = vld [vmem:[#allocation5 + $0x180] sm:$0xff]  ;;  %v196_v24 = vld [vmem:[#allocation5 + $0x188] sm:$0xff]  ;;  %v4759_v26 = vcombine.low %v179_v13, %v187_v15 }
  0xa8   :  { %v203_v23 = vld [vmem:[#allocation5 + $0x1c0] sm:$0xff]  ;;  %v204_v25 = vld [vmem:[#allocation5 + $0x1c8] sm:$0xff]  ;;  %v4761_v27 = vcombine.low %v180_v16, %v188_v17  ;;  %v5935_v3 = vrot.slane %v667_v63, %v5928_v56  ;;  %p5723_p5 = por %p5722_p4, %p5721_p3 }
  0xa9   :  { %v4776_v28 = vcombine.high %v195_v22, %v203_v23  ;;  %v4778_v29 = vcombine.high %v196_v24, %v204_v25  ;;  %v211_v30 = vld [vmem:[#allocation5 + $0x200] sm:$0xff]  ;;  %v212_v32 = vld [vmem:[#allocation5 + $0x208] sm:$0xff]  ;;  %v4775_v34 = vcombine.low %v195_v22, %v203_v23  ;;  %v4777_v38 = vcombine.low %v196_v24, %v204_v25 }
  0xaa   :  { %3251 = vmatpush1.bf16.msra.mxu0 %v4743_v18  ;;  %3333 = vmatpush1.bf16.msra.mxu1 %v4745_v19  ;;  %v219_v31 = vld [vmem:[#allocation5 + $0x240] sm:$0xff]  ;;  %v220_v33 = vld [vmem:[#allocation5 + $0x248] sm:$0xff]  ;;  %p5724_p6 = pnand %p5723_p5, %p5717_p2 }
  0xab   :  { %3252 = vmatprep.subr.bf16.mxu0 %v4760_v20  ;;  %3334 = vmatprep.subr.bf16.mxu1 %v4762_v21  ;;  %v4792_v39 = vcombine.high %v211_v30, %v219_v31  ;;  %v4794_v40 = vcombine.high %v212_v32, %v220_v33  ;;  %v227_v41 = vld [vmem:[#allocation5 + $0x280] sm:$0xff]  ;;  %v228_v43 = vld [vmem:[#allocation5 + $0x288] sm:$0xff]  ;;  %v4791_v45 = vcombine.low %v211_v30, %v219_v31 }
  0xac   :  { %v235_v42 = vld [vmem:[#allocation5 + $0x2c0] sm:$0xff]  ;;  %v236_v44 = vld [vmem:[#allocation5 + $0x2c8] sm:$0xff]  ;;  %v4793_v48 = vcombine.low %v212_v32, %v220_v33  ;;  %3280 = vmatprep.mubr.bf16.mxu0 %v5935_v3  ;;  %3362 = vmatprep.mubr.bf16.mxu1 %v5935_v3 }
  0xad   :  { %v4808_v49 = vcombine.high %v227_v41, %v235_v42  ;;  %v4810_v50 = vcombine.high %v228_v43, %v236_v44  ;;  %v243_v51 = vld [vmem:[#allocation5 + $0x300] sm:$0xff]  ;;  %v244_v53 = vld [vmem:[#allocation5 + $0x308] sm:$0xff]  ;;  %v4807_v55 = vcombine.low %v227_v41, %v235_v42  ;;  %v4809_v57 = vcombine.low %v228_v43, %v236_v44 }
  0xae   :  { %3253 = vmatpush1.bf16.msra.mxu0 %v4759_v26  ;;  %3335 = vmatpush1.bf16.msra.mxu1 %v4761_v27  ;;  %v251_v52 = vld [vmem:[#allocation5 + $0x340] sm:$0xff]  ;;  %v252_v54 = vld [vmem:[#allocation5 + $0x348] sm:$0xff] }
  0xaf   :  { %3254 = vmatprep.subr.bf16.mxu0 %v4776_v28  ;;  %3336 = vmatprep.subr.bf16.mxu1 %v4778_v29  ;;  %v4824_v58 = vcombine.high %v243_v51, %v251_v52  ;;  %v4826_v60 = vcombine.high %v244_v53, %v252_v54  ;;  %v259_v61 = vld [vmem:[#allocation5 + $0x380] sm:$0xff]  ;;  %v260_v0 = vld [vmem:[#allocation5 + $0x388] sm:$0xff]  ;;  %v4823_v2 = vcombine.low %v243_v51, %v251_v52 }
  0xb0   :  { %v267_v62 = vld [vmem:[#allocation5 + $0x3c0] sm:$0xff]  ;;  %v268_v1 = vld [vmem:[#allocation5 + $0x3c8] sm:$0xff]  ;;  %v4825_v4 = vcombine.low %v244_v53, %v252_v54 }
  0xb1   :  { %v4840_v5 = vcombine.high %v259_v61, %v267_v62  ;;  %v4842_v6 = vcombine.high %v260_v0, %v268_v1  ;;  %v275_v7 = vld [vmem:[#allocation5 + $0x400] sm:$0xff]  ;;  %v276_v9 = vld [vmem:[#allocation5 + $0x408] sm:$0xff]  ;;  %v4839_v11 = vcombine.low %v259_v61, %v267_v62  ;;  %v4841_v12 = vcombine.low %v260_v0, %v268_v1 }
  0xb2   :  { %3255 = vmatpush1.bf16.msra.mxu0 %v4775_v34  ;;  %3337 = vmatpush1.bf16.msra.mxu1 %v4777_v38  ;;  %v283_v8 = vld [vmem:[#allocation5 + $0x440] sm:$0xff]  ;;  %v284_v10 = vld [vmem:[#allocation5 + $0x448] sm:$0xff] }
  0xb3   :  { %3256 = vmatprep.subr.bf16.mxu0 %v4792_v39  ;;  %3338 = vmatprep.subr.bf16.mxu1 %v4794_v40  ;;  %v4856_v13 = vcombine.high %v275_v7, %v283_v8  ;;  %v4858_v14 = vcombine.high %v276_v9, %v284_v10  ;;  %v291_v15 = vld [vmem:[#allocation5 + $0x480] sm:$0xff]  ;;  %v292_v17 = vld [vmem:[#allocation5 + $0x488] sm:$0xff]  ;;  %v4855_v19 = vcombine.low %v275_v7, %v283_v8 }
  0xb4   :  { %v299_v16 = vld [vmem:[#allocation5 + $0x4c0] sm:$0xff]  ;;  %v300_v18 = vld [vmem:[#allocation5 + $0x4c8] sm:$0xff]  ;;  %v4857_v20 = vcombine.low %v276_v9, %v284_v10 }
  0xb5   :  { %v4872_v21 = vcombine.high %v291_v15, %v299_v16  ;;  %v4874_v22 = vcombine.high %v292_v17, %v300_v18  ;;  %v307_v23 = vld [vmem:[#allocation5 + $0x500] sm:$0xff]  ;;  %v308_v25 = vld [vmem:[#allocation5 + $0x508] sm:$0xff]  ;;  %v4871_v27 = vcombine.low %v291_v15, %v299_v16  ;;  %v4873_v28 = vcombine.low %v292_v17, %v300_v18 }
  0xb6   :  { %3257 = vmatpush1.bf16.msra.mxu0 %v4791_v45  ;;  %3339 = vmatpush1.bf16.msra.mxu1 %v4793_v48  ;;  %v315_v24 = vld [vmem:[#allocation5 + $0x540] sm:$0xff]  ;;  %v316_v26 = vld [vmem:[#allocation5 + $0x548] sm:$0xff] }
  0xb7   :  { %3258 = vmatprep.subr.bf16.mxu0 %v4808_v49  ;;  %3340 = vmatprep.subr.bf16.mxu1 %v4810_v50  ;;  %v4888_v29 = vcombine.high %v307_v23, %v315_v24  ;;  %v4890_v30 = vcombine.high %v308_v25, %v316_v26  ;;  %v323_v31 = vld [vmem:[#allocation5 + $0x580] sm:$0xff]  ;;  %v324_v33 = vld [vmem:[#allocation5 + $0x588] sm:$0xff]  ;;  %v4887_v35 = vcombine.low %v307_v23, %v315_v24 }
  0xb8   :  { %v331_v32 = vld [vmem:[#allocation5 + $0x5c0] sm:$0xff]  ;;  %v332_v34 = vld [vmem:[#allocation5 + $0x5c8] sm:$0xff]  ;;  %v4889_v36 = vcombine.low %v308_v25, %v316_v26 }
  0xb9   :  { %v4904_v37 = vcombine.high %v323_v31, %v331_v32  ;;  %v4906_v38 = vcombine.high %v324_v33, %v332_v34  ;;  %v339_v39 = vld [vmem:[#allocation5 + $0x600] sm:$0xff]  ;;  %v340_v41 = vld [vmem:[#allocation5 + $0x608] sm:$0xff]  ;;  %v4903_v43 = vcombine.low %v323_v31, %v331_v32  ;;  %v4905_v44 = vcombine.low %v324_v33, %v332_v34 }
  0xba   :  { %3259 = vmatpush1.bf16.msra.mxu0 %v4807_v55  ;;  %3341 = vmatpush1.bf16.msra.mxu1 %v4809_v57  ;;  %v347_v40 = vld [vmem:[#allocation5 + $0x640] sm:$0xff]  ;;  %v348_v42 = vld [vmem:[#allocation5 + $0x648] sm:$0xff]  ;;  %v5945_v32 = vcombine.high %v5935_v3, %v5935_v3 }
  0xbb   :  { %3260 = vmatprep.subr.bf16.mxu0 %v4824_v58  ;;  %3342 = vmatprep.subr.bf16.mxu1 %v4826_v60  ;;  %v4920_v45 = vcombine.high %v339_v39, %v347_v40  ;;  %v4922_v46 = vcombine.high %v340_v41, %v348_v42  ;;  %v355_v48 = vld [vmem:[#allocation5 + $0x680] sm:$0xff]  ;;  %v356_v50 = vld [vmem:[#allocation5 + $0x688] sm:$0xff]  ;;  %v4919_v52 = vcombine.low %v339_v39, %v347_v40 }
  0xbc   :  { %v363_v49 = vld [vmem:[#allocation5 + $0x6c0] sm:$0xff]  ;;  %v364_v51 = vld [vmem:[#allocation5 + $0x6c8] sm:$0xff]  ;;  %v4921_v53 = vcombine.low %v340_v41, %v348_v42 }
  0xbd   :  { %v4936_v54 = vcombine.high %v355_v48, %v363_v49  ;;  %v4938_v55 = vcombine.high %v356_v50, %v364_v51  ;;  %v371_v57 = vld [vmem:[#allocation5 + $0x700] sm:$0xff]  ;;  %v372_v60 = vld [vmem:[#allocation5 + $0x708] sm:$0xff]  ;;  %v4935_v62 = vcombine.low %v355_v48, %v363_v49  ;;  %v4937_v63 = vcombine.low %v356_v50, %v364_v51 }
  0xbe   :  { %3261 = vmatpush1.bf16.msra.mxu0 %v4823_v2  ;;  %3343 = vmatpush1.bf16.msra.mxu1 %v4825_v4  ;;  %v379_v58 = vld [vmem:[#allocation5 + $0x740] sm:$0xff]  ;;  %v380_v61 = vld [vmem:[#allocation5 + $0x748] sm:$0xff] }
  0xbf   :  { %3262 = vmatprep.subr.bf16.mxu0 %v4840_v5  ;;  %3344 = vmatprep.subr.bf16.mxu1 %v4842_v6  ;;  %v4952_v0 = vcombine.high %v371_v57, %v379_v58  ;;  %v4954_v1 = vcombine.high %v372_v60, %v380_v61  ;;  %v387_v2 = vld [vmem:[#allocation5 + $0x780] sm:$0xff]  ;;  %v388_v5 = vld [vmem:[#allocation5 + $0x788] sm:$0xff]  ;;  %v4951_v7 = vcombine.low %v371_v57, %v379_v58 }
  0xc0   :  { %v395_v4 = vld [vmem:[#allocation5 + $0x7c0] sm:$0xff]  ;;  %v396_v6 = vld [vmem:[#allocation5 + $0x7c8] sm:$0xff]  ;;  %v4953_v8 = vcombine.low %v372_v60, %v380_v61 }
  0xc1   :  { %v4968_v9 = vcombine.high %v387_v2, %v395_v4  ;;  %v4970_v10 = vcombine.high %v388_v5, %v396_v6  ;;  %v4967_v15 = vcombine.low %v387_v2, %v395_v4  ;;  %v4969_v16 = vcombine.low %v388_v5, %v396_v6  ;;  %v428_v23 = vld [vmem:[#allocation5 + $0x8c8] sm:$0xff]  ;;  %v451_v34 = vld [vmem:[#allocation5 + $0x980] sm:$0xff] }
  0xc2   :  { %3263 = vmatpush1.bf16.msra.mxu0 %v4839_v11  ;;  %3345 = vmatpush1.bf16.msra.mxu1 %v4841_v12  ;;  %v403_v11 = vld [vmem:[#allocation5 + $0x800] sm:$0xff]  ;;  %v444_v31 = vld [vmem:[#allocation5 + $0x948] sm:$0xff] }
  0xc3   :  { %3264 = vmatprep.subr.bf16.mxu0 %v4856_v13  ;;  %3346 = vmatprep.subr.bf16.mxu1 %v4858_v14  ;;  %v411_v12 = vld [vmem:[#allocation5 + $0x840] sm:$0xff]  ;;  %v404_v13 = vld [vmem:[#allocation5 + $0x808] sm:$0xff] }
  0xc4   :  { %v412_v14 = vld [vmem:[#allocation5 + $0x848] sm:$0xff]  ;;  %v4984_v17 = vcombine.high %v403_v11, %v411_v12  ;;  %v4983_v24 = vcombine.low %v403_v11, %v411_v12  ;;  %v467_v42 = vld [vmem:[#allocation5 + $0xa00] sm:$0xff] }
  0xc5   :  { %v4986_v18 = vcombine.high %v404_v13, %v412_v14  ;;  %v4985_v25 = vcombine.low %v404_v13, %v412_v14  ;;  %v483_v51 = vld [vmem:[#allocation5 + $0xa80] sm:$0xff] }
  0xc6   :  { %3265 = vmatpush1.bf16.msra.mxu0 %v4855_v19  ;;  %3347 = vmatpush1.bf16.msra.mxu1 %v4857_v20  ;;  %v419_v19 = vld [vmem:[#allocation5 + $0x880] sm:$0xff] }
  0xc7   :  { %3266 = vmatprep.subr.bf16.mxu0 %v4872_v21  ;;  %3348 = vmatprep.subr.bf16.mxu1 %v4874_v22  ;;  %v427_v20 = vld [vmem:[#allocation5 + $0x8c0] sm:$0xff]  ;;  %v5941_v21 = vrot.slane %v5930_v59, %v5928_v56  ;;  %v420_v22 = vld [vmem:[#allocation5 + $0x888] sm:$0xff] }
  0xc8   :  { %v5000_v26 = vcombine.high %v419_v19, %v427_v20  ;;  %v4999_v56 = vcombine.low %v419_v19, %v427_v20  ;;  %v5001_v59 = vcombine.low %v420_v22, %v428_v23  ;;  %v499_v61 = vld [vmem:[#allocation5 + $0xb00] sm:$0xff] }
  0xc9   :  { %v515_v6 = vld [vmem:[#allocation5 + $0xb80] sm:$0xff] }
  0xca   :  { %3267 = vmatpush1.bf16.msra.mxu0 %v4871_v27  ;;  %3349 = vmatpush1.bf16.msra.mxu1 %v4873_v28  ;;  %v435_v27 = vld [vmem:[#allocation5 + $0x900] sm:$0xff] }
  0xcb   :  { %3268 = vmatprep.subr.bf16.mxu0 %v4888_v29  ;;  %3350 = vmatprep.subr.bf16.mxu1 %v4890_v30  ;;  %v443_v28 = vld [vmem:[#allocation5 + $0x940] sm:$0xff]  ;;  %v436_v29 = vld [vmem:[#allocation5 + $0x908] sm:$0xff]  ;;  %v5002_v30 = vcombine.high %v420_v22, %v428_v23 }
  0xcc   :  { %v5016_v33 = vcombine.high %v435_v27, %v443_v28  ;;  %v5015_v39 = vcombine.low %v435_v27, %v443_v28  ;;  %v5017_v40 = vcombine.low %v436_v29, %v444_v31  ;;  %v531_v14 = vld [vmem:[#allocation5 + $0xc00] sm:$0xff]  ;;  %v556_v27 = vld [vmem:[#allocation5 + $0xcc8] sm:$0xff] }
  0xcd   :  { %v547_v23 = vld [vmem:[#allocation5 + $0xc80] sm:$0xff] }
  0xce   :  { %3269 = vmatpush1.bf16.msra.mxu0 %v4887_v35  ;;  %3351 = vmatpush1.bf16.msra.mxu1 %v4889_v36  ;;  %v459_v35 = vld [vmem:[#allocation5 + $0x9c0] sm:$0xff]  ;;  %v452_v36 = vld [vmem:[#allocation5 + $0x988] sm:$0xff] }
  0xcf   :  { %3270 = vmatprep.subr.bf16.mxu0 %v4904_v37  ;;  %3352 = vmatprep.subr.bf16.mxu1 %v4906_v38  ;;  %v5018_v37 = vcombine.high %v436_v29, %v444_v31  ;;  %v460_v38 = vld [vmem:[#allocation5 + $0x9c8] sm:$0xff]  ;;  %v5032_v41 = vcombine.high %v451_v34, %v459_v35  ;;  %v5031_v48 = vcombine.low %v451_v34, %v459_v35  ;;  %v563_v31 = vld [vmem:[#allocation5 + $0xd00] sm:$0xff] }
  0xd0   :  { %v5033_v49 = vcombine.low %v452_v36, %v460_v38  ;;  %v572_v34 = vld [vmem:[#allocation5 + $0xd48] sm:$0xff] }
  0xd2   :  { %3271 = vmatpush1.bf16.msra.mxu0 %v4903_v43  ;;  %3353 = vmatpush1.bf16.msra.mxu1 %v4905_v44  ;;  %v475_v43 = vld [vmem:[#allocation5 + $0xa40] sm:$0xff]  ;;  %v468_v44 = vld [vmem:[#allocation5 + $0xa08] sm:$0xff] }
  0xd3   :  { %3272 = vmatprep.subr.bf16.mxu0 %v4920_v45  ;;  %3354 = vmatprep.subr.bf16.mxu1 %v4922_v46  ;;  %v5034_v45 = vcombine.high %v452_v36, %v460_v38  ;;  %v476_v46 = vld [vmem:[#allocation5 + $0xa48] sm:$0xff]  ;;  %v5048_v50 = vcombine.high %v467_v42, %v475_v43  ;;  %v5047_v57 = vcombine.low %v467_v42, %v475_v43  ;;  %v579_v38 = vld [vmem:[#allocation5 + $0xd80] sm:$0xff] }
  0xd4   :  { %v5049_v58 = vcombine.low %v468_v44, %v476_v46  ;;  %v588_v42 = vld [vmem:[#allocation5 + $0xdc8] sm:$0xff] }
  0xd6   :  { %3273 = vmatpush1.bf16.msra.mxu0 %v4919_v52  ;;  %3355 = vmatpush1.bf16.msra.mxu1 %v4921_v53  ;;  %v491_v52 = vld [vmem:[#allocation5 + $0xac0] sm:$0xff]  ;;  %v484_v53 = vld [vmem:[#allocation5 + $0xa88] sm:$0xff] }
  0xd7   :  { %3274 = vmatprep.subr.bf16.mxu0 %v4936_v54  ;;  %3356 = vmatprep.subr.bf16.mxu1 %v4938_v55  ;;  %v5050_v54 = vcombine.high %v468_v44, %v476_v46  ;;  %v492_v55 = vld [vmem:[#allocation5 + $0xac8] sm:$0xff]  ;;  %v5064_v60 = vcombine.high %v483_v51, %v491_v52  ;;  %v5063_v2 = vcombine.low %v483_v51, %v491_v52  ;;  %v595_v46 = vld [vmem:[#allocation5 + $0xe00] sm:$0xff] }
  0xd8   :  { %v5065_v4 = vcombine.low %v484_v53, %v492_v55  ;;  %v604_v51 = vld [vmem:[#allocation5 + $0xe48] sm:$0xff] }
  0xda   :  { %3275 = vmatpush1.bf16.msra.mxu0 %v4935_v62  ;;  %3357 = vmatpush1.bf16.msra.mxu1 %v4937_v63  ;;  %v507_v62 = vld [vmem:[#allocation5 + $0xb40] sm:$0xff]  ;;  %v500_v63 = vld [vmem:[#allocation5 + $0xb08] sm:$0xff] }
  0xdb   :  { %3276 = vmatprep.subr.bf16.mxu0 %v4952_v0  ;;  %3358 = vmatprep.subr.bf16.mxu1 %v4954_v1  ;;  %v5066_v0 = vcombine.high %v484_v53, %v492_v55  ;;  %v508_v1 = vld [vmem:[#allocation5 + $0xb48] sm:$0xff]  ;;  %v5080_v5 = vcombine.high %v499_v61, %v507_v62  ;;  %v5079_v11 = vcombine.low %v499_v61, %v507_v62  ;;  %v611_v55 = vld [vmem:[#allocation5 + $0xe80] sm:$0xff] }
  0xdc   :  { %v5081_v12 = vcombine.low %v500_v63, %v508_v1  ;;  %v620_v61 = vld [vmem:[#allocation5 + $0xec8] sm:$0xff] }
  0xde   :  { %3277 = vmatpush1.bf16.msra.mxu0 %v4951_v7  ;;  %3359 = vmatpush1.bf16.msra.mxu1 %v4953_v8  ;;  %v523_v7 = vld [vmem:[#allocation5 + $0xbc0] sm:$0xff]  ;;  %v516_v8 = vld [vmem:[#allocation5 + $0xb88] sm:$0xff] }
  0xdf   :  { %3278 = vmatprep.subr.bf16.mxu0 %v4968_v9  ;;  %3360 = vmatprep.subr.bf16.mxu1 %v4970_v10  ;;  %v5082_v9 = vcombine.high %v500_v63, %v508_v1  ;;  %v524_v10 = vld [vmem:[#allocation5 + $0xbc8] sm:$0xff]  ;;  %v5096_v13 = vcombine.high %v515_v6, %v523_v7  ;;  %v5095_v19 = vcombine.low %v515_v6, %v523_v7  ;;  %v627_v1 = vld [vmem:[#allocation5 + $0xf00] sm:$0xff] }
  0xe0   :  { %v5097_v20 = vcombine.low %v516_v8, %v524_v10  ;;  %v636_v6 = vld [vmem:[#allocation5 + $0xf48] sm:$0xff] }
  0xe2   :  { %3279 = vmatpush1.bf16.msra.mxu0 %v4967_v15  ;;  %3361 = vmatpush1.bf16.msra.mxu1 %v4969_v16  ;;  %v539_v15 = vld [vmem:[#allocation5 + $0xc40] sm:$0xff]  ;;  %v532_v16 = vld [vmem:[#allocation5 + $0xc08] sm:$0xff] }
  0xe3   :  { %3289 = vmatprep.subr.bf16.mxu0 %v4984_v17  ;;  %3371 = vmatprep.subr.bf16.mxu1 %v4986_v18  ;;  %v5098_v17 = vcombine.high %v516_v8, %v524_v10  ;;  %v540_v18 = vld [vmem:[#allocation5 + $0xc48] sm:$0xff]  ;;  %v5112_v22 = vcombine.high %v531_v14, %v539_v15  ;;  %v5111_v28 = vcombine.low %v531_v14, %v539_v15  ;;  %v643_v10 = vld [vmem:[#allocation5 + $0xf80] sm:$0xff] }
  0xe4   :  { %v5113_v29 = vcombine.low %v532_v16, %v540_v18  ;;  %v652_v14 = vld [vmem:[#allocation5 + $0xfc8] sm:$0xff] }
  0xe5   :  { %3281 = vmatmul.mubr.bf16.vlgmr.msra.gmra.mrb[0].mxu0 %v5941_v21  ;;  %3363 = vmatmul.mubr.bf16.vlgmr.msra.gmra.mrb[0].mxu1 %v5941_v21 }
  0xe6   :  { %3290 = vmatpush1.bf16.msra.mxu0 %v4983_v24  ;;  %3372 = vmatpush1.bf16.msra.mxu1 %v4985_v25  ;;  %v555_v24 = vld [vmem:[#allocation5 + $0xcc0] sm:$0xff]  ;;  %v548_v25 = vld [vmem:[#allocation5 + $0xc88] sm:$0xff] }
  0xe7   :  { %3291 = vmatprep.subr.bf16.mxu0 %v5000_v26  ;;  %3373 = vmatprep.subr.bf16.mxu1 %v5002_v30  ;;  %v5114_v26 = vcombine.high %v532_v16, %v540_v18  ;;  %v5128_v30 = vcombine.high %v547_v23, %v555_v24  ;;  %v5127_v35 = vcombine.low %v547_v23, %v555_v24  ;;  %v158_v23 = vld [vmem:[#allocation5 + $0x58] sm:$0xff] }
  0xe8   :  { %3321 = vmatprep.mubr.bf16.mxu0 %v5945_v32  ;;  %3403 = vmatprep.mubr.bf16.mxu1 %v5945_v32  ;;  %v5129_v36 = vcombine.low %v548_v25, %v556_v27 }
  0xea   :  { %3292 = vmatpush1.bf16.msra.mxu0 %v4999_v56  ;;  %3374 = vmatpush1.bf16.msra.mxu1 %v5001_v59  ;;  %v571_v56 = vld [vmem:[#allocation5 + $0xd40] sm:$0xff]  ;;  %v564_v59 = vld [vmem:[#allocation5 + $0xd08] sm:$0xff] }
  0xeb   :  { %3293 = vmatprep.subr.bf16.mxu0 %v5016_v33  ;;  %3375 = vmatprep.subr.bf16.mxu1 %v5018_v37  ;;  %v5130_v33 = vcombine.high %v548_v25, %v556_v27  ;;  %v5144_v37 = vcombine.high %v563_v31, %v571_v56  ;;  %v5143_v43 = vcombine.low %v563_v31, %v571_v56  ;;  %v166_v31 = vld [vmem:[#allocation5 + $0x98] sm:$0xff] }
  0xec   :  { %v5145_v44 = vcombine.low %v564_v59, %v572_v34  ;;  %v174_v56 = vld [vmem:[#allocation5 + $0xd8] sm:$0xff] }
  0xee   :  { %3294 = vmatpush1.bf16.msra.mxu0 %v5015_v39  ;;  %3376 = vmatpush1.bf16.msra.mxu1 %v5017_v40  ;;  %v587_v39 = vld [vmem:[#allocation5 + $0xdc0] sm:$0xff]  ;;  %v580_v40 = vld [vmem:[#allocation5 + $0xd88] sm:$0xff] }
  0xef   :  { %3295 = vmatprep.subr.bf16.mxu0 %v5032_v41  ;;  %3377 = vmatprep.subr.bf16.mxu1 %v5034_v45  ;;  %v5146_v41 = vcombine.high %v564_v59, %v572_v34  ;;  %v5160_v45 = vcombine.high %v579_v38, %v587_v39  ;;  %v5159_v52 = vcombine.low %v579_v38, %v587_v39  ;;  %v182_v38 = vld [vmem:[#allocation5 + $0x118] sm:$0xff] }
  0xf0   :  { %v5161_v53 = vcombine.low %v580_v40, %v588_v42  ;;  %v190_v39 = vld [vmem:[#allocation5 + $0x158] sm:$0xff] }
  0xf2   :  { %3296 = vmatpush1.bf16.msra.mxu0 %v5031_v48  ;;  %3378 = vmatpush1.bf16.msra.mxu1 %v5033_v49  ;;  %v603_v48 = vld [vmem:[#allocation5 + $0xe40] sm:$0xff]  ;;  %v596_v49 = vld [vmem:[#allocation5 + $0xe08] sm:$0xff] }
  0xf3   :  { %3297 = vmatprep.subr.bf16.mxu0 %v5048_v50  ;;  %3379 = vmatprep.subr.bf16.mxu1 %v5050_v54  ;;  %v5162_v50 = vcombine.high %v580_v40, %v588_v42  ;;  %v5176_v54 = vcombine.high %v595_v46, %v603_v48  ;;  %v5175_v62 = vcombine.low %v595_v46, %v603_v48  ;;  %v198_v46 = vld [vmem:[#allocation5 + $0x198] sm:$0xff] }
  0xf4   :  { %v5177_v63 = vcombine.low %v596_v49, %v604_v51  ;;  %v206_v48 = vld [vmem:[#allocation5 + $0x1d8] sm:$0xff] }
  0xf6   :  { %3298 = vmatpush1.bf16.msra.mxu0 %v5047_v57  ;;  %3380 = vmatpush1.bf16.msra.mxu1 %v5049_v58  ;;  %v619_v57 = vld [vmem:[#allocation5 + $0xec0] sm:$0xff]  ;;  %v612_v58 = vld [vmem:[#allocation5 + $0xe88] sm:$0xff] }
  0xf7   :  { %3299 = vmatprep.subr.bf16.mxu0 %v5064_v60  ;;  %3381 = vmatprep.subr.bf16.mxu1 %v5066_v0  ;;  %v5178_v60 = vcombine.high %v596_v49, %v604_v51  ;;  %v5192_v0 = vcombine.high %v611_v55, %v619_v57  ;;  %v5191_v7 = vcombine.low %v611_v55, %v619_v57  ;;  %v214_v55 = vld [vmem:[#allocation5 + $0x218] sm:$0xff] }
  0xf8   :  { %v5193_v8 = vcombine.low %v612_v58, %v620_v61  ;;  %v222_v57 = vld [vmem:[#allocation5 + $0x258] sm:$0xff] }
  0xfa   :  { %3300 = vmatpush1.bf16.msra.mxu0 %v5063_v2  ;;  %3382 = vmatpush1.bf16.msra.mxu1 %v5065_v4  ;;  %v635_v2 = vld [vmem:[#allocation5 + $0xf40] sm:$0xff]  ;;  %v628_v4 = vld [vmem:[#allocation5 + $0xf08] sm:$0xff] }
  0xfb   :  { %3301 = vmatprep.subr.bf16.mxu0 %v5080_v5  ;;  %3383 = vmatprep.subr.bf16.mxu1 %v5082_v9  ;;  %v5194_v5 = vcombine.high %v612_v58, %v620_v61  ;;  %v5208_v9 = vcombine.high %v627_v1, %v635_v2  ;;  %v5207_v15 = vcombine.low %v627_v1, %v635_v2  ;;  %v230_v1 = vld [vmem:[#allocation5 + $0x298] sm:$0xff] }
  0xfc   :  { %v5209_v16 = vcombine.low %v628_v4, %v636_v6  ;;  %v238_v2 = vld [vmem:[#allocation5 + $0x2d8] sm:$0xff] }
  0xfe   :  { %3302 = vmatpush1.bf16.msra.mxu0 %v5079_v11  ;;  %3384 = vmatpush1.bf16.msra.mxu1 %v5081_v12  ;;  %v651_v11 = vld [vmem:[#allocation5 + $0xfc0] sm:$0xff]  ;;  %v644_v12 = vld [vmem:[#allocation5 + $0xf88] sm:$0xff] }
  0xff   :  { %3303 = vmatprep.subr.bf16.mxu0 %v5096_v13  ;;  %3385 = vmatprep.subr.bf16.mxu1 %v5098_v17  ;;  %v5210_v13 = vcombine.high %v628_v4, %v636_v6  ;;  %v5224_v17 = vcombine.high %v643_v10, %v651_v11  ;;  %v5226_v18 = vcombine.high %v644_v12, %v652_v14 }
 0x100   :  { %v5223_v24 = vcombine.low %v643_v10, %v651_v11  ;;  %v5225_v25 = vcombine.low %v644_v12, %v652_v14  ;;  %v246_v10 = vld [vmem:[#allocation5 + $0x318] sm:$0xff] }
 0x101   :  { %v254_v11 = vld [vmem:[#allocation5 + $0x358] sm:$0xff] }
 0x102   :  { %3304 = vmatpush1.bf16.msra.mxu0 %v5095_v19  ;;  %3386 = vmatpush1.bf16.msra.mxu1 %v5097_v20  ;;  %v149_v19 = vld [vmem:[#allocation5 + $0x10] sm:$0xff] }
 0x103   :  { %3305 = vmatprep.subr.bf16.mxu0 %v5112_v22  ;;  %3387 = vmatprep.subr.bf16.mxu1 %v5114_v26  ;;  %v157_v20 = vld [vmem:[#allocation5 + $0x50] sm:$0xff]  ;;  %v150_v22 = vld [vmem:[#allocation5 + $0x18] sm:$0xff] }
 0x104   :  { %v4732_v26 = vcombine.high %v149_v19, %v157_v20  ;;  %v4734_v27 = vcombine.high %v150_v22, %v158_v23  ;;  %v4731_v59 = vcombine.low %v149_v19, %v157_v20  ;;  %v270_v19 = vld [vmem:[#allocation5 + $0x3d8] sm:$0xff] }
 0x106   :  { %3306 = vmatpush1.bf16.msra.mxu0 %v5111_v28  ;;  %3388 = vmatpush1.bf16.msra.mxu1 %v5113_v29  ;;  %v165_v28 = vld [vmem:[#allocation5 + $0x90] sm:$0xff] }
 0x107   :  { %3307 = vmatprep.subr.bf16.mxu0 %v5128_v30  ;;  %3389 = vmatprep.subr.bf16.mxu1 %v5130_v33  ;;  %v173_v29 = vld [vmem:[#allocation5 + $0xd0] sm:$0xff]  ;;  %v5953_v30 = vcombine.high %v5941_v21, %v5941_v21  ;;  %v4733_v33 = vcombine.low %v150_v22, %v158_v23  ;;  %v4829_v22 = vcombine.low %v246_v10, %v254_v11 }
 0x108   :  { %v4748_v34 = vcombine.high %v165_v28, %v173_v29  ;;  %v4747_v40 = vcombine.low %v165_v28, %v173_v29  ;;  %v286_v28 = vld [vmem:[#allocation5 + $0x458] sm:$0xff] }
 0x10a   :  { %3308 = vmatpush1.bf16.msra.mxu0 %v5127_v35  ;;  %3390 = vmatpush1.bf16.msra.mxu1 %v5129_v36  ;;  %v4750_v35 = vcombine.high %v166_v31, %v174_v56  ;;  %v181_v36 = vld [vmem:[#allocation5 + $0x110] sm:$0xff] }
 0x10b   :  { %3309 = vmatprep.subr.bf16.mxu0 %v5144_v37  ;;  %3391 = vmatprep.subr.bf16.mxu1 %v5146_v41  ;;  %v189_v37 = vld [vmem:[#allocation5 + $0x150] sm:$0xff]  ;;  %v4749_v41 = vcombine.low %v166_v31, %v174_v56 }
 0x10c   :  { %v4764_v42 = vcombine.high %v181_v36, %v189_v37  ;;  %v4763_v49 = vcombine.low %v181_v36, %v189_v37  ;;  %v302_v36 = vld [vmem:[#allocation5 + $0x4d8] sm:$0xff] }
 0x10e   :  { %3310 = vmatpush1.bf16.msra.mxu0 %v5143_v43  ;;  %3392 = vmatpush1.bf16.msra.mxu1 %v5145_v44  ;;  %v4766_v43 = vcombine.high %v182_v38, %v190_v39  ;;  %v197_v44 = vld [vmem:[#allocation5 + $0x190] sm:$0xff] }
 0x10f   :  { %3311 = vmatprep.subr.bf16.mxu0 %v5160_v45  ;;  %3393 = vmatprep.subr.bf16.mxu1 %v5162_v50  ;;  %v205_v45 = vld [vmem:[#allocation5 + $0x1d0] sm:$0xff]  ;;  %v4765_v50 = vcombine.low %v182_v38, %v190_v39 }
 0x110   :  { %v4780_v51 = vcombine.high %v197_v44, %v205_v45  ;;  %v4779_v58 = vcombine.low %v197_v44, %v205_v45  ;;  %v318_v44 = vld [vmem:[#allocation5 + $0x558] sm:$0xff] }
 0x112   :  { %3312 = vmatpush1.bf16.msra.mxu0 %v5159_v52  ;;  %3394 = vmatpush1.bf16.msra.mxu1 %v5161_v53  ;;  %v4782_v52 = vcombine.high %v198_v46, %v206_v48  ;;  %v213_v53 = vld [vmem:[#allocation5 + $0x210] sm:$0xff] }
 0x113   :  { %3313 = vmatprep.subr.bf16.mxu0 %v5176_v54  ;;  %3395 = vmatprep.subr.bf16.mxu1 %v5178_v60  ;;  %v221_v54 = vld [vmem:[#allocation5 + $0x250] sm:$0xff]  ;;  %v4781_v60 = vcombine.low %v198_v46, %v206_v48 }
 0x114   :  { %v4796_v61 = vcombine.high %v213_v53, %v221_v54  ;;  %v4795_v4 = vcombine.low %v213_v53, %v221_v54  ;;  %v334_v53 = vld [vmem:[#allocation5 + $0x5d8] sm:$0xff] }
 0x116   :  { %3314 = vmatpush1.bf16.msra.mxu0 %v5175_v62  ;;  %3396 = vmatpush1.bf16.msra.mxu1 %v5177_v63  ;;  %v4798_v62 = vcombine.high %v214_v55, %v222_v57  ;;  %v229_v63 = vld [vmem:[#allocation5 + $0x290] sm:$0xff] }
 0x117   :  { %3315 = vmatprep.subr.bf16.mxu0 %v5192_v0  ;;  %3397 = vmatprep.subr.bf16.mxu1 %v5194_v5  ;;  %v237_v0 = vld [vmem:[#allocation5 + $0x2d0] sm:$0xff]  ;;  %v4797_v5 = vcombine.low %v214_v55, %v222_v57 }
 0x118   :  { %v4812_v6 = vcombine.high %v229_v63, %v237_v0  ;;  %v4811_v12 = vcombine.low %v229_v63, %v237_v0  ;;  %v350_v63 = vld [vmem:[#allocation5 + $0x658] sm:$0xff] }
 0x11a   :  { %3316 = vmatpush1.bf16.msra.mxu0 %v5191_v7  ;;  %3398 = vmatpush1.bf16.msra.mxu1 %v5193_v8  ;;  %v4814_v7 = vcombine.high %v230_v1, %v238_v2  ;;  %v245_v8 = vld [vmem:[#allocation5 + $0x310] sm:$0xff] }
 0x11b   :  { %3317 = vmatprep.subr.bf16.mxu0 %v5208_v9  ;;  %3399 = vmatprep.subr.bf16.mxu1 %v5210_v13  ;;  %v253_v9 = vld [vmem:[#allocation5 + $0x350] sm:$0xff]  ;;  %v4813_v13 = vcombine.low %v230_v1, %v238_v2 }
 0x11c   :  { %v4828_v14 = vcombine.high %v245_v8, %v253_v9  ;;  %v4827_v20 = vcombine.low %v245_v8, %v253_v9  ;;  %v366_v8 = vld [vmem:[#allocation5 + $0x6d8] sm:$0xff] }
 0x11e   :  { %3318 = vmatpush1.bf16.msra.mxu0 %v5207_v15  ;;  %3400 = vmatpush1.bf16.msra.mxu1 %v5209_v16  ;;  %v4830_v15 = vcombine.high %v246_v10, %v254_v11  ;;  %v261_v16 = vld [vmem:[#allocation5 + $0x390] sm:$0xff] }
 0x11f   :  { %3319 = vmatprep.subr.bf16.mxu0 %v5224_v17  ;;  %3401 = vmatprep.subr.bf16.mxu1 %v5226_v18  ;;  %v269_v17 = vld [vmem:[#allocation5 + $0x3d0] sm:$0xff]  ;;  %v262_v18 = vld [vmem:[#allocation5 + $0x398] sm:$0xff] }
 0x120   :  { %v4844_v23 = vcombine.high %v261_v16, %v269_v17  ;;  %v4843_v29 = vcombine.low %v261_v16, %v269_v17  ;;  %v4845_v31 = vcombine.low %v262_v18, %v270_v19  ;;  %v382_v16 = vld [vmem:[#allocation5 + $0x758] sm:$0xff] }
 0x122   :  { %3320 = vmatpush1.bf16.msra.mxu0 %v5223_v24  ;;  %3402 = vmatpush1.bf16.msra.mxu1 %v5225_v25  ;;  %v4846_v24 = vcombine.high %v262_v18, %v270_v19  ;;  %v277_v25 = vld [vmem:[#allocation5 + $0x410] sm:$0xff] }
 0x123   :  { %3412 = vmatprep.subr.bf16.mxu0 %v4732_v26  ;;  %3494 = vmatprep.subr.bf16.mxu1 %v4734_v27  ;;  %v285_v26 = vld [vmem:[#allocation5 + $0x450] sm:$0xff]  ;;  %v278_v27 = vld [vmem:[#allocation5 + $0x418] sm:$0xff] }
 0x124   :  { %v4860_v56 = vcombine.high %v277_v25, %v285_v26  ;;  %v4859_v37 = vcombine.low %v277_v25, %v285_v26  ;;  %v4861_v38 = vcombine.low %v278_v27, %v286_v28  ;;  %v398_v25 = vld [vmem:[#allocation5 + $0x7d8] sm:$0xff] }
 0x125   :  { %3322 = vmatmul.mubr.bf16.vlgmr.msra.gmra.mrb[0].mxu0 %v5953_v30  ;;  %3404 = vmatmul.mubr.bf16.vlgmr.msra.gmra.mrb[0].mxu1 %v5953_v30 }
 0x126   :  { %3413 = vmatpush1.bf16.msra.mxu0 %v4731_v59  ;;  %3495 = vmatpush1.bf16.msra.mxu1 %v4733_v33  ;;  %v4862_v59 = vcombine.high %v278_v27, %v286_v28  ;;  %v293_v33 = vld [vmem:[#allocation5 + $0x490] sm:$0xff] }
 0x127   :  { %3414 = vmatprep.subr.bf16.mxu0 %v4748_v34  ;;  %3496 = vmatprep.subr.bf16.mxu1 %v4750_v35  ;;  %v301_v34 = vld [vmem:[#allocation5 + $0x4d0] sm:$0xff]  ;;  %v294_v35 = vld [vmem:[#allocation5 + $0x498] sm:$0xff] }
 0x128   :  { %3444 = vmatprep.mubr.bf16.mxu0 %v5935_v3  ;;  %3526 = vmatprep.mubr.bf16.mxu1 %v5935_v3  ;;  %v4876_v39 = vcombine.high %v293_v33, %v301_v34  ;;  %v4875_v45 = vcombine.low %v293_v33, %v301_v34  ;;  %v4877_v46 = vcombine.low %v294_v35, %v302_v36  ;;  %v414_v33 = vld [vmem:[#allocation5 + $0x858] sm:$0xff] }
 0x12a   :  { %3415 = vmatpush1.bf16.msra.mxu0 %v4747_v40  ;;  %3497 = vmatpush1.bf16.msra.mxu1 %v4749_v41  ;;  %v4878_v40 = vcombine.high %v294_v35, %v302_v36  ;;  %v309_v41 = vld [vmem:[#allocation5 + $0x510] sm:$0xff] }
 0x12b   :  { %3416 = vmatprep.subr.bf16.mxu0 %v4764_v42  ;;  %3498 = vmatprep.subr.bf16.mxu1 %v4766_v43  ;;  %v317_v42 = vld [vmem:[#allocation5 + $0x550] sm:$0xff]  ;;  %v310_v43 = vld [vmem:[#allocation5 + $0x518] sm:$0xff] }
 0x12c   :  { %v4892_v48 = vcombine.high %v309_v41, %v317_v42  ;;  %v4891_v54 = vcombine.low %v309_v41, %v317_v42  ;;  %v4893_v55 = vcombine.low %v310_v43, %v318_v44  ;;  %v430_v41 = vld [vmem:[#allocation5 + $0x8d8] sm:$0xff] }
 0x12e   :  { %3417 = vmatpush1.bf16.msra.mxu0 %v4763_v49  ;;  %3499 = vmatpush1.bf16.msra.mxu1 %v4765_v50  ;;  %v4894_v49 = vcombine.high %v310_v43, %v318_v44  ;;  %v325_v50 = vld [vmem:[#allocation5 + $0x590] sm:$0xff] }
 0x12f   :  { %3418 = vmatprep.subr.bf16.mxu0 %v4780_v51  ;;  %3500 = vmatprep.subr.bf16.mxu1 %v4782_v52  ;;  %v333_v51 = vld [vmem:[#allocation5 + $0x5d0] sm:$0xff]  ;;  %v326_v52 = vld [vmem:[#allocation5 + $0x598] sm:$0xff] }
 0x130   :  { %v4908_v57 = vcombine.high %v325_v50, %v333_v51  ;;  %v4907_v0 = vcombine.low %v325_v50, %v333_v51  ;;  %v4909_v1 = vcombine.low %v326_v52, %v334_v53  ;;  %v446_v50 = vld [vmem:[#allocation5 + $0x958] sm:$0xff] }
 0x132   :  { %3419 = vmatpush1.bf16.msra.mxu0 %v4779_v58  ;;  %3501 = vmatpush1.bf16.msra.mxu1 %v4781_v60  ;;  %v4910_v58 = vcombine.high %v326_v52, %v334_v53  ;;  %v341_v60 = vld [vmem:[#allocation5 + $0x610] sm:$0xff] }
 0x133   :  { %3420 = vmatprep.subr.bf16.mxu0 %v4796_v61  ;;  %3502 = vmatprep.subr.bf16.mxu1 %v4798_v62  ;;  %v349_v61 = vld [vmem:[#allocation5 + $0x650] sm:$0xff]  ;;  %v342_v62 = vld [vmem:[#allocation5 + $0x618] sm:$0xff] }
 0x134   :  { %v4924_v2 = vcombine.high %v341_v60, %v349_v61  ;;  %v4923_v9 = vcombine.low %v341_v60, %v349_v61  ;;  %v4925_v10 = vcombine.low %v342_v62, %v350_v63  ;;  %v462_v60 = vld [vmem:[#allocation5 + $0x9d8] sm:$0xff] }
 0x136   :  { %3421 = vmatpush1.bf16.msra.mxu0 %v4795_v4  ;;  %3503 = vmatpush1.bf16.msra.mxu1 %v4797_v5  ;;  %v4926_v4 = vcombine.high %v342_v62, %v350_v63  ;;  %v357_v5 = vld [vmem:[#allocation5 + $0x690] sm:$0xff] }
 0x137   :  { %3422 = vmatprep.subr.bf16.mxu0 %v4812_v6  ;;  %3504 = vmatprep.subr.bf16.mxu1 %v4814_v7  ;;  %v365_v6 = vld [vmem:[#allocation5 + $0x6d0] sm:$0xff]  ;;  %v358_v7 = vld [vmem:[#allocation5 + $0x698] sm:$0xff] }
 0x138   :  { %v4940_v11 = vcombine.high %v357_v5, %v365_v6  ;;  %v4939_v17 = vcombine.low %v357_v5, %v365_v6  ;;  %v4941_v18 = vcombine.low %v358_v7, %v366_v8  ;;  %v478_v5 = vld [vmem:[#allocation5 + $0xa58] sm:$0xff] }
 0x13a   :  { %3423 = vmatpush1.bf16.msra.mxu0 %v4811_v12  ;;  %3505 = vmatpush1.bf16.msra.mxu1 %v4813_v13  ;;  %v4942_v12 = vcombine.high %v358_v7, %v366_v8  ;;  %v373_v13 = vld [vmem:[#allocation5 + $0x710] sm:$0xff] }
 0x13b   :  { %3424 = vmatprep.subr.bf16.mxu0 %v4828_v14  ;;  %3506 = vmatprep.subr.bf16.mxu1 %v4830_v15  ;;  %v381_v14 = vld [vmem:[#allocation5 + $0x750] sm:$0xff]  ;;  %v374_v15 = vld [vmem:[#allocation5 + $0x718] sm:$0xff] }
 0x13c   :  { %v4956_v19 = vcombine.high %v373_v13, %v381_v14  ;;  %v4955_v26 = vcombine.low %v373_v13, %v381_v14  ;;  %v4957_v27 = vcombine.low %v374_v15, %v382_v16  ;;  %v494_v13 = vld [vmem:[#allocation5 + $0xad8] sm:$0xff] }
 0x13e   :  { %3425 = vmatpush1.bf16.msra.mxu0 %v4827_v20  ;;  %3507 = vmatpush1.bf16.msra.mxu1 %v4829_v22  ;;  %v4958_v20 = vcombine.high %v374_v15, %v382_v16  ;;  %v389_v22 = vld [vmem:[#allocation5 + $0x790] sm:$0xff] }
 0x13f   :  { %3426 = vmatprep.subr.bf16.mxu0 %v4844_v23  ;;  %3508 = vmatprep.subr.bf16.mxu1 %v4846_v24  ;;  %v397_v23 = vld [vmem:[#allocation5 + $0x7d0] sm:$0xff]  ;;  %v390_v24 = vld [vmem:[#allocation5 + $0x798] sm:$0xff] }
 0x140   :  { %v4972_v28 = vcombine.high %v389_v22, %v397_v23  ;;  %v4971_v34 = vcombine.low %v389_v22, %v397_v23  ;;  %v4973_v35 = vcombine.low %v390_v24, %v398_v25  ;;  %v510_v22 = vld [vmem:[#allocation5 + $0xb58] sm:$0xff] }
 0x142   :  { %3427 = vmatpush1.bf16.msra.mxu0 %v4843_v29  ;;  %3509 = vmatpush1.bf16.msra.mxu1 %v4845_v31  ;;  %v4974_v29 = vcombine.high %v390_v24, %v398_v25  ;;  %v405_v31 = vld [vmem:[#allocation5 + $0x810] sm:$0xff] }
 0x143   :  { %3428 = vmatprep.subr.bf16.mxu0 %v4860_v56  ;;  %3510 = vmatprep.subr.bf16.mxu1 %v4862_v59  ;;  %v413_v56 = vld [vmem:[#allocation5 + $0x850] sm:$0xff]  ;;  %v406_v59 = vld [vmem:[#allocation5 + $0x818] sm:$0xff] }
 0x144   :  { %v4988_v36 = vcombine.high %v405_v31, %v413_v56  ;;  %v4987_v42 = vcombine.low %v405_v31, %v413_v56  ;;  %v4989_v43 = vcombine.low %v406_v59, %v414_v33  ;;  %v526_v31 = vld [vmem:[#allocation5 + $0xbd8] sm:$0xff] }
 0x146   :  { %3429 = vmatpush1.bf16.msra.mxu0 %v4859_v37  ;;  %3511 = vmatpush1.bf16.msra.mxu1 %v4861_v38  ;;  %v4990_v37 = vcombine.high %v406_v59, %v414_v33  ;;  %v421_v38 = vld [vmem:[#allocation5 + $0x890] sm:$0xff] }
 0x147   :  { %3430 = vmatprep.subr.bf16.mxu0 %v4876_v39  ;;  %3512 = vmatprep.subr.bf16.mxu1 %v4878_v40  ;;  %v429_v39 = vld [vmem:[#allocation5 + $0x8d0] sm:$0xff]  ;;  %v422_v40 = vld [vmem:[#allocation5 + $0x898] sm:$0xff] }
 0x148   :  { %v5004_v44 = vcombine.high %v421_v38, %v429_v39  ;;  %v5003_v51 = vcombine.low %v421_v38, %v429_v39  ;;  %v5005_v52 = vcombine.low %v422_v40, %v430_v41  ;;  %v542_v38 = vld [vmem:[#allocation5 + $0xc58] sm:$0xff] }
 0x14a   :  { %3431 = vmatpush1.bf16.msra.mxu0 %v4875_v45  ;;  %3513 = vmatpush1.bf16.msra.mxu1 %v4877_v46  ;;  %v5006_v45 = vcombine.high %v422_v40, %v430_v41  ;;  %v437_v46 = vld [vmem:[#allocation5 + $0x910] sm:$0xff] }
 0x14b   :  { %3432 = vmatprep.subr.bf16.mxu0 %v4892_v48  ;;  %3514 = vmatprep.subr.bf16.mxu1 %v4894_v49  ;;  %v445_v48 = vld [vmem:[#allocation5 + $0x950] sm:$0xff]  ;;  %v438_v49 = vld [vmem:[#allocation5 + $0x918] sm:$0xff] }
 0x14c   :  { %v5020_v53 = vcombine.high %v437_v46, %v445_v48  ;;  %v5019_v61 = vcombine.low %v437_v46, %v445_v48  ;;  %v5021_v62 = vcombine.low %v438_v49, %v446_v50  ;;  %v558_v46 = vld [vmem:[#allocation5 + $0xcd8] sm:$0xff] }
 0x14e   :  { %3433 = vmatpush1.bf16.msra.mxu0 %v4891_v54  ;;  %3515 = vmatpush1.bf16.msra.mxu1 %v4893_v55  ;;  %v5022_v54 = vcombine.high %v438_v49, %v446_v50  ;;  %v453_v55 = vld [vmem:[#allocation5 + $0x990] sm:$0xff] }
 0x14f   :  { %3434 = vmatprep.subr.bf16.mxu0 %v4908_v57  ;;  %3516 = vmatprep.subr.bf16.mxu1 %v4910_v58  ;;  %v461_v57 = vld [vmem:[#allocation5 + $0x9d0] sm:$0xff]  ;;  %v454_v58 = vld [vmem:[#allocation5 + $0x998] sm:$0xff] }
 0x150   :  { %v5036_v63 = vcombine.high %v453_v55, %v461_v57  ;;  %v5035_v6 = vcombine.low %v453_v55, %v461_v57  ;;  %v5037_v7 = vcombine.low %v454_v58, %v462_v60  ;;  %v574_v55 = vld [vmem:[#allocation5 + $0xd58] sm:$0xff] }
 0x152   :  { %3435 = vmatpush1.bf16.msra.mxu0 %v4907_v0  ;;  %3517 = vmatpush1.bf16.msra.mxu1 %v4909_v1  ;;  %v5038_v0 = vcombine.high %v454_v58, %v462_v60  ;;  %v469_v1 = vld [vmem:[#allocation5 + $0xa10] sm:$0xff] }
 0x153   :  { %3436 = vmatprep.subr.bf16.mxu0 %v4924_v2  ;;  %3518 = vmatprep.subr.bf16.mxu1 %v4926_v4  ;;  %v477_v2 = vld [vmem:[#allocation5 + $0xa50] sm:$0xff]  ;;  %v470_v4 = vld [vmem:[#allocation5 + $0xa18] sm:$0xff] }
 0x154   :  { %v5052_v8 = vcombine.high %v469_v1, %v477_v2  ;;  %v5051_v14 = vcombine.low %v469_v1, %v477_v2  ;;  %v5053_v15 = vcombine.low %v470_v4, %v478_v5  ;;  %v590_v1 = vld [vmem:[#allocation5 + $0xdd8] sm:$0xff] }
 0x156   :  { %3437 = vmatpush1.bf16.msra.mxu0 %v4923_v9  ;;  %3519 = vmatpush1.bf16.msra.mxu1 %v4925_v10  ;;  %v5054_v9 = vcombine.high %v470_v4, %v478_v5  ;;  %v485_v10 = vld [vmem:[#allocation5 + $0xa90] sm:$0xff] }
 0x157   :  { %3438 = vmatprep.subr.bf16.mxu0 %v4940_v11  ;;  %3520 = vmatprep.subr.bf16.mxu1 %v4942_v12  ;;  %v493_v11 = vld [vmem:[#allocation5 + $0xad0] sm:$0xff]  ;;  %v486_v12 = vld [vmem:[#allocation5 + $0xa98] sm:$0xff] }
 0x158   :  { %v5068_v16 = vcombine.high %v485_v10, %v493_v11  ;;  %v5067_v23 = vcombine.low %v485_v10, %v493_v11  ;;  %v5069_v24 = vcombine.low %v486_v12, %v494_v13  ;;  %v606_v10 = vld [vmem:[#allocation5 + $0xe58] sm:$0xff] }
 0x15a   :  { %3439 = vmatpush1.bf16.msra.mxu0 %v4939_v17  ;;  %3521 = vmatpush1.bf16.msra.mxu1 %v4941_v18  ;;  %v5070_v17 = vcombine.high %v486_v12, %v494_v13  ;;  %v501_v18 = vld [vmem:[#allocation5 + $0xb10] sm:$0xff] }
 0x15b   :  { %3440 = vmatprep.subr.bf16.mxu0 %v4956_v19  ;;  %3522 = vmatprep.subr.bf16.mxu1 %v4958_v20  ;;  %v509_v19 = vld [vmem:[#allocation5 + $0xb50] sm:$0xff]  ;;  %v502_v20 = vld [vmem:[#allocation5 + $0xb18] sm:$0xff] }
 0x15c   :  { %v5084_v25 = vcombine.high %v501_v18, %v509_v19  ;;  %v5083_v56 = vcombine.low %v501_v18, %v509_v19  ;;  %v5085_v59 = vcombine.low %v502_v20, %v510_v22  ;;  %v622_v18 = vld [vmem:[#allocation5 + $0xed8] sm:$0xff] }
 0x15e   :  { %3441 = vmatpush1.bf16.msra.mxu0 %v4955_v26  ;;  %3523 = vmatpush1.bf16.msra.mxu1 %v4957_v27  ;;  %v5086_v26 = vcombine.high %v502_v20, %v510_v22  ;;  %v517_v27 = vld [vmem:[#allocation5 + $0xb90] sm:$0xff] }
 0x15f   :  { %3442 = vmatprep.subr.bf16.mxu0 %v4972_v28  ;;  %3524 = vmatprep.subr.bf16.mxu1 %v4974_v29  ;;  %v525_v28 = vld [vmem:[#allocation5 + $0xbd0] sm:$0xff]  ;;  %v518_v29 = vld [vmem:[#allocation5 + $0xb98] sm:$0xff] }
 0x160   :  { %v5100_v33 = vcombine.high %v517_v27, %v525_v28  ;;  %v5099_v39 = vcombine.low %v517_v27, %v525_v28  ;;  %v5101_v40 = vcombine.low %v518_v29, %v526_v31  ;;  %v638_v27 = vld [vmem:[#allocation5 + $0xf58] sm:$0xff] }
 0x162   :  { %3443 = vmatpush1.bf16.msra.mxu0 %v4971_v34  ;;  %3525 = vmatpush1.bf16.msra.mxu1 %v4973_v35  ;;  %v5102_v34 = vcombine.high %v518_v29, %v526_v31  ;;  %v533_v35 = vld [vmem:[#allocation5 + $0xc10] sm:$0xff] }
 0x163   :  { %3453 = vmatprep.subr.bf16.mxu0 %v4988_v36  ;;  %3535 = vmatprep.subr.bf16.mxu1 %v4990_v37  ;;  %v541_v36 = vld [vmem:[#allocation5 + $0xc50] sm:$0xff]  ;;  %v534_v37 = vld [vmem:[#allocation5 + $0xc18] sm:$0xff] }
 0x164   :  { %v5116_v41 = vcombine.high %v533_v35, %v541_v36  ;;  %v5115_v48 = vcombine.low %v533_v35, %v541_v36  ;;  %v5117_v49 = vcombine.low %v534_v37, %v542_v38  ;;  %v654_v35 = vld [vmem:[#allocation5 + $0xfd8] sm:$0xff] }
 0x165   :  { %3445 = vmatmul.mubr.bf16.vlgmr.msra.gmra.mrb[4].mxu0 %v5941_v21  ;;  %3527 = vmatmul.mubr.bf16.vlgmr.msra.gmra.mrb[4].mxu1 %v5941_v21 }
 0x166   :  { %3454 = vmatpush1.bf16.msra.mxu0 %v4987_v42  ;;  %3536 = vmatpush1.bf16.msra.mxu1 %v4989_v43  ;;  %v5118_v42 = vcombine.high %v534_v37, %v542_v38  ;;  %v549_v43 = vld [vmem:[#allocation5 + $0xc90] sm:$0xff] }
 0x167   :  { %3455 = vmatprep.subr.bf16.mxu0 %v5004_v44  ;;  %3537 = vmatprep.subr.bf16.mxu1 %v5006_v45  ;;  %v557_v44 = vld [vmem:[#allocation5 + $0xcd0] sm:$0xff]  ;;  %v550_v45 = vld [vmem:[#allocation5 + $0xc98] sm:$0xff] }
 0x168   :  { %3485 = vmatprep.mubr.bf16.mxu0 %v5945_v32  ;;  %3567 = vmatprep.mubr.bf16.mxu1 %v5945_v32  ;;  %v5132_v50 = vcombine.high %v549_v43, %v557_v44  ;;  %v5131_v57 = vcombine.low %v549_v43, %v557_v44  ;;  %v5133_v58 = vcombine.low %v550_v45, %v558_v46  ;;  %v160_v43 = vld [vmem:[#allocation5 + $0x68] sm:$0xff] }
 0x16a   :  { %3456 = vmatpush1.bf16.msra.mxu0 %v5003_v51  ;;  %3538 = vmatpush1.bf16.msra.mxu1 %v5005_v52  ;;  %v5134_v51 = vcombine.high %v550_v45, %v558_v46  ;;  %v565_v52 = vld [vmem:[#allocation5 + $0xd10] sm:$0xff] }
 0x16b   :  { %3457 = vmatprep.subr.bf16.mxu0 %v5020_v53  ;;  %3539 = vmatprep.subr.bf16.mxu1 %v5022_v54  ;;  %v573_v53 = vld [vmem:[#allocation5 + $0xd50] sm:$0xff]  ;;  %v566_v54 = vld [vmem:[#allocation5 + $0xd18] sm:$0xff] }
 0x16c   :  { %v5148_v60 = vcombine.high %v565_v52, %v573_v53  ;;  %v5147_v2 = vcombine.low %v565_v52, %v573_v53  ;;  %v5149_v4 = vcombine.low %v566_v54, %v574_v55  ;;  %v176_v52 = vld [vmem:[#allocation5 + $0xe8] sm:$0xff] }
 0x16e   :  { %3458 = vmatpush1.bf16.msra.mxu0 %v5019_v61  ;;  %3540 = vmatpush1.bf16.msra.mxu1 %v5021_v62  ;;  %v5150_v61 = vcombine.high %v566_v54, %v574_v55  ;;  %v581_v62 = vld [vmem:[#allocation5 + $0xd90] sm:$0xff] }
 0x16f   :  { %3459 = vmatprep.subr.bf16.mxu0 %v5036_v63  ;;  %3541 = vmatprep.subr.bf16.mxu1 %v5038_v0  ;;  %v589_v63 = vld [vmem:[#allocation5 + $0xdd0] sm:$0xff]  ;;  %v582_v0 = vld [vmem:[#allocation5 + $0xd98] sm:$0xff] }
 0x170   :  { %v5164_v5 = vcombine.high %v581_v62, %v589_v63  ;;  %v5163_v11 = vcombine.low %v581_v62, %v589_v63  ;;  %v5165_v12 = vcombine.low %v582_v0, %v590_v1  ;;  %v192_v62 = vld [vmem:[#allocation5 + $0x168] sm:$0xff] }
 0x172   :  { %3460 = vmatpush1.bf16.msra.mxu0 %v5035_v6  ;;  %3542 = vmatpush1.bf16.msra.mxu1 %v5037_v7  ;;  %v5166_v6 = vcombine.high %v582_v0, %v590_v1  ;;  %v597_v7 = vld [vmem:[#allocation5 + $0xe10] sm:$0xff] }
 0x173   :  { %3461 = vmatprep.subr.bf16.mxu0 %v5052_v8  ;;  %3543 = vmatprep.subr.bf16.mxu1 %v5054_v9  ;;  %v605_v8 = vld [vmem:[#allocation5 + $0xe50] sm:$0xff]  ;;  %v598_v9 = vld [vmem:[#allocation5 + $0xe18] sm:$0xff] }
 0x174   :  { %v5180_v13 = vcombine.high %v597_v7, %v605_v8  ;;  %v5179_v19 = vcombine.low %v597_v7, %v605_v8  ;;  %v5181_v20 = vcombine.low %v598_v9, %v606_v10  ;;  %v208_v7 = vld [vmem:[#allocation5 + $0x1e8] sm:$0xff] }
 0x176   :  { %3462 = vmatpush1.bf16.msra.mxu0 %v5051_v14  ;;  %3544 = vmatpush1.bf16.msra.mxu1 %v5053_v15  ;;  %v5182_v14 = vcombine.high %v598_v9, %v606_v10  ;;  %v613_v15 = vld [vmem:[#allocation5 + $0xe90] sm:$0xff] }
 0x177   :  { %3463 = vmatprep.subr.bf16.mxu0 %v5068_v16  ;;  %3545 = vmatprep.subr.bf16.mxu1 %v5070_v17  ;;  %v621_v16 = vld [vmem:[#allocation5 + $0xed0] sm:$0xff]  ;;  %v614_v17 = vld [vmem:[#allocation5 + $0xe98] sm:$0xff] }
 0x178   :  { %v5196_v22 = vcombine.high %v613_v15, %v621_v16  ;;  %v5195_v28 = vcombine.low %v613_v15, %v621_v16  ;;  %v5197_v29 = vcombine.low %v614_v17, %v622_v18  ;;  %v224_v15 = vld [vmem:[#allocation5 + $0x268] sm:$0xff] }
 0x17a   :  { %3464 = vmatpush1.bf16.msra.mxu0 %v5067_v23  ;;  %3546 = vmatpush1.bf16.msra.mxu1 %v5069_v24  ;;  %v5198_v23 = vcombine.high %v614_v17, %v622_v18  ;;  %v629_v24 = vld [vmem:[#allocation5 + $0xf10] sm:$0xff] }
 0x17b   :  { %3465 = vmatprep.subr.bf16.mxu0 %v5084_v25  ;;  %3547 = vmatprep.subr.bf16.mxu1 %v5086_v26  ;;  %v637_v25 = vld [vmem:[#allocation5 + $0xf50] sm:$0xff]  ;;  %v630_v26 = vld [vmem:[#allocation5 + $0xf18] sm:$0xff] }
 0x17c   :  { %v5212_v31 = vcombine.high %v629_v24, %v637_v25  ;;  %v5211_v36 = vcombine.low %v629_v24, %v637_v25  ;;  %v5213_v37 = vcombine.low %v630_v26, %v638_v27  ;;  %v240_v24 = vld [vmem:[#allocation5 + $0x2e8] sm:$0xff] }
 0x17e   :  { %3466 = vmatpush1.bf16.msra.mxu0 %v5083_v56  ;;  %3548 = vmatpush1.bf16.msra.mxu1 %v5085_v59  ;;  %v5214_v56 = vcombine.high %v630_v26, %v638_v27  ;;  %v645_v59 = vld [vmem:[#allocation5 + $0xf90] sm:$0xff] }
 0x17f   :  { %3467 = vmatprep.subr.bf16.mxu0 %v5100_v33  ;;  %3549 = vmatprep.subr.bf16.mxu1 %v5102_v34  ;;  %v653_v33 = vld [vmem:[#allocation5 + $0xfd0] sm:$0xff]  ;;  %v646_v34 = vld [vmem:[#allocation5 + $0xf98] sm:$0xff] }
 0x180   :  { %v5228_v38 = vcombine.high %v645_v59, %v653_v33  ;;  %v5227_v44 = vcombine.low %v645_v59, %v653_v33  ;;  %v5229_v45 = vcombine.low %v646_v34, %v654_v35  ;;  %v256_v59 = vld [vmem:[#allocation5 + $0x368] sm:$0xff] }
 0x182   :  { %3468 = vmatpush1.bf16.msra.mxu0 %v5099_v39  ;;  %3550 = vmatpush1.bf16.msra.mxu1 %v5101_v40  ;;  %v5230_v39 = vcombine.high %v646_v34, %v654_v35  ;;  %v151_v40 = vld [vmem:[#allocation5 + $0x20] sm:$0xff] }
 0x183   :  { %3469 = vmatprep.subr.bf16.mxu0 %v5116_v41  ;;  %3551 = vmatprep.subr.bf16.mxu1 %v5118_v42  ;;  %v159_v41 = vld [vmem:[#allocation5 + $0x60] sm:$0xff]  ;;  %v152_v42 = vld [vmem:[#allocation5 + $0x28] sm:$0xff] }
 0x184   :  { %v4736_v46 = vcombine.high %v151_v40, %v159_v41  ;;  %v4735_v53 = vcombine.low %v151_v40, %v159_v41  ;;  %v4737_v54 = vcombine.low %v152_v42, %v160_v43  ;;  %v272_v40 = vld [vmem:[#allocation5 + $0x3e8] sm:$0xff] }
 0x186   :  { %3470 = vmatpush1.bf16.msra.mxu0 %v5115_v48  ;;  %3552 = vmatpush1.bf16.msra.mxu1 %v5117_v49  ;;  %v4738_v48 = vcombine.high %v152_v42, %v160_v43  ;;  %v167_v49 = vld [vmem:[#allocation5 + $0xa0] sm:$0xff] }
 0x187   :  { %3471 = vmatprep.subr.bf16.mxu0 %v5132_v50  ;;  %3553 = vmatprep.subr.bf16.mxu1 %v5134_v51  ;;  %v175_v50 = vld [vmem:[#allocation5 + $0xe0] sm:$0xff]  ;;  %v168_v51 = vld [vmem:[#allocation5 + $0xa8] sm:$0xff] }
 0x188   :  { %v4752_v55 = vcombine.high %v167_v49, %v175_v50  ;;  %v4751_v63 = vcombine.low %v167_v49, %v175_v50  ;;  %v4753_v0 = vcombine.low %v168_v51, %v176_v52  ;;  %v288_v49 = vld [vmem:[#allocation5 + $0x468] sm:$0xff] }
 0x18a   :  { %3472 = vmatpush1.bf16.msra.mxu0 %v5131_v57  ;;  %3554 = vmatpush1.bf16.msra.mxu1 %v5133_v58  ;;  %v4754_v57 = vcombine.high %v168_v51, %v176_v52  ;;  %v183_v58 = vld [vmem:[#allocation5 + $0x120] sm:$0xff] }
 0x18b   :  { %3473 = vmatprep.subr.bf16.mxu0 %v5148_v60  ;;  %3555 = vmatprep.subr.bf16.mxu1 %v5150_v61  ;;  %v191_v60 = vld [vmem:[#allocation5 + $0x160] sm:$0xff]  ;;  %v184_v61 = vld [vmem:[#allocation5 + $0x128] sm:$0xff] }
 0x18c   :  { %v4768_v1 = vcombine.high %v183_v58, %v191_v60  ;;  %v4767_v8 = vcombine.low %v183_v58, %v191_v60  ;;  %v4769_v9 = vcombine.low %v184_v61, %v192_v62  ;;  %v304_v58 = vld [vmem:[#allocation5 + $0x4e8] sm:$0xff] }
 0x18e   :  { %3474 = vmatpush1.bf16.msra.mxu0 %v5147_v2  ;;  %3556 = vmatpush1.bf16.msra.mxu1 %v5149_v4  ;;  %v4770_v2 = vcombine.high %v184_v61, %v192_v62  ;;  %v199_v4 = vld [vmem:[#allocation5 + $0x1a0] sm:$0xff] }
 0x18f   :  { %3475 = vmatprep.subr.bf16.mxu0 %v5164_v5  ;;  %3557 = vmatprep.subr.bf16.mxu1 %v5166_v6  ;;  %v207_v5 = vld [vmem:[#allocation5 + $0x1e0] sm:$0xff]  ;;  %v200_v6 = vld [vmem:[#allocation5 + $0x1a8] sm:$0xff] }
 0x190   :  { %v4784_v10 = vcombine.high %v199_v4, %v207_v5  ;;  %v4783_v16 = vcombine.low %v199_v4, %v207_v5  ;;  %v4785_v17 = vcombine.low %v200_v6, %v208_v7  ;;  %v320_v4 = vld [vmem:[#allocation5 + $0x568] sm:$0xff] }
 0x192   :  { %3476 = vmatpush1.bf16.msra.mxu0 %v5163_v11  ;;  %3558 = vmatpush1.bf16.msra.mxu1 %v5165_v12  ;;  %v4786_v11 = vcombine.high %v200_v6, %v208_v7  ;;  %v215_v12 = vld [vmem:[#allocation5 + $0x220] sm:$0xff] }
 0x193   :  { %3477 = vmatprep.subr.bf16.mxu0 %v5180_v13  ;;  %3559 = vmatprep.subr.bf16.mxu1 %v5182_v14  ;;  %v223_v13 = vld [vmem:[#allocation5 + $0x260] sm:$0xff]  ;;  %v216_v14 = vld [vmem:[#allocation5 + $0x228] sm:$0xff] }
 0x194   :  { %v4800_v18 = vcombine.high %v215_v12, %v223_v13  ;;  %v4799_v25 = vcombine.low %v215_v12, %v223_v13  ;;  %v4801_v26 = vcombine.low %v216_v14, %v224_v15  ;;  %v336_v12 = vld [vmem:[#allocation5 + $0x5e8] sm:$0xff] }
 0x196   :  { %3478 = vmatpush1.bf16.msra.mxu0 %v5179_v19  ;;  %3560 = vmatpush1.bf16.msra.mxu1 %v5181_v20  ;;  %v4802_v19 = vcombine.high %v216_v14, %v224_v15  ;;  %v231_v20 = vld [vmem:[#allocation5 + $0x2a0] sm:$0xff] }
 0x197   :  { %3479 = vmatprep.subr.bf16.mxu0 %v5196_v22  ;;  %3561 = vmatprep.subr.bf16.mxu1 %v5198_v23  ;;  %v239_v22 = vld [vmem:[#allocation5 + $0x2e0] sm:$0xff]  ;;  %v232_v23 = vld [vmem:[#allocation5 + $0x2a8] sm:$0xff] }
 0x198   :  { %v4816_v27 = vcombine.high %v231_v20, %v239_v22  ;;  %v4815_v33 = vcombine.low %v231_v20, %v239_v22  ;;  %v4817_v34 = vcombine.low %v232_v23, %v240_v24  ;;  %v352_v20 = vld [vmem:[#allocation5 + $0x668] sm:$0xff] }
 0x19a   :  { %3480 = vmatpush1.bf16.msra.mxu0 %v5195_v28  ;;  %3562 = vmatpush1.bf16.msra.mxu1 %v5197_v29  ;;  %v4818_v28 = vcombine.high %v232_v23, %v240_v24  ;;  %v247_v29 = vld [vmem:[#allocation5 + $0x320] sm:$0xff] }
 0x19b   :  { %3481 = vmatprep.subr.bf16.mxu0 %v5212_v31  ;;  %3563 = vmatprep.subr.bf16.mxu1 %v5214_v56  ;;  %v255_v31 = vld [vmem:[#allocation5 + $0x360] sm:$0xff]  ;;  %v248_v56 = vld [vmem:[#allocation5 + $0x328] sm:$0xff] }
 0x19c   :  { %v4832_v35 = vcombine.high %v247_v29, %v255_v31  ;;  %v4831_v41 = vcombine.low %v247_v29, %v255_v31  ;;  %v4833_v42 = vcombine.low %v248_v56, %v256_v59  ;;  %v368_v29 = vld [vmem:[#allocation5 + $0x6e8] sm:$0xff] }
 0x19e   :  { %3482 = vmatpush1.bf16.msra.mxu0 %v5211_v36  ;;  %3564 = vmatpush1.bf16.msra.mxu1 %v5213_v37  ;;  %v4834_v36 = vcombine.high %v248_v56, %v256_v59  ;;  %v263_v37 = vld [vmem:[#allocation5 + $0x3a0] sm:$0xff] }
 0x19f   :  { %3483 = vmatprep.subr.bf16.mxu0 %v5228_v38  ;;  %3565 = vmatprep.subr.bf16.mxu1 %v5230_v39  ;;  %v271_v38 = vld [vmem:[#allocation5 + $0x3e0] sm:$0xff]  ;;  %v264_v39 = vld [vmem:[#allocation5 + $0x3a8] sm:$0xff] }
 0x1a0   :  { %v4848_v43 = vcombine.high %v263_v37, %v271_v38  ;;  %v4847_v50 = vcombine.low %v263_v37, %v271_v38  ;;  %v4849_v51 = vcombine.low %v264_v39, %v272_v40  ;;  %v384_v37 = vld [vmem:[#allocation5 + $0x768] sm:$0xff] }
 0x1a2   :  { %3484 = vmatpush1.bf16.msra.mxu0 %v5227_v44  ;;  %3566 = vmatpush1.bf16.msra.mxu1 %v5229_v45  ;;  %v4850_v44 = vcombine.high %v264_v39, %v272_v40  ;;  %v279_v45 = vld [vmem:[#allocation5 + $0x420] sm:$0xff] }
 0x1a3   :  { %3576 = vmatprep.subr.bf16.mxu0 %v4736_v46  ;;  %3658 = vmatprep.subr.bf16.mxu1 %v4738_v48  ;;  %v287_v46 = vld [vmem:[#allocation5 + $0x460] sm:$0xff]  ;;  %v280_v48 = vld [vmem:[#allocation5 + $0x428] sm:$0xff] }
 0x1a4   :  { %v4864_v52 = vcombine.high %v279_v45, %v287_v46  ;;  %v4863_v60 = vcombine.low %v279_v45, %v287_v46  ;;  %v4865_v61 = vcombine.low %v280_v48, %v288_v49  ;;  %v400_v45 = vld [vmem:[#allocation5 + $0x7e8] sm:$0xff] }
 0x1a5   :  { %3486 = vmatmul.mubr.bf16.vlgmr.msra.gmra.mrb[4].mxu0 %v5953_v30  ;;  %3568 = vmatmul.mubr.bf16.vlgmr.msra.gmra.mrb[4].mxu1 %v5953_v30 }
 0x1a6   :  { %3577 = vmatpush1.bf16.msra.mxu0 %v4735_v53  ;;  %3659 = vmatpush1.bf16.msra.mxu1 %v4737_v54  ;;  %v4866_v53 = vcombine.high %v280_v48, %v288_v49  ;;  %v295_v54 = vld [vmem:[#allocation5 + $0x4a0] sm:$0xff] }
 0x1a7   :  { %3578 = vmatprep.subr.bf16.mxu0 %v4752_v55  ;;  %3660 = vmatprep.subr.bf16.mxu1 %v4754_v57  ;;  %v303_v55 = vld [vmem:[#allocation5 + $0x4e0] sm:$0xff]  ;;  %v296_v57 = vld [vmem:[#allocation5 + $0x4a8] sm:$0xff] }
 0x1a8   :  { %3608 = vmatprep.mubr.bf16.mxu0 %v5935_v3  ;;  %3690 = vmatprep.mubr.bf16.mxu1 %v5935_v3  ;;  %v4880_v62 = vcombine.high %v295_v54, %v303_v55  ;;  %v4879_v5 = vcombine.low %v295_v54, %v303_v55  ;;  %v4881_v6 = vcombine.low %v296_v57, %v304_v58  ;;  %v416_v54 = vld [vmem:[#allocation5 + $0x868] sm:$0xff] }
 0x1aa   :  { %3579 = vmatpush1.bf16.msra.mxu0 %v4751_v63  ;;  %3661 = vmatpush1.bf16.msra.mxu1 %v4753_v0  ;;  %v4882_v63 = vcombine.high %v296_v57, %v304_v58  ;;  %v311_v0 = vld [vmem:[#allocation5 + $0x520] sm:$0xff] }
 0x1ab   :  { %3580 = vmatprep.subr.bf16.mxu0 %v4768_v1  ;;  %3662 = vmatprep.subr.bf16.mxu1 %v4770_v2  ;;  %v319_v1 = vld [vmem:[#allocation5 + $0x560] sm:$0xff]  ;;  %v312_v2 = vld [vmem:[#allocation5 + $0x528] sm:$0xff] }
 0x1ac   :  { %v4896_v7 = vcombine.high %v311_v0, %v319_v1  ;;  %v4895_v13 = vcombine.low %v311_v0, %v319_v1  ;;  %v4897_v14 = vcombine.low %v312_v2, %v320_v4  ;;  %v432_v0 = vld [vmem:[#allocation5 + $0x8e8] sm:$0xff] }
 0x1ae   :  { %3581 = vmatpush1.bf16.msra.mxu0 %v4767_v8  ;;  %3663 = vmatpush1.bf16.msra.mxu1 %v4769_v9  ;;  %v4898_v8 = vcombine.high %v312_v2, %v320_v4  ;;  %v327_v9 = vld [vmem:[#allocation5 + $0x5a0] sm:$0xff] }
 0x1af   :  { %3582 = vmatprep.subr.bf16.mxu0 %v4784_v10  ;;  %3664 = vmatprep.subr.bf16.mxu1 %v4786_v11  ;;  %v335_v10 = vld [vmem:[#allocation5 + $0x5e0] sm:$0xff]  ;;  %v328_v11 = vld [vmem:[#allocation5 + $0x5a8] sm:$0xff] }
 0x1b0   :  { %v4912_v15 = vcombine.high %v327_v9, %v335_v10  ;;  %v4911_v22 = vcombine.low %v327_v9, %v335_v10  ;;  %v4913_v23 = vcombine.low %v328_v11, %v336_v12  ;;  %v448_v9 = vld [vmem:[#allocation5 + $0x968] sm:$0xff] }
 0x1b2   :  { %3583 = vmatpush1.bf16.msra.mxu0 %v4783_v16  ;;  %3665 = vmatpush1.bf16.msra.mxu1 %v4785_v17  ;;  %v4914_v16 = vcombine.high %v328_v11, %v336_v12  ;;  %v343_v17 = vld [vmem:[#allocation5 + $0x620] sm:$0xff] }
 0x1b3   :  { %3584 = vmatprep.subr.bf16.mxu0 %v4800_v18  ;;  %3666 = vmatprep.subr.bf16.mxu1 %v4802_v19  ;;  %v351_v18 = vld [vmem:[#allocation5 + $0x660] sm:$0xff]  ;;  %v344_v19 = vld [vmem:[#allocation5 + $0x628] sm:$0xff] }
 0x1b4   :  { %v4928_v24 = vcombine.high %v343_v17, %v351_v18  ;;  %v4927_v31 = vcombine.low %v343_v17, %v351_v18  ;;  %v4929_v56 = vcombine.low %v344_v19, %v352_v20  ;;  %v464_v17 = vld [vmem:[#allocation5 + $0x9e8] sm:$0xff] }
 0x1b6   :  { %3585 = vmatpush1.bf16.msra.mxu0 %v4799_v25  ;;  %3667 = vmatpush1.bf16.msra.mxu1 %v4801_v26  ;;  %v4930_v25 = vcombine.high %v344_v19, %v352_v20  ;;  %v359_v26 = vld [vmem:[#allocation5 + $0x6a0] sm:$0xff] }
 0x1b7   :  { %3586 = vmatprep.subr.bf16.mxu0 %v4816_v27  ;;  %3668 = vmatprep.subr.bf16.mxu1 %v4818_v28  ;;  %v367_v27 = vld [vmem:[#allocation5 + $0x6e0] sm:$0xff]  ;;  %v360_v28 = vld [vmem:[#allocation5 + $0x6a8] sm:$0xff] }
 0x1b8   :  { %v4944_v59 = vcombine.high %v359_v26, %v367_v27  ;;  %v4943_v38 = vcombine.low %v359_v26, %v367_v27  ;;  %v4945_v39 = vcombine.low %v360_v28, %v368_v29  ;;  %v480_v26 = vld [vmem:[#allocation5 + $0xa68] sm:$0xff] }
 0x1ba   :  { %3587 = vmatpush1.bf16.msra.mxu0 %v4815_v33  ;;  %3669 = vmatpush1.bf16.msra.mxu1 %v4817_v34  ;;  %v4946_v33 = vcombine.high %v360_v28, %v368_v29  ;;  %v375_v34 = vld [vmem:[#allocation5 + $0x720] sm:$0xff] }
 0x1bb   :  { %3588 = vmatprep.subr.bf16.mxu0 %v4832_v35  ;;  %3670 = vmatprep.subr.bf16.mxu1 %v4834_v36  ;;  %v383_v35 = vld [vmem:[#allocation5 + $0x760] sm:$0xff]  ;;  %v376_v36 = vld [vmem:[#allocation5 + $0x728] sm:$0xff] }
 0x1bc   :  { %v4960_v40 = vcombine.high %v375_v34, %v383_v35  ;;  %v4959_v46 = vcombine.low %v375_v34, %v383_v35  ;;  %v4961_v48 = vcombine.low %v376_v36, %v384_v37  ;;  %v496_v34 = vld [vmem:[#allocation5 + $0xae8] sm:$0xff] }
 0x1be   :  { %3589 = vmatpush1.bf16.msra.mxu0 %v4831_v41  ;;  %3671 = vmatpush1.bf16.msra.mxu1 %v4833_v42  ;;  %v4962_v41 = vcombine.high %v376_v36, %v384_v37  ;;  %v391_v42 = vld [vmem:[#allocation5 + $0x7a0] sm:$0xff] }
 0x1bf   :  { %3590 = vmatprep.subr.bf16.mxu0 %v4848_v43  ;;  %3672 = vmatprep.subr.bf16.mxu1 %v4850_v44  ;;  %v399_v43 = vld [vmem:[#allocation5 + $0x7e0] sm:$0xff]  ;;  %v392_v44 = vld [vmem:[#allocation5 + $0x7a8] sm:$0xff] }
 0x1c0   :  { %v4976_v49 = vcombine.high %v391_v42, %v399_v43  ;;  %v4975_v55 = vcombine.low %v391_v42, %v399_v43  ;;  %v4977_v57 = vcombine.low %v392_v44, %v400_v45  ;;  %v512_v42 = vld [vmem:[#allocation5 + $0xb68] sm:$0xff] }
 0x1c2   :  { %3591 = vmatpush1.bf16.msra.mxu0 %v4847_v50  ;;  %3673 = vmatpush1.bf16.msra.mxu1 %v4849_v51  ;;  %v4978_v50 = vcombine.high %v392_v44, %v400_v45  ;;  %v407_v51 = vld [vmem:[#allocation5 + $0x820] sm:$0xff] }
 0x1c3   :  { %3592 = vmatprep.subr.bf16.mxu0 %v4864_v52  ;;  %3674 = vmatprep.subr.bf16.mxu1 %v4866_v53  ;;  %v415_v52 = vld [vmem:[#allocation5 + $0x860] sm:$0xff]  ;;  %v408_v53 = vld [vmem:[#allocation5 + $0x828] sm:$0xff] }
 0x1c4   :  { %v4992_v58 = vcombine.high %v407_v51, %v415_v52  ;;  %v4991_v1 = vcombine.low %v407_v51, %v415_v52  ;;  %v4993_v2 = vcombine.low %v408_v53, %v416_v54 }
 0x1c6   :  { %3593 = vmatpush1.bf16.msra.mxu0 %v4863_v60  ;;  %3675 = vmatpush1.bf16.msra.mxu1 %v4865_v61  ;;  %v4994_v60 = vcombine.high %v408_v53, %v416_v54  ;;  %v423_v61 = vld [vmem:[#allocation5 + $0x8a0] sm:$0xff]  ;;  %v520_v53 = vld [vmem:[#allocation5 + $0xba8] sm:$0xff] }
 0x1c7   :  { %3594 = vmatprep.subr.bf16.mxu0 %v4880_v62  ;;  %3676 = vmatprep.subr.bf16.mxu1 %v4882_v63  ;;  %v431_v62 = vld [vmem:[#allocation5 + $0x8e0] sm:$0xff]  ;;  %v424_v63 = vld [vmem:[#allocation5 + $0x8a8] sm:$0xff] }
 0x1c8   :  { %v5008_v4 = vcombine.high %v423_v61, %v431_v62  ;;  %v5007_v10 = vcombine.low %v423_v61, %v431_v62  ;;  %v5009_v11 = vcombine.low %v424_v63, %v432_v0  ;;  %v528_v54 = vld [vmem:[#allocation5 + $0xbe8] sm:$0xff] }
 0x1ca   :  { %3595 = vmatpush1.bf16.msra.mxu0 %v4879_v5  ;;  %3677 = vmatpush1.bf16.msra.mxu1 %v4881_v6  ;;  %v5010_v5 = vcombine.high %v424_v63, %v432_v0  ;;  %v439_v6 = vld [vmem:[#allocation5 + $0x920] sm:$0xff] }
 0x1cb   :  { %3596 = vmatprep.subr.bf16.mxu0 %v4896_v7  ;;  %3678 = vmatprep.subr.bf16.mxu1 %v4898_v8  ;;  %v447_v7 = vld [vmem:[#allocation5 + $0x960] sm:$0xff]  ;;  %v440_v8 = vld [vmem:[#allocation5 + $0x928] sm:$0xff] }
 0x1cc   :  { %v5024_v12 = vcombine.high %v439_v6, %v447_v7  ;;  %v5023_v18 = vcombine.low %v439_v6, %v447_v7  ;;  %v5025_v19 = vcombine.low %v440_v8, %v448_v9  ;;  %v544_v6 = vld [vmem:[#allocation5 + $0xc68] sm:$0xff] }
 0x1ce   :  { %3597 = vmatpush1.bf16.msra.mxu0 %v4895_v13  ;;  %3679 = vmatpush1.bf16.msra.mxu1 %v4897_v14  ;;  %v5026_v13 = vcombine.high %v440_v8, %v448_v9  ;;  %v455_v14 = vld [vmem:[#allocation5 + $0x9a0] sm:$0xff]  ;;  %v5105_v8 = vcombine.low %v520_v53, %v528_v54 }
 0x1cf   :  { %3598 = vmatprep.subr.bf16.mxu0 %v4912_v15  ;;  %3680 = vmatprep.subr.bf16.mxu1 %v4914_v16  ;;  %v463_v15 = vld [vmem:[#allocation5 + $0x9e0] sm:$0xff]  ;;  %v456_v16 = vld [vmem:[#allocation5 + $0x9a8] sm:$0xff] }
 0x1d0   :  { %v5040_v20 = vcombine.high %v455_v14, %v463_v15  ;;  %v5039_v27 = vcombine.low %v455_v14, %v463_v15  ;;  %v5041_v28 = vcombine.low %v456_v16, %v464_v17  ;;  %v560_v14 = vld [vmem:[#allocation5 + $0xce8] sm:$0xff] }
 0x1d2   :  { %3599 = vmatpush1.bf16.msra.mxu0 %v4911_v22  ;;  %3681 = vmatpush1.bf16.msra.mxu1 %v4913_v23  ;;  %v5042_v22 = vcombine.high %v456_v16, %v464_v17  ;;  %v471_v23 = vld [vmem:[#allocation5 + $0xa20] sm:$0xff] }
 0x1d3   :  { %3600 = vmatprep.subr.bf16.mxu0 %v4928_v24  ;;  %3682 = vmatprep.subr.bf16.mxu1 %v4930_v25  ;;  %v479_v24 = vld [vmem:[#allocation5 + $0xa60] sm:$0xff]  ;;  %v472_v25 = vld [vmem:[#allocation5 + $0xa28] sm:$0xff] }
 0x1d4   :  { %v5056_v29 = vcombine.high %v471_v23, %v479_v24  ;;  %v5055_v35 = vcombine.low %v471_v23, %v479_v24  ;;  %v5057_v36 = vcombine.low %v472_v25, %v480_v26  ;;  %v576_v23 = vld [vmem:[#allocation5 + $0xd68] sm:$0xff] }
 0x1d6   :  { %3601 = vmatpush1.bf16.msra.mxu0 %v4927_v31  ;;  %3683 = vmatpush1.bf16.msra.mxu1 %v4929_v56  ;;  %v5058_v31 = vcombine.high %v472_v25, %v480_v26  ;;  %v487_v56 = vld [vmem:[#allocation5 + $0xaa0] sm:$0xff] }
 0x1d7   :  { %3602 = vmatprep.subr.bf16.mxu0 %v4944_v59  ;;  %3684 = vmatprep.subr.bf16.mxu1 %v4946_v33  ;;  %v495_v59 = vld [vmem:[#allocation5 + $0xae0] sm:$0xff]  ;;  %v488_v33 = vld [vmem:[#allocation5 + $0xaa8] sm:$0xff] }
 0x1d8   :  { %v5072_v37 = vcombine.high %v487_v56, %v495_v59  ;;  %v5071_v43 = vcombine.low %v487_v56, %v495_v59  ;;  %v5073_v44 = vcombine.low %v488_v33, %v496_v34  ;;  %v592_v56 = vld [vmem:[#allocation5 + $0xde8] sm:$0xff] }
 0x1da   :  { %3603 = vmatpush1.bf16.msra.mxu0 %v4943_v38  ;;  %3685 = vmatpush1.bf16.msra.mxu1 %v4945_v39  ;;  %v5074_v38 = vcombine.high %v488_v33, %v496_v34  ;;  %v503_v39 = vld [vmem:[#allocation5 + $0xb20] sm:$0xff] }
 0x1db   :  { %3604 = vmatprep.subr.bf16.mxu0 %v4960_v40  ;;  %3686 = vmatprep.subr.bf16.mxu1 %v4962_v41  ;;  %v511_v40 = vld [vmem:[#allocation5 + $0xb60] sm:$0xff]  ;;  %v504_v41 = vld [vmem:[#allocation5 + $0xb28] sm:$0xff] }
 0x1dc   :  { %v5088_v45 = vcombine.high %v503_v39, %v511_v40  ;;  %v5089_v62 = vcombine.low %v504_v41, %v512_v42 }
 0x1de   :  { %3605 = vmatpush1.bf16.msra.mxu0 %v4959_v46  ;;  %3687 = vmatpush1.bf16.msra.mxu1 %v4961_v48  ;;  %v5090_v48 = vcombine.high %v504_v41, %v512_v42 }
 0x1df   :  { %3606 = vmatprep.subr.bf16.mxu0 %v4976_v49  ;;  %3688 = vmatprep.subr.bf16.mxu1 %v4978_v50  ;;  %v519_v49 = vld [vmem:[#allocation5 + $0xba0] sm:$0xff] }
 0x1e0   :  { %v527_v50 = vld [vmem:[#allocation5 + $0xbe0] sm:$0xff] }
 0x1e1   :  { %v5104_v63 = vcombine.high %v519_v49, %v527_v50  ;;  %v5103_v7 = vcombine.low %v519_v49, %v527_v50  ;;  %v624_v49 = vld [vmem:[#allocation5 + $0xee8] sm:$0xff] }
 0x1e2   :  { %3607 = vmatpush1.bf16.msra.mxu0 %v4975_v55  ;;  %3689 = vmatpush1.bf16.msra.mxu1 %v4977_v57 }
 0x1e3   :  { %3617 = vmatprep.subr.bf16.mxu0 %v4992_v58  ;;  %3699 = vmatprep.subr.bf16.mxu1 %v4994_v60  ;;  %v5087_v58 = vcombine.low %v503_v39, %v511_v40  ;;  %v608_v39 = vld [vmem:[#allocation5 + $0xe68] sm:$0xff] }
 0x1e5   :  { %3609 = vmatmul.mubr.bf16.vlgmr.msra.gmra.mrb[8].mxu0 %v5941_v21  ;;  %3691 = vmatmul.mubr.bf16.vlgmr.msra.gmra.mrb[8].mxu1 %v5941_v21 }
 0x1e6   :  { %3618 = vmatpush1.bf16.msra.mxu0 %v4991_v1  ;;  %3700 = vmatpush1.bf16.msra.mxu1 %v4993_v2  ;;  %v5106_v1 = vcombine.high %v520_v53, %v528_v54  ;;  %v535_v2 = vld [vmem:[#allocation5 + $0xc20] sm:$0xff] }
 0x1e7   :  { %3619 = vmatprep.subr.bf16.mxu0 %v5008_v4  ;;  %3701 = vmatprep.subr.bf16.mxu1 %v5010_v5  ;;  %v543_v4 = vld [vmem:[#allocation5 + $0xc60] sm:$0xff]  ;;  %v536_v5 = vld [vmem:[#allocation5 + $0xc28] sm:$0xff] }
 0x1e8   :  { %3649 = vmatprep.mubr.bf16.mxu0 %v5945_v32  ;;  %3731 = vmatprep.mubr.bf16.mxu1 %v5945_v32  ;;  %v5120_v9 = vcombine.high %v535_v2, %v543_v4  ;;  %v5119_v15 = vcombine.low %v535_v2, %v543_v4  ;;  %v5121_v16 = vcombine.low %v536_v5, %v544_v6  ;;  %v647_v4 = vld [vmem:[#allocation5 + $0xfa0] sm:$0xff] }
 0x1ea   :  { %3620 = vmatpush1.bf16.msra.mxu0 %v5007_v10  ;;  %3702 = vmatpush1.bf16.msra.mxu1 %v5009_v11  ;;  %v5122_v10 = vcombine.high %v536_v5, %v544_v6  ;;  %v551_v11 = vld [vmem:[#allocation5 + $0xca0] sm:$0xff]  ;;  %v648_v6 = vld [vmem:[#allocation5 + $0xfa8] sm:$0xff] }
 0x1eb   :  { %3621 = vmatprep.subr.bf16.mxu0 %v5024_v12  ;;  %3703 = vmatprep.subr.bf16.mxu1 %v5026_v13  ;;  %v559_v12 = vld [vmem:[#allocation5 + $0xce0] sm:$0xff]  ;;  %v552_v13 = vld [vmem:[#allocation5 + $0xca8] sm:$0xff] }
 0x1ec   :  { %v5136_v17 = vcombine.high %v551_v11, %v559_v12  ;;  %v5135_v24 = vcombine.low %v551_v11, %v559_v12  ;;  %v5137_v25 = vcombine.low %v552_v13, %v560_v14  ;;  %v655_v5 = vld [vmem:[#allocation5 + $0xfe0] sm:$0xff]  ;;  %v153_v12 = vld [vmem:[#allocation5 + $0x30] sm:$0xff] }
 0x1ee   :  { %3622 = vmatpush1.bf16.msra.mxu0 %v5023_v18  ;;  %3704 = vmatpush1.bf16.msra.mxu1 %v5025_v19  ;;  %v5138_v18 = vcombine.high %v552_v13, %v560_v14  ;;  %v567_v19 = vld [vmem:[#allocation5 + $0xd20] sm:$0xff]  ;;  %v161_v13 = vld [vmem:[#allocation5 + $0x70] sm:$0xff]  ;;  %v154_v14 = vld [vmem:[#allocation5 + $0x38] sm:$0xff] }
 0x1ef   :  { %3623 = vmatprep.subr.bf16.mxu0 %v5040_v20  ;;  %3705 = vmatprep.subr.bf16.mxu1 %v5042_v22  ;;  %v575_v20 = vld [vmem:[#allocation5 + $0xd60] sm:$0xff]  ;;  %v568_v22 = vld [vmem:[#allocation5 + $0xd28] sm:$0xff] }
 0x1f0   :  { %v5152_v26 = vcombine.high %v567_v19, %v575_v20  ;;  %v5151_v59 = vcombine.low %v567_v19, %v575_v20  ;;  %v5153_v33 = vcombine.low %v568_v22, %v576_v23  ;;  %v169_v20 = vld [vmem:[#allocation5 + $0xb0] sm:$0xff] }
 0x1f2   :  { %3624 = vmatpush1.bf16.msra.mxu0 %v5039_v27  ;;  %3706 = vmatpush1.bf16.msra.mxu1 %v5041_v28  ;;  %v5154_v27 = vcombine.high %v568_v22, %v576_v23  ;;  %v583_v28 = vld [vmem:[#allocation5 + $0xda0] sm:$0xff]  ;;  %v177_v22 = vld [vmem:[#allocation5 + $0xf0] sm:$0xff]  ;;  %v170_v23 = vld [vmem:[#allocation5 + $0xb8] sm:$0xff] }
 0x1f3   :  { %3625 = vmatprep.subr.bf16.mxu0 %v5056_v29  ;;  %3707 = vmatprep.subr.bf16.mxu1 %v5058_v31  ;;  %v591_v29 = vld [vmem:[#allocation5 + $0xde0] sm:$0xff]  ;;  %v584_v31 = vld [vmem:[#allocation5 + $0xda8] sm:$0xff] }
 0x1f4   :  { %v5168_v34 = vcombine.high %v583_v28, %v591_v29  ;;  %v5167_v40 = vcombine.low %v583_v28, %v591_v29  ;;  %v5169_v41 = vcombine.low %v584_v31, %v592_v56  ;;  %v185_v29 = vld [vmem:[#allocation5 + $0x130] sm:$0xff] }
 0x1f6   :  { %3626 = vmatpush1.bf16.msra.mxu0 %v5055_v35  ;;  %3708 = vmatpush1.bf16.msra.mxu1 %v5057_v36  ;;  %v5170_v35 = vcombine.high %v584_v31, %v592_v56  ;;  %v599_v36 = vld [vmem:[#allocation5 + $0xe20] sm:$0xff]  ;;  %v193_v31 = vld [vmem:[#allocation5 + $0x170] sm:$0xff]  ;;  %v186_v56 = vld [vmem:[#allocation5 + $0x138] sm:$0xff] }
 0x1f7   :  { %3627 = vmatprep.subr.bf16.mxu0 %v5072_v37  ;;  %3709 = vmatprep.subr.bf16.mxu1 %v5074_v38  ;;  %v607_v37 = vld [vmem:[#allocation5 + $0xe60] sm:$0xff]  ;;  %v600_v38 = vld [vmem:[#allocation5 + $0xe28] sm:$0xff] }
 0x1f8   :  { %v5971_v46 = vpop.f32.mrb[0].mxu0  ;;  %v5973_v51 = vpop.f32.mrb[0].mxu1  ;;  %v5184_v42 = vcombine.high %v599_v36, %v607_v37  ;;  %v5183_v50 = vcombine.low %v599_v36, %v607_v37  ;;  %v5185_v53 = vcombine.low %v600_v38, %v608_v39  ;;  %v201_v37 = vld [vmem:[#allocation5 + $0x1b0] sm:$0xff] }
 0x1f9   :  { %v5975_v52 = vpop.f32.mrb[1].mxu0  ;;  %v5977_v55 = vpop.f32.mrb[1].mxu1 }
 0x1fa   :  { %v3327_v57 = vpop.f32.mrb[2].mxu0  ;;  %3628 = vmatpush1.bf16.msra.mxu0 %v5071_v43  ;;  %v3409_v60 = vpop.f32.mrb[2].mxu1  ;;  %3710 = vmatpush1.bf16.msra.mxu1 %v5073_v44  ;;  %v5186_v43 = vcombine.high %v600_v38, %v608_v39  ;;  %v615_v44 = vld [vmem:[#allocation5 + $0xea0] sm:$0xff]  ;;  %v209_v38 = vld [vmem:[#allocation5 + $0x1f0] sm:$0xff]  ;;  %v202_v39 = vld [vmem:[#allocation5 + $0x1b8] sm:$0xff] }
 0x1fb   :  { %v3328_v61 = vpop.f32.mrb[3].mxu0  ;;  %3629 = vmatprep.subr.bf16.mxu0 %v5088_v45  ;;  %v3410_v0 = vpop.f32.mrb[3].mxu1  ;;  %3711 = vmatprep.subr.bf16.mxu1 %v5090_v48  ;;  %v623_v45 = vld [vmem:[#allocation5 + $0xee0] sm:$0xff]  ;;  %v616_v48 = vld [vmem:[#allocation5 + $0xea8] sm:$0xff] }
 0x1fc   :  { %v5200_v54 = vcombine.high %v615_v44, %v623_v45  ;;  %v5202_v57 = vcombine.high %v616_v48, %v624_v49  ;;  %v639_v60 = vld [vmem:[#allocation5 + $0xf60] sm:$0xff]  ;;  %v632_v61 = vld [vmem:[#allocation5 + $0xf28] sm:$0xff]  ;;  %v5201_v0 = vcombine.low %v616_v48, %v624_v49  ;;  %v225_v48 = vld [vmem:[#allocation5 + $0x270] sm:$0xff] }
 0x1fd   :  { %v218_v49 = vld [vmem:[#allocation5 + $0x238] sm:$0xff] }
 0x1fe   :  { %3630 = vmatpush1.bf16.msra.mxu0 %v5087_v58  ;;  %3712 = vmatpush1.bf16.msra.mxu1 %v5089_v62  ;;  %v631_v58 = vld [vmem:[#allocation5 + $0xf20] sm:$0xff]  ;;  %v640_v62 = vld [vmem:[#allocation5 + $0xf68] sm:$0xff] }
 0x1ff   :  { %3631 = vmatprep.subr.bf16.mxu0 %v5104_v63  ;;  %3713 = vmatprep.subr.bf16.mxu1 %v5106_v1  ;;  %v5199_v63 = vcombine.low %v615_v44, %v623_v45  ;;  %v5216_v1 = vcombine.high %v631_v58, %v639_v60  ;;  %v5218_v2 = vcombine.high %v632_v61, %v640_v62  ;;  %v217_v45 = vld [vmem:[#allocation5 + $0x230] sm:$0xff] }
 0x202   :  { %3632 = vmatpush1.bf16.msra.mxu0 %v5103_v7  ;;  %3714 = vmatpush1.bf16.msra.mxu1 %v5105_v8  ;;  %v656_v7 = vld [vmem:[#allocation5 + $0xfe8] sm:$0xff]  ;;  %v5215_v8 = vcombine.low %v631_v58, %v639_v60  ;;  %v233_v58 = vld [vmem:[#allocation5 + $0x2b0] sm:$0xff] }
 0x203   :  { %3633 = vmatprep.subr.bf16.mxu0 %v5120_v9  ;;  %3715 = vmatprep.subr.bf16.mxu1 %v5122_v10  ;;  %v5217_v9 = vcombine.low %v632_v61, %v640_v62  ;;  %v5232_v10 = vcombine.high %v647_v4, %v655_v5  ;;  %v5234_v11 = vcombine.high %v648_v6, %v656_v7  ;;  %v241_v60 = vld [vmem:[#allocation5 + $0x2f0] sm:$0xff]  ;;  %v234_v61 = vld [vmem:[#allocation5 + $0x2b8] sm:$0xff] }
 0x204   :  { %v242_v62 = vld [vmem:[#allocation5 + $0x2f8] sm:$0xff] }
 0x206   :  { %3634 = vmatpush1.bf16.msra.mxu0 %v5119_v15  ;;  %3716 = vmatpush1.bf16.msra.mxu1 %v5121_v16  ;;  %v162_v15 = vld [vmem:[#allocation5 + $0x78] sm:$0xff]  ;;  %v5231_v16 = vcombine.low %v647_v4, %v655_v5  ;;  %v249_v4 = vld [vmem:[#allocation5 + $0x330] sm:$0xff] }
 0x207   :  { %3635 = vmatprep.subr.bf16.mxu0 %v5136_v17  ;;  %3717 = vmatprep.subr.bf16.mxu1 %v5138_v18  ;;  %v5233_v17 = vcombine.low %v648_v6, %v656_v7  ;;  %v4740_v18 = vcombine.high %v153_v12, %v161_v13  ;;  %v4742_v19 = vcombine.high %v154_v14, %v162_v15  ;;  %v257_v5 = vld [vmem:[#allocation5 + $0x370] sm:$0xff]  ;;  %v250_v6 = vld [vmem:[#allocation5 + $0x338] sm:$0xff] }
 0x208   :  { %v258_v7 = vld [vmem:[#allocation5 + $0x378] sm:$0xff] }
 0x20a   :  { %3636 = vmatpush1.bf16.msra.mxu0 %v5135_v24  ;;  %3718 = vmatpush1.bf16.msra.mxu1 %v5137_v25  ;;  %v178_v24 = vld [vmem:[#allocation5 + $0xf8] sm:$0xff]  ;;  %v4739_v25 = vcombine.low %v153_v12, %v161_v13  ;;  %v265_v12 = vld [vmem:[#allocation5 + $0x3b0] sm:$0xff] }
 0x20b   :  { %3637 = vmatprep.subr.bf16.mxu0 %v5152_v26  ;;  %3719 = vmatprep.subr.bf16.mxu1 %v5154_v27  ;;  %v4741_v26 = vcombine.low %v154_v14, %v162_v15  ;;  %v4756_v27 = vcombine.high %v169_v20, %v177_v22  ;;  %v4758_v28 = vcombine.high %v170_v23, %v178_v24  ;;  %v273_v13 = vld [vmem:[#allocation5 + $0x3f0] sm:$0xff]  ;;  %v266_v14 = vld [vmem:[#allocation5 + $0x3b8] sm:$0xff] }
 0x20c   :  { %v274_v15 = vld [vmem:[#allocation5 + $0x3f8] sm:$0xff] }
 0x20e   :  { %3638 = vmatpush1.bf16.msra.mxu0 %v5151_v59  ;;  %3720 = vmatpush1.bf16.msra.mxu1 %v5153_v33  ;;  %v194_v59 = vld [vmem:[#allocation5 + $0x178] sm:$0xff]  ;;  %v4755_v33 = vcombine.low %v169_v20, %v177_v22  ;;  %v281_v20 = vld [vmem:[#allocation5 + $0x430] sm:$0xff] }
 0x20f   :  { %3639 = vmatprep.subr.bf16.mxu0 %v5168_v34  ;;  %3721 = vmatprep.subr.bf16.mxu1 %v5170_v35  ;;  %v4757_v34 = vcombine.low %v170_v23, %v178_v24  ;;  %v4772_v35 = vcombine.high %v185_v29, %v193_v31  ;;  %v4774_v36 = vcombine.high %v186_v56, %v194_v59  ;;  %v289_v22 = vld [vmem:[#allocation5 + $0x470] sm:$0xff]  ;;  %v282_v23 = vld [vmem:[#allocation5 + $0x438] sm:$0xff] }
 0x210   :  { %v290_v24 = vld [vmem:[#allocation5 + $0x478] sm:$0xff] }
 0x212   :  { %3640 = vmatpush1.bf16.msra.mxu0 %v5167_v40  ;;  %3722 = vmatpush1.bf16.msra.mxu1 %v5169_v41  ;;  %v210_v40 = vld [vmem:[#allocation5 + $0x1f8] sm:$0xff]  ;;  %v4771_v41 = vcombine.low %v185_v29, %v193_v31  ;;  %v297_v29 = vld [vmem:[#allocation5 + $0x4b0] sm:$0xff] }
 0x213   :  { %3641 = vmatprep.subr.bf16.mxu0 %v5184_v42  ;;  %3723 = vmatprep.subr.bf16.mxu1 %v5186_v43  ;;  %v4773_v42 = vcombine.low %v186_v56, %v194_v59  ;;  %v4788_v43 = vcombine.high %v201_v37, %v209_v38  ;;  %v4790_v44 = vcombine.high %v202_v39, %v210_v40  ;;  %v305_v31 = vld [vmem:[#allocation5 + $0x4f0] sm:$0xff]  ;;  %v298_v56 = vld [vmem:[#allocation5 + $0x4b8] sm:$0xff] }
 0x214   :  { %v306_v59 = vld [vmem:[#allocation5 + $0x4f8] sm:$0xff] }
 0x216   :  { %3642 = vmatpush1.bf16.msra.mxu0 %v5183_v50  ;;  %3724 = vmatpush1.bf16.msra.mxu1 %v5185_v53  ;;  %v226_v50 = vld [vmem:[#allocation5 + $0x278] sm:$0xff]  ;;  %v4787_v53 = vcombine.low %v201_v37, %v209_v38  ;;  %v313_v37 = vld [vmem:[#allocation5 + $0x530] sm:$0xff] }
 0x217   :  { %3643 = vmatprep.subr.bf16.mxu0 %v5200_v54  ;;  %3725 = vmatprep.subr.bf16.mxu1 %v5202_v57  ;;  %v4789_v54 = vcombine.low %v202_v39, %v210_v40  ;;  %v4804_v57 = vcombine.high %v217_v45, %v225_v48  ;;  %v321_v38 = vld [vmem:[#allocation5 + $0x570] sm:$0xff]  ;;  %v314_v39 = vld [vmem:[#allocation5 + $0x538] sm:$0xff] }
 0x218   :  { %v322_v40 = vld [vmem:[#allocation5 + $0x578] sm:$0xff] }
 0x21a   :  { %3644 = vmatpush1.bf16.msra.mxu0 %v5199_v63  ;;  %3726 = vmatpush1.bf16.msra.mxu1 %v5201_v0  ;;  %v4803_v63 = vcombine.low %v217_v45, %v225_v48  ;;  %v4805_v0 = vcombine.low %v218_v49, %v226_v50  ;;  %v329_v45 = vld [vmem:[#allocation5 + $0x5b0] sm:$0xff] }
 0x21b   :  { %3645 = vmatprep.subr.bf16.mxu0 %v5216_v1  ;;  %3727 = vmatprep.subr.bf16.mxu1 %v5218_v2  ;;  %v4820_v1 = vcombine.high %v233_v58, %v241_v60  ;;  %v4822_v2 = vcombine.high %v234_v61, %v242_v62  ;;  %v337_v48 = vld [vmem:[#allocation5 + $0x5f0] sm:$0xff] }
 0x21e   :  { %3646 = vmatpush1.bf16.msra.mxu0 %v5215_v8  ;;  %3728 = vmatpush1.bf16.msra.mxu1 %v5217_v9  ;;  %v4819_v8 = vcombine.low %v233_v58, %v241_v60  ;;  %v4821_v9 = vcombine.low %v234_v61, %v242_v62  ;;  %v345_v58 = vld [vmem:[#allocation5 + $0x630] sm:$0xff]  ;;  %v346_v61 = vld [vmem:[#allocation5 + $0x638] sm:$0xff] }
 0x21f   :  { %3647 = vmatprep.subr.bf16.mxu0 %v5232_v10  ;;  %3729 = vmatprep.subr.bf16.mxu1 %v5234_v11  ;;  %v4836_v10 = vcombine.high %v249_v4, %v257_v5  ;;  %v4838_v11 = vcombine.high %v250_v6, %v258_v7  ;;  %v353_v60 = vld [vmem:[#allocation5 + $0x670] sm:$0xff]  ;;  %v354_v62 = vld [vmem:[#allocation5 + $0x678] sm:$0xff] }
 0x222   :  { %3648 = vmatpush1.bf16.msra.mxu0 %v5231_v16  ;;  %3730 = vmatpush1.bf16.msra.mxu1 %v5233_v17  ;;  %v4835_v16 = vcombine.low %v249_v4, %v257_v5  ;;  %v4837_v17 = vcombine.low %v250_v6, %v258_v7  ;;  %v361_v4 = vld [vmem:[#allocation5 + $0x6b0] sm:$0xff]  ;;  %v362_v6 = vld [vmem:[#allocation5 + $0x6b8] sm:$0xff] }
 0x223   :  { %3740 = vmatprep.subr.bf16.mxu0 %v4740_v18  ;;  %3822 = vmatprep.subr.bf16.mxu1 %v4742_v19  ;;  %v4852_v18 = vcombine.high %v265_v12, %v273_v13  ;;  %v4854_v19 = vcombine.high %v266_v14, %v274_v15  ;;  %v369_v5 = vld [vmem:[#allocation5 + $0x6f0] sm:$0xff]  ;;  %v370_v7 = vld [vmem:[#allocation5 + $0x6f8] sm:$0xff] }
 0x225   :  { %3650 = vmatmul.mubr.bf16.vlgmr.msra.gmra.mrb[8].mxu0 %v5953_v30  ;;  %3732 = vmatmul.mubr.bf16.vlgmr.msra.gmra.mrb[8].mxu1 %v5953_v30 }
 0x226   :  { %3741 = vmatpush1.bf16.msra.mxu0 %v4739_v25  ;;  %3823 = vmatpush1.bf16.msra.mxu1 %v4741_v26  ;;  %v4851_v25 = vcombine.low %v265_v12, %v273_v13  ;;  %v4853_v26 = vcombine.low %v266_v14, %v274_v15  ;;  %v377_v12 = vld [vmem:[#allocation5 + $0x730] sm:$0xff]  ;;  %v378_v14 = vld [vmem:[#allocation5 + $0x738] sm:$0xff] }
 0x227   :  { %3742 = vmatprep.subr.bf16.mxu0 %v4756_v27  ;;  %3824 = vmatprep.subr.bf16.mxu1 %v4758_v28  ;;  %v4868_v27 = vcombine.high %v281_v20, %v289_v22  ;;  %v4870_v28 = vcombine.high %v282_v23, %v290_v24  ;;  %v385_v13 = vld [vmem:[#allocation5 + $0x770] sm:$0xff]  ;;  %v386_v15 = vld [vmem:[#allocation5 + $0x778] sm:$0xff] }
 0x228   :  { %3772 = vmatprep.mubr.bf16.mxu0 %v5935_v3  ;;  %3854 = vmatprep.mubr.bf16.mxu1 %v5935_v3  ;;  %v4806_v3 = vcombine.high %v218_v49, %v226_v50  ;;  %v330_v49 = vld [vmem:[#allocation5 + $0x5b8] sm:$0xff] }
 0x229   :  { %v338_v50 = vld [vmem:[#allocation5 + $0x5f8] sm:$0xff] }
 0x22a   :  { %3743 = vmatpush1.bf16.msra.mxu0 %v4755_v33  ;;  %3825 = vmatpush1.bf16.msra.mxu1 %v4757_v34  ;;  %v4867_v33 = vcombine.low %v281_v20, %v289_v22  ;;  %v4869_v34 = vcombine.low %v282_v23, %v290_v24  ;;  %v393_v20 = vld [vmem:[#allocation5 + $0x7b0] sm:$0xff]  ;;  %v394_v23 = vld [vmem:[#allocation5 + $0x7b8] sm:$0xff] }
 0x22b   :  { %3744 = vmatprep.subr.bf16.mxu0 %v4772_v35  ;;  %3826 = vmatprep.subr.bf16.mxu1 %v4774_v36  ;;  %v4884_v35 = vcombine.high %v297_v29, %v305_v31  ;;  %v4886_v36 = vcombine.high %v298_v56, %v306_v59  ;;  %v401_v22 = vld [vmem:[#allocation5 + $0x7f0] sm:$0xff]  ;;  %v402_v24 = vld [vmem:[#allocation5 + $0x7f8] sm:$0xff] }
 0x22e   :  { %3745 = vmatpush1.bf16.msra.mxu0 %v4771_v41  ;;  %3827 = vmatpush1.bf16.msra.mxu1 %v4773_v42  ;;  %v4883_v41 = vcombine.low %v297_v29, %v305_v31  ;;  %v4885_v42 = vcombine.low %v298_v56, %v306_v59  ;;  %v409_v29 = vld [vmem:[#allocation5 + $0x830] sm:$0xff]  ;;  %v410_v56 = vld [vmem:[#allocation5 + $0x838] sm:$0xff] }
 0x22f   :  { %3746 = vmatprep.subr.bf16.mxu0 %v4788_v43  ;;  %3828 = vmatprep.subr.bf16.mxu1 %v4790_v44  ;;  %v4900_v43 = vcombine.high %v313_v37, %v321_v38  ;;  %v4902_v44 = vcombine.high %v314_v39, %v322_v40  ;;  %v417_v31 = vld [vmem:[#allocation5 + $0x870] sm:$0xff]  ;;  %v418_v59 = vld [vmem:[#allocation5 + $0x878] sm:$0xff] }
 0x232   :  { %3747 = vmatpush1.bf16.msra.mxu0 %v4787_v53  ;;  %3829 = vmatpush1.bf16.msra.mxu1 %v4789_v54  ;;  %v4899_v53 = vcombine.low %v313_v37, %v321_v38  ;;  %v4901_v54 = vcombine.low %v314_v39, %v322_v40  ;;  %v425_v37 = vld [vmem:[#allocation5 + $0x8b0] sm:$0xff]  ;;  %v426_v39 = vld [vmem:[#allocation5 + $0x8b8] sm:$0xff] }
 0x233   :  { %3748 = vmatprep.subr.bf16.mxu0 %v4804_v57  ;;  %3830 = vmatprep.subr.bf16.mxu1 %v4806_v3  ;;  %v4916_v57 = vcombine.high %v329_v45, %v337_v48  ;;  %v4918_v3 = vcombine.high %v330_v49, %v338_v50  ;;  %v433_v38 = vld [vmem:[#allocation5 + $0x8f0] sm:$0xff]  ;;  %v434_v40 = vld [vmem:[#allocation5 + $0x8f8] sm:$0xff] }
 0x236   :  { %3749 = vmatpush1.bf16.msra.mxu0 %v4803_v63  ;;  %3831 = vmatpush1.bf16.msra.mxu1 %v4805_v0  ;;  %v4915_v63 = vcombine.low %v329_v45, %v337_v48  ;;  %v4917_v0 = vcombine.low %v330_v49, %v338_v50  ;;  %v441_v45 = vld [vmem:[#allocation5 + $0x930] sm:$0xff]  ;;  %v442_v49 = vld [vmem:[#allocation5 + $0x938] sm:$0xff] }
 0x237   :  { %3750 = vmatprep.subr.bf16.mxu0 %v4820_v1  ;;  %3832 = vmatprep.subr.bf16.mxu1 %v4822_v2  ;;  %v4932_v1 = vcombine.high %v345_v58, %v353_v60  ;;  %v4934_v2 = vcombine.high %v346_v61, %v354_v62  ;;  %v449_v48 = vld [vmem:[#allocation5 + $0x970] sm:$0xff]  ;;  %v450_v50 = vld [vmem:[#allocation5 + $0x978] sm:$0xff] }
 0x23a   :  { %3751 = vmatpush1.bf16.msra.mxu0 %v4819_v8  ;;  %3833 = vmatpush1.bf16.msra.mxu1 %v4821_v9  ;;  %v4931_v8 = vcombine.low %v345_v58, %v353_v60  ;;  %v4933_v9 = vcombine.low %v346_v61, %v354_v62  ;;  %v457_v58 = vld [vmem:[#allocation5 + $0x9b0] sm:$0xff]  ;;  %v458_v61 = vld [vmem:[#allocation5 + $0x9b8] sm:$0xff] }
 0x23b   :  { %3752 = vmatprep.subr.bf16.mxu0 %v4836_v10  ;;  %3834 = vmatprep.subr.bf16.mxu1 %v4838_v11  ;;  %v4948_v10 = vcombine.high %v361_v4, %v369_v5  ;;  %v4950_v11 = vcombine.high %v362_v6, %v370_v7  ;;  %v465_v60 = vld [vmem:[#allocation5 + $0x9f0] sm:$0xff]  ;;  %v466_v62 = vld [vmem:[#allocation5 + $0x9f8] sm:$0xff] }
 0x23e   :  { %3753 = vmatpush1.bf16.msra.mxu0 %v4835_v16  ;;  %3835 = vmatpush1.bf16.msra.mxu1 %v4837_v17  ;;  %v4947_v16 = vcombine.low %v361_v4, %v369_v5  ;;  %v4949_v17 = vcombine.low %v362_v6, %v370_v7  ;;  %v481_v4 = vld [vmem:[#allocation5 + $0xa70] sm:$0xff]  ;;  %v474_v5 = vld [vmem:[#allocation5 + $0xa38] sm:$0xff]  ;;  %v5043_v7 = vcombine.low %v457_v58, %v465_v60 }
 0x23f   :  { %3754 = vmatprep.subr.bf16.mxu0 %v4852_v18  ;;  %3836 = vmatprep.subr.bf16.mxu1 %v4854_v19  ;;  %v4964_v18 = vcombine.high %v377_v12, %v385_v13  ;;  %v4966_v19 = vcombine.high %v378_v14, %v386_v15  ;;  %v482_v6 = vld [vmem:[#allocation5 + $0xa78] sm:$0xff] }
 0x242   :  { %3755 = vmatpush1.bf16.msra.mxu0 %v4851_v25  ;;  %3837 = vmatpush1.bf16.msra.mxu1 %v4853_v26  ;;  %v4963_v25 = vcombine.low %v377_v12, %v385_v13  ;;  %v4965_v26 = vcombine.low %v378_v14, %v386_v15  ;;  %v490_v12 = vld [vmem:[#allocation5 + $0xab8] sm:$0xff]  ;;  %v5061_v15 = vcombine.low %v474_v5, %v482_v6 }
 0x243   :  { %3756 = vmatprep.subr.bf16.mxu0 %v4868_v27  ;;  %3838 = vmatprep.subr.bf16.mxu1 %v4870_v28  ;;  %v4980_v27 = vcombine.high %v393_v20, %v401_v22  ;;  %v4982_v28 = vcombine.high %v394_v23, %v402_v24  ;;  %v498_v13 = vld [vmem:[#allocation5 + $0xaf8] sm:$0xff] }
 0x246   :  { %3757 = vmatpush1.bf16.msra.mxu0 %v4867_v33  ;;  %3839 = vmatpush1.bf16.msra.mxu1 %v4869_v34  ;;  %v4979_v33 = vcombine.low %v393_v20, %v401_v22  ;;  %v4981_v34 = vcombine.low %v394_v23, %v402_v24  ;;  %v506_v20 = vld [vmem:[#allocation5 + $0xb38] sm:$0xff]  ;;  %v5077_v24 = vcombine.low %v490_v12, %v498_v13 }
 0x247   :  { %3758 = vmatprep.subr.bf16.mxu0 %v4884_v35  ;;  %3840 = vmatprep.subr.bf16.mxu1 %v4886_v36  ;;  %v4996_v35 = vcombine.high %v409_v29, %v417_v31  ;;  %v4998_v36 = vcombine.high %v410_v56, %v418_v59  ;;  %v514_v22 = vld [vmem:[#allocation5 + $0xb78] sm:$0xff] }
 0x24a   :  { %3759 = vmatpush1.bf16.msra.mxu0 %v4883_v41  ;;  %3841 = vmatpush1.bf16.msra.mxu1 %v4885_v42  ;;  %v4995_v41 = vcombine.low %v409_v29, %v417_v31  ;;  %v4997_v42 = vcombine.low %v410_v56, %v418_v59  ;;  %v529_v29 = vld [vmem:[#allocation5 + $0xbf0] sm:$0xff] }
 0x24b   :  { %3760 = vmatprep.subr.bf16.mxu0 %v4900_v43  ;;  %3842 = vmatprep.subr.bf16.mxu1 %v4902_v44  ;;  %v5012_v43 = vcombine.high %v425_v37, %v433_v38  ;;  %v5014_v44 = vcombine.high %v426_v39, %v434_v40 }
 0x24e   :  { %3761 = vmatpush1.bf16.msra.mxu0 %v4899_v53  ;;  %3843 = vmatpush1.bf16.msra.mxu1 %v4901_v54  ;;  %v5011_v53 = vcombine.low %v425_v37, %v433_v38  ;;  %v5013_v54 = vcombine.low %v426_v39, %v434_v40 }
 0x24f   :  { %3762 = vmatprep.subr.bf16.mxu0 %v4916_v57  ;;  %3844 = vmatprep.subr.bf16.mxu1 %v4918_v3  ;;  %v5028_v57 = vcombine.high %v441_v45, %v449_v48  ;;  %v5030_v3 = vcombine.high %v442_v49, %v450_v50 }
 0x252   :  { %3763 = vmatpush1.bf16.msra.mxu0 %v4915_v63  ;;  %3845 = vmatpush1.bf16.msra.mxu1 %v4917_v0  ;;  %v5027_v63 = vcombine.low %v441_v45, %v449_v48  ;;  %v5044_v0 = vcombine.high %v457_v58, %v465_v60 }
 0x253   :  { %3764 = vmatprep.subr.bf16.mxu0 %v4932_v1  ;;  %3846 = vmatprep.subr.bf16.mxu1 %v4934_v2  ;;  %v5046_v1 = vcombine.high %v458_v61, %v466_v62  ;;  %v473_v2 = vld [vmem:[#allocation5 + $0xa30] sm:$0xff] }
 0x254   :  { %v5059_v14 = vcombine.low %v473_v2, %v481_v4 }
 0x256   :  { %3765 = vmatpush1.bf16.msra.mxu0 %v4931_v8  ;;  %3847 = vmatpush1.bf16.msra.mxu1 %v4933_v9  ;;  %v5045_v8 = vcombine.low %v458_v61, %v466_v62  ;;  %v5060_v9 = vcombine.high %v473_v2, %v481_v4  ;;  %v553_v61 = vld [vmem:[#allocation5 + $0xcb0] sm:$0xff] }
 0x257   :  { %3766 = vmatprep.subr.bf16.mxu0 %v4948_v10  ;;  %3848 = vmatprep.subr.bf16.mxu1 %v4950_v11  ;;  %v489_v10 = vld [vmem:[#allocation5 + $0xab0] sm:$0xff] }
 0x258   :  { %v497_v11 = vld [vmem:[#allocation5 + $0xaf0] sm:$0xff] }
 0x259   :  { %v5075_v23 = vcombine.low %v489_v10, %v497_v11  ;;  %v561_v62 = vld [vmem:[#allocation5 + $0xcf0] sm:$0xff] }
 0x25a   :  { %3767 = vmatpush1.bf16.msra.mxu0 %v4947_v16  ;;  %3849 = vmatpush1.bf16.msra.mxu1 %v4949_v17  ;;  %v5076_v16 = vcombine.high %v489_v10, %v497_v11  ;;  %v5078_v17 = vcombine.high %v490_v12, %v498_v13  ;;  %v5140_v2 = vcombine.high %v553_v61, %v561_v62  ;;  %v585_v12 = vld [vmem:[#allocation5 + $0xdb0] sm:$0xff] }
 0x25b   :  { %3768 = vmatprep.subr.bf16.mxu0 %v4964_v18  ;;  %3850 = vmatprep.subr.bf16.mxu1 %v4966_v19  ;;  %v505_v18 = vld [vmem:[#allocation5 + $0xb30] sm:$0xff] }
 0x25c   :  { %v513_v19 = vld [vmem:[#allocation5 + $0xb70] sm:$0xff] }
 0x25d   :  { %v5091_v39 = vcombine.low %v505_v18, %v513_v19  ;;  %v593_v13 = vld [vmem:[#allocation5 + $0xdf0] sm:$0xff] }
 0x25e   :  { %3769 = vmatpush1.bf16.msra.mxu0 %v4963_v25  ;;  %3851 = vmatpush1.bf16.msra.mxu1 %v4965_v26  ;;  %v5092_v25 = vcombine.high %v505_v18, %v513_v19  ;;  %v5172_v18 = vcombine.high %v585_v12, %v593_v13 }
 0x25f   :  { %3770 = vmatprep.subr.bf16.mxu0 %v4980_v27  ;;  %3852 = vmatprep.subr.bf16.mxu1 %v4982_v28  ;;  %v5094_v27 = vcombine.high %v506_v20, %v514_v22  ;;  %v521_v28 = vld [vmem:[#allocation5 + $0xbb0] sm:$0xff] }
 0x262   :  { %3771 = vmatpush1.bf16.msra.mxu0 %v4979_v33  ;;  %3853 = vmatpush1.bf16.msra.mxu1 %v4981_v34  ;;  %v522_v33 = vld [vmem:[#allocation5 + $0xbb8] sm:$0xff] }
 0x263   :  { %3781 = vmatprep.subr.bf16.mxu0 %v4996_v35  ;;  %3863 = vmatprep.subr.bf16.mxu1 %v4998_v36  ;;  %v530_v34 = vld [vmem:[#allocation5 + $0xbf8] sm:$0xff] }
 0x264   :  { %v5110_v48 = vcombine.high %v522_v33, %v530_v34 }
 0x265   :  { %3773 = vmatmul.mubr.bf16.vlgmr.msra.gmra.mrb[12].mxu0 %v5941_v21  ;;  %3855 = vmatmul.mubr.bf16.vlgmr.msra.gmra.mrb[12].mxu1 %v5941_v21  ;;  %v5029_v21 = vcombine.low %v442_v49, %v450_v50  ;;  %v537_v49 = vld [vmem:[#allocation5 + $0xc30] sm:$0xff] }
 0x266   :  { %3782 = vmatpush1.bf16.msra.mxu0 %v4995_v41  ;;  %3864 = vmatpush1.bf16.msra.mxu1 %v4997_v42  ;;  %v545_v50 = vld [vmem:[#allocation5 + $0xc70] sm:$0xff] }
 0x267   :  { %3783 = vmatprep.subr.bf16.mxu0 %v5012_v43  ;;  %3865 = vmatprep.subr.bf16.mxu1 %v5014_v44  ;;  %v5093_v43 = vcombine.low %v506_v20, %v514_v22  ;;  %v5108_v44 = vcombine.high %v521_v28, %v529_v29  ;;  %v5124_v58 = vcombine.high %v537_v49, %v545_v50  ;;  %v601_v20 = vld [vmem:[#allocation5 + $0xe30] sm:$0xff] }
 0x268   :  { %3813 = vmatprep.mubr.bf16.mxu0 %v5945_v32  ;;  %3895 = vmatprep.mubr.bf16.mxu1 %v5945_v32  ;;  %v5062_v32 = vcombine.high %v474_v5, %v482_v6  ;;  %v569_v5 = vld [vmem:[#allocation5 + $0xd30] sm:$0xff] }
 0x269   :  { %v577_v6 = vld [vmem:[#allocation5 + $0xd70] sm:$0xff] }
 0x26a   :  { %3784 = vmatpush1.bf16.msra.mxu0 %v5011_v53  ;;  %3866 = vmatpush1.bf16.msra.mxu1 %v5013_v54  ;;  %v538_v53 = vld [vmem:[#allocation5 + $0xc38] sm:$0xff]  ;;  %v5156_v10 = vcombine.high %v569_v5, %v577_v6  ;;  %v609_v22 = vld [vmem:[#allocation5 + $0xe70] sm:$0xff] }
 0x26b   :  { %3785 = vmatprep.subr.bf16.mxu0 %v5028_v57  ;;  %3867 = vmatprep.subr.bf16.mxu1 %v5030_v3  ;;  %v546_v54 = vld [vmem:[#allocation5 + $0xc78] sm:$0xff]  ;;  %v5107_v57 = vcombine.low %v521_v28, %v529_v29  ;;  %v5109_v3 = vcombine.low %v522_v33, %v530_v34  ;;  %v5188_v28 = vcombine.high %v601_v20, %v609_v22  ;;  %v617_v33 = vld [vmem:[#allocation5 + $0xeb0] sm:$0xff] }
 0x26c   :  { %v5126_v60 = vcombine.high %v538_v53, %v546_v54  ;;  %v625_v34 = vld [vmem:[#allocation5 + $0xef0] sm:$0xff] }
 0x26e   :  { %3786 = vmatpush1.bf16.msra.mxu0 %v5027_v63  ;;  %3868 = vmatpush1.bf16.msra.mxu1 %v5029_v21  ;;  %v554_v63 = vld [vmem:[#allocation5 + $0xcb8] sm:$0xff] }
 0x26f   :  { %3787 = vmatprep.subr.bf16.mxu0 %v5044_v0  ;;  %3869 = vmatprep.subr.bf16.mxu1 %v5046_v1  ;;  %v562_v21 = vld [vmem:[#allocation5 + $0xcf8] sm:$0xff]  ;;  %v5123_v0 = vcombine.low %v537_v49, %v545_v50  ;;  %v5125_v1 = vcombine.low %v538_v53, %v546_v54  ;;  %v5203_v53 = vcombine.low %v617_v33, %v625_v34 }
 0x270   :  { %v5142_v4 = vcombine.high %v554_v63, %v562_v21  ;;  %v634_v49 = vld [vmem:[#allocation5 + $0xf38] sm:$0xff] }
 0x271   :  { %v642_v50 = vld [vmem:[#allocation5 + $0xf78] sm:$0xff] }
 0x272   :  { %3788 = vmatpush1.bf16.msra.mxu0 %v5043_v7  ;;  %3870 = vmatpush1.bf16.msra.mxu1 %v5045_v8  ;;  %v570_v7 = vld [vmem:[#allocation5 + $0xd38] sm:$0xff] }
 0x273   :  { %3789 = vmatprep.subr.bf16.mxu0 %v5060_v9  ;;  %3871 = vmatprep.subr.bf16.mxu1 %v5062_v32  ;;  %v578_v8 = vld [vmem:[#allocation5 + $0xd78] sm:$0xff]  ;;  %v5139_v9 = vcombine.low %v553_v61, %v561_v62  ;;  %v5141_v32 = vcombine.low %v554_v63, %v562_v21  ;;  %v5221_v21 = vcombine.low %v634_v49, %v642_v50 }
 0x274   :  { %v5158_v11 = vcombine.high %v570_v7, %v578_v8  ;;  %v650_v61 = vld [vmem:[#allocation5 + $0xfb8] sm:$0xff] }
 0x275   :  { %v658_v62 = vld [vmem:[#allocation5 + $0xff8] sm:$0xff] }
 0x276   :  { %3790 = vmatpush1.bf16.msra.mxu0 %v5059_v14  ;;  %3872 = vmatpush1.bf16.msra.mxu1 %v5061_v15  ;;  %v586_v14 = vld [vmem:[#allocation5 + $0xdb8] sm:$0xff] }
 0x277   :  { %3791 = vmatprep.subr.bf16.mxu0 %v5076_v16  ;;  %3873 = vmatprep.subr.bf16.mxu1 %v5078_v17  ;;  %v594_v15 = vld [vmem:[#allocation5 + $0xdf8] sm:$0xff]  ;;  %v5155_v16 = vcombine.low %v569_v5, %v577_v6  ;;  %v5157_v17 = vcombine.low %v570_v7, %v578_v8  ;;  %v5414_v5 = vld [vmem:[#allocation8 + $0x40] sm:$0xff]  }
 0x278   :  { %v5987_v26 = vpop.f32.mrb[4].mxu0  ;;  %v5991_v56 = vpop.f32.mrb[4].mxu1  ;;  %v5174_v19 = vcombine.high %v586_v14, %v594_v15  ;;  %v5415_v6 = vld [vmem:[#allocation8 + $0xc0] sm:$0xff]  }
 0x279   :  { %v3904_v31 = vmax.f32 %v5971_v46, %v5987_v26  ;;  %v5993_v59 = vpop.f32.mrb[5].mxu0  ;;  %v3906_v35 = vmax.f32 %v5973_v51, %v5991_v56  ;;  %v5999_v37 = vpop.f32.mrb[5].mxu1  ;;  %v5416_v7 = vld [vmem:[#allocation8] sm:$0xff]  }
 0x27a   :  { %v3905_v36 = vmax.f32 %v5975_v52, %v5993_v59  ;;  %v3491_v38 = vpop.f32.mrb[6].mxu0  ;;  %3792 = vmatpush1.bf16.msra.mxu0 %v5075_v23  ;;  %v3907_v40 = vmax.f32 %v5977_v55, %v5999_v37  ;;  %v3573_v41 = vpop.f32.mrb[6].mxu1  ;;  %3874 = vmatpush1.bf16.msra.mxu1 %v5077_v24  ;;  %v602_v23 = vld [vmem:[#allocation5 + $0xe38] sm:$0xff]  ;;  %v5417_v8 = vld [vmem:[#allocation8 + $0x80] sm:$0xff]  }
 0x27b   :  { %v3492_v42 = vpop.f32.mrb[7].mxu0  ;;  %3793 = vmatprep.subr.bf16.mxu0 %v5092_v25  ;;  %v3574_v45 = vpop.f32.mrb[7].mxu1  ;;  %3875 = vmatprep.subr.bf16.mxu1 %v5094_v27  ;;  %v610_v24 = vld [vmem:[#allocation5 + $0xe78] sm:$0xff]  ;;  %v5171_v25 = vcombine.low %v585_v12, %v593_v13  ;;  %v5173_v27 = vcombine.low %v586_v14, %v594_v15  ;;  %v5187_v41 = vcombine.low %v601_v20, %v609_v22  ;;  %v5431_v20 = vld [vmem:[#allocation8 + $0xe0] sm:$0xff]  }
 0x27c   :  { %v5190_v29 = vcombine.high %v602_v23, %v610_v24  ;;  %v618_v38 = vld [vmem:[#allocation5 + $0xeb8] sm:$0xff]  ;;  %v5189_v42 = vcombine.low %v602_v23, %v610_v24  ;;  %v633_v45 = vld [vmem:[#allocation5 + $0xf30] sm:$0xff]  ;;  %v5432_v22 = vld [vmem:[#allocation8 + $0x20] sm:$0xff]  }
 0x27d   :  { %v5422_v12 = vld [vmem:[#allocation8 + $0x50] sm:$0xff]   ;;  %v5433_v23 = vld [vmem:[#allocation8 + $0xa0] sm:$0xff]  }
 0x27e   :  { %3794 = vmatpush1.bf16.msra.mxu0 %v5091_v39  ;;  %3876 = vmatpush1.bf16.msra.mxu1 %v5093_v43  ;;  %v626_v39 = vld [vmem:[#allocation5 + $0xef8] sm:$0xff]  ;;  %v5204_v43 = vcombine.high %v617_v33, %v625_v34  ;;  %v5436_v33 = vld [vmem:[#allocation8 + $0x28] sm:$0xff]  }
 0x27f   :  { %3795 = vmatprep.subr.bf16.mxu0 %v5108_v44  ;;  %3877 = vmatprep.subr.bf16.mxu1 %v5110_v48  ;;  %v5206_v44 = vcombine.high %v618_v38, %v626_v39  ;;  %v641_v48 = vld [vmem:[#allocation5 + $0xf70] sm:$0xff]  ;;  %v5205_v54 = vcombine.low %v618_v38, %v626_v39  ;;  %v5457_v37 = vld [vmem:[#allocation11 + $0x34] ss:$8 sps:$4 sm:$0xff]  }
 0x280   :  { %v5219_v63 = vcombine.low %v633_v45, %v641_v48  ;;  %v5423_v13 = vld [vmem:[#allocation8 + $0xd0] sm:$0xff]   ;;  %v5437_v34 = vld [vmem:[#allocation8 + $0xa8] sm:$0xff]  }
 0x281   :  { %v5424_v14 = vld [vmem:[#allocation8 + $0x10] sm:$0xff]   ;;  %v5446_v51 = vld [vmem:[#allocation11] ss:$8 sps:$4 sm:$0xff]  }
 0x282   :  { %3796 = vmatpush1.bf16.msra.mxu0 %v5107_v57  ;;  %3878 = vmatpush1.bf16.msra.mxu1 %v5109_v3  ;;  %v5220_v57 = vcombine.high %v633_v45, %v641_v48  ;;  %v5222_v3 = vcombine.high %v634_v49, %v642_v50  ;;  %v5425_v15 = vld [vmem:[#allocation8 + $0x90] sm:$0xff]   ;;  %v5442_v50 = vld [vmem:[#allocation8 + $0x78] sm:$0xff]  }
 0x283   :  { %3797 = vmatprep.subr.bf16.mxu0 %v5124_v58  ;;  %3879 = vmatprep.subr.bf16.mxu1 %v5126_v60  ;;  %v649_v58 = vld [vmem:[#allocation5 + $0xfb0] sm:$0xff] }
 0x284   :  { %v657_v60 = vld [vmem:[#allocation5 + $0xff0] sm:$0xff] }
 0x285   :  { %v5439_v45 = vld [vmem:[#allocation8 + $0xf0] sm:$0xff]  }
 0x286   :  { %3798 = vmatpush1.bf16.msra.mxu0 %v5123_v0  ;;  %3880 = vmatpush1.bf16.msra.mxu1 %v5125_v1  ;;  %v5236_v0 = vcombine.high %v649_v58, %v657_v60  ;;  %v5238_v1 = vcombine.high %v650_v61, %v658_v62  ;;  %v5440_v48 = vld [vmem:[#allocation8 + $0x30] sm:$0xff]  }
 0x287   :  { %3799 = vmatprep.subr.bf16.mxu0 %v5140_v2  ;;  %3881 = vmatprep.subr.bf16.mxu1 %v5142_v4  ;;  %v5235_v2 = vcombine.low %v649_v58, %v657_v60  ;;  %v5237_v4 = vcombine.low %v650_v61, %v658_v62  ;;  %v5441_v49 = vld [vmem:[#allocation8 + $0xb0] sm:$0xff]   ;;  %v6006_v58 = vsub.s32 0, %v5925_v47  ;;  %v3916_v60 = vld [vmem:[#allocation7] sm:$0xf]  ;;  %v3928_v61 = vsub.s32 2, %v5925_v47 }
 0x288   :  { %v6010_v62 = vsub.s32 1, %v5925_v47  ;;  %v5449_v55 = vld [vmem:[#allocation11 + $0x10] ss:$8 sps:$4 sm:$0xff]   ;;  %v5454_v59 = vld [vmem:[#allocation11 + $0x24] ss:$8 sps:$4 sm:$0xff]  }
 0x28a   :  { %3800 = vmatpush1.bf16.msra.mxu0 %v5139_v9  ;;  %3882 = vmatpush1.bf16.msra.mxu1 %v5141_v32  ;;  %v5418_v9 = vld [vmem:[#allocation8 + $0x48] sm:$0xff]  }
 0x28b   :  { %3801 = vmatprep.subr.bf16.mxu0 %v5156_v10  ;;  %3883 = vmatprep.subr.bf16.mxu1 %v5158_v11  ;;  %v5419_v32 = vld [vmem:[#allocation8 + $0xc8] sm:$0xff]  }
 0x28c   :  { %v5420_v10 = vld [vmem:[#allocation8 + $0x8] sm:$0xff]  }
 0x28d   :  { %v5421_v11 = vld [vmem:[#allocation8 + $0x88] sm:$0xff]  }
 0x28e   :  { %3802 = vmatpush1.bf16.msra.mxu0 %v5155_v16  ;;  %3884 = vmatpush1.bf16.msra.mxu1 %v5157_v17  ;;  %v5426_v16 = vld [vmem:[#allocation8 + $0x58] sm:$0xff]  }
 0x28f   :  { %3803 = vmatprep.subr.bf16.mxu0 %v5172_v18  ;;  %3885 = vmatprep.subr.bf16.mxu1 %v5174_v19  ;;  %v5427_v17 = vld [vmem:[#allocation8 + $0xd8] sm:$0xff]   ;;  %v5430_v19 = vld [vmem:[#allocation8 + $0x60] sm:$0xff]  }
 0x290   :  { %v5428_v18 = vld [vmem:[#allocation8 + $0x18] sm:$0xff]  }
 0x292   :  { %3804 = vmatpush1.bf16.msra.mxu0 %v5171_v25  ;;  %3886 = vmatpush1.bf16.msra.mxu1 %v5173_v27  ;;  %v5434_v25 = vld [vmem:[#allocation8 + $0x68] sm:$0xff]  }
 0x293   :  { %3805 = vmatprep.subr.bf16.mxu0 %v5188_v28  ;;  %3887 = vmatprep.subr.bf16.mxu1 %v5190_v29  ;;  %v5435_v27 = vld [vmem:[#allocation8 + $0xe8] sm:$0xff]  }
 0x296   :  { %3806 = vmatpush1.bf16.msra.mxu0 %v5187_v41  ;;  %3888 = vmatpush1.bf16.msra.mxu1 %v5189_v42 }
 0x297   :  { %3807 = vmatprep.subr.bf16.mxu0 %v5204_v43  ;;  %3889 = vmatprep.subr.bf16.mxu1 %v5206_v44  ;;  %v5438_v44 = vld [vmem:[#allocation8 + $0x70] sm:$0xff]  }
 0x29a   :  { %3808 = vmatpush1.bf16.msra.mxu0 %v5203_v53  ;;  %3890 = vmatpush1.bf16.msra.mxu1 %v5205_v54  ;;  %v5443_v53 = vld [vmem:[#allocation8 + $0xf8] sm:$0xff]  }
 0x29b   :  { %3809 = vmatprep.subr.bf16.mxu0 %v5220_v57  ;;  %3891 = vmatprep.subr.bf16.mxu1 %v5222_v3  ;;  %v5444_v54 = vld [vmem:[#allocation8 + $0x38] sm:$0xff]   ;;  %v5448_v3 = vld [vmem:[#allocation11 + $0x4] ss:$8 sps:$4 sm:$0xff]  }
 0x29c   :  { %v5445_v57 = vld [vmem:[#allocation8 + $0xb8] sm:$0xff]  }
 0x29e   :  { %3810 = vmatpush1.bf16.msra.mxu0 %v5219_v63  ;;  %3892 = vmatpush1.bf16.msra.mxu1 %v5221_v21  ;;  %v3932_v63 = vsub.s32 3, %v5925_v47 }
 0x29f   :  { %3811 = vmatprep.subr.bf16.mxu0 %v5236_v0  ;;  %3893 = vmatprep.subr.bf16.mxu1 %v5238_v1  ;;  %v3921_v1 = vrot.slane %v3916_v60, %v6006_v58 }
 0x2a2   :  { %3812 = vmatpush1.bf16.msra.mxu0 %v5235_v2  ;;  %3894 = vmatpush1.bf16.msra.mxu1 %v5237_v4 }
 0x2a3   :  { %5321 = vmatprep.subr.bf16.mxu0 %v5414_v5  ;;  %5343 = vmatprep.subr.bf16.mxu1 %v5415_v6  ;;  %v3929_v6 = vrot.slane %v3916_v60, %v3928_v61  ;;  %v5490_v61 = vld [vmem:[#allocation14 + $0x64] ss:$8 sps:$4 sm:$0xff]  }
 0x2a5   :  { %3814 = vmatmul.mubr.bf16.vlgmr.msra.gmra.mrb[12].mxu0 %v5953_v30  ;;  %3896 = vmatmul.mubr.bf16.vlgmr.msra.gmra.mrb[12].mxu1 %v5953_v30  ;;  %v5429_v30 = vld [vmem:[#allocation8 + $0x98] sm:$0xff]  }
 0x2a6   :  { %5322 = vmatpush3.bf16.msra.mxu0 %v5416_v7  ;;  %5344 = vmatpush3.bf16.msra.mxu1 %v5417_v8  ;;  %v3925_v8 = vrot.slane %v3916_v60, %v6010_v62 }
 0x2a7   :  { %5323 = vmatprep.subr.bf16.mxu0 %v5418_v9  ;;  %5345 = vmatprep.subr.bf16.mxu1 %v5419_v32 }
 0x2aa   :  { %5324 = vmatpush3.bf16.msra.mxu0 %v5420_v10  ;;  %5346 = vmatpush3.bf16.msra.mxu1 %v5421_v11 }
 0x2ab   :  { %5325 = vmatprep.subr.bf16.mxu0 %v5422_v12  ;;  %5347 = vmatprep.subr.bf16.mxu1 %v5423_v13  ;;  %v3933_v12 = vrot.slane %v3916_v60, %v3932_v63  ;;  %v5485_v60 = vld [vmem:[#allocation14 + $0x50] ss:$8 sps:$4 sm:$0xff]   ;;  %v5488_v63 = vld [vmem:[#allocation14 + $0x60] ss:$8 sps:$4 sm:$0xff]  }
 0x2ae   :  { %5326 = vmatpush3.bf16.msra.mxu0 %v5424_v14  ;;  %5348 = vmatpush3.bf16.msra.mxu1 %v5425_v15 }
 0x2af   :  { %5327 = vmatprep.subr.bf16.mxu0 %v5426_v16  ;;  %5349 = vmatprep.subr.bf16.mxu1 %v5427_v17 }
 0x2b2   :  { %5328 = vmatpush3.bf16.msra.mxu0 %v5428_v18  ;;  %5350 = vmatpush3.bf16.msra.mxu1 %v5429_v30 }
 0x2b3   :  { %5329 = vmatprep.subr.bf16.mxu0 %v5430_v19  ;;  %5351 = vmatprep.subr.bf16.mxu1 %v5431_v20 }
 0x2b6   :  { %5330 = vmatpush3.bf16.msra.mxu0 %v5432_v22  ;;  %5352 = vmatpush3.bf16.msra.mxu1 %v5433_v23 }
 0x2b7   :  { %5331 = vmatprep.subr.bf16.mxu0 %v5434_v25  ;;  %5353 = vmatprep.subr.bf16.mxu1 %v5435_v27  ;;  %v5460_v25 = vld [vmem:[#allocation11 + $0x44] ss:$8 sps:$4 sm:$0xff]   ;;  %v5458_v27 = vld [vmem:[#allocation11 + $0x40] ss:$8 sps:$4 sm:$0xff]  }
 0x2ba   :  { %5332 = vmatpush3.bf16.msra.mxu0 %v5436_v33  ;;  %5354 = vmatpush3.bf16.msra.mxu1 %v5437_v34  ;;  %v5466_v33 = vld [vmem:[#allocation11 + $0x64] ss:$8 sps:$4 sm:$0xff]   ;;  %v5464_v34 = vld [vmem:[#allocation11 + $0x60] ss:$8 sps:$4 sm:$0xff]  }
 0x2bb   :  { %5333 = vmatprep.subr.bf16.mxu0 %v5438_v44  ;;  %5355 = vmatprep.subr.bf16.mxu1 %v5439_v45  ;;  %v5475_v44 = vld [vmem:[#allocation14 + $0x14] ss:$8 sps:$4 sm:$0xff]   ;;  %v5473_v45 = vld [vmem:[#allocation14 + $0x10] ss:$8 sps:$4 sm:$0xff]  }
 0x2be   :  { %5334 = vmatpush3.bf16.msra.mxu0 %v5440_v48  ;;  %5356 = vmatpush3.bf16.msra.mxu1 %v5441_v49  ;;  %v5478_v48 = vld [vmem:[#allocation14 + $0x24] ss:$8 sps:$4 sm:$0xff]   ;;  %v5476_v49 = vld [vmem:[#allocation14 + $0x20] ss:$8 sps:$4 sm:$0xff]  }
 0x2bf   :  { %5335 = vmatprep.subr.bf16.mxu0 %v5442_v50  ;;  %5357 = vmatprep.subr.bf16.mxu1 %v5443_v53  ;;  %v5481_v50 = vld [vmem:[#allocation14 + $0x34] ss:$8 sps:$4 sm:$0xff]   ;;  %v5479_v53 = vld [vmem:[#allocation14 + $0x30] ss:$8 sps:$4 sm:$0xff]  }
 0x2c2   :  { %5336 = vmatpush3.bf16.msra.mxu0 %v5444_v54  ;;  %5358 = vmatpush3.bf16.msra.mxu1 %v5445_v57  ;;  %v5484_v54 = vld [vmem:[#allocation14 + $0x44] ss:$8 sps:$4 sm:$0xff]   ;;  %v5482_v57 = vld [vmem:[#allocation14 + $0x40] ss:$8 sps:$4 sm:$0xff]  }
 0x2c3   :  { %4403 = vmatprep.subr.bf16.mxu0 %v5448_v3  ;;  %v5487_v3 = vld [vmem:[#allocation14 + $0x54] ss:$8 sps:$4 sm:$0xff]  }
 0x2f8   :  { %v3651_v24 = vpop.f32.mrb[8].mxu0  ;;  %v3733_v28 = vpop.f32.mrb[8].mxu1 }
 0x2f9   :  { %v3653_v29 = vpop.f32.mrb[9].mxu0  ;;  %v3735_v38 = vpop.f32.mrb[9].mxu1 }
 0x2fa   :  { %v3655_v39 = vpop.f32.mrb[10].mxu0  ;;  %v3737_v41 = vpop.f32.mrb[10].mxu1 }
 0x2fb   :  { %v3656_v42 = vpop.f32.mrb[11].mxu0  ;;  %v3738_v43 = vpop.f32.mrb[11].mxu1  ;;  %v5467_v39 = vld [vmem:[#allocation11 + $0x70] ss:$8 sps:$4 sm:$0xff]   ;;  %v5765_v41 = vmov 0  }
 0x2fc   :  { %v5470_v42 = vld [vmem:[#allocation14] ss:$8 sps:$4 sm:$0xff]   ;;  %v5472_v43 = vld [vmem:[#allocation14 + $0x4] ss:$8 sps:$4 sm:$0xff]  }
 0x2fd   :  { %4652 = vmatprep.subr.bf16.mxu1 %v5472_v43 }
 0x378   :  { %v3815_v21 = vpop.f32.mrb[12].mxu0  ;;  %v3897_v2 = vpop.f32.mrb[12].mxu1 }
 0x379   :  { %v3908_v0 = vmax.f32 %v3651_v24, %v3815_v21  ;;  %v3817_v4 = vpop.f32.mrb[13].mxu0  ;;  %v3910_v5 = vmax.f32 %v3733_v28, %v3897_v2  ;;  %v3899_v9 = vpop.f32.mrb[13].mxu1  ;;  %v5451_v24 = vld [vmem:[#allocation11 + $0x14] ss:$8 sps:$4 sm:$0xff]   ;;  %v5494_v2 = vld [vmem:[#allocation14 + $0x80] ss:$8 sps:$4 sm:$0xff]  }
 0x37a   :  { %v3909_v7 = vmax.f32 %v3653_v29, %v3817_v4  ;;  %v3819_v32 = vpop.f32.mrb[14].mxu0  ;;  %v3911_v11 = vmax.f32 %v3735_v38, %v3899_v9  ;;  %v3901_v47 = vpop.f32.mrb[14].mxu1  ;;  %v5463_v28 = vld [vmem:[#allocation11 + $0x54] ss:$8 sps:$4 sm:$0xff]   ;;  %v5461_v29 = vld [vmem:[#allocation11 + $0x50] ss:$8 sps:$4 sm:$0xff]  }
 0x37b   :  { %v3912_v10 = vmax.f32 %v3904_v31, %v3908_v0  ;;  %v3820_v13 = vpop.f32.mrb[15].mxu0  ;;  %v3914_v14 = vmax.f32 %v3906_v35, %v3910_v5  ;;  %v3902_v16 = vpop.f32.mrb[15].mxu1  ;;  %v5469_v38 = vld [vmem:[#allocation11 + $0x74] ss:$8 sps:$4 sm:$0xff]   ;;  %v5508_v32 = vld [vmem:[#allocation14 + $0xc4] ss:$8 sps:$4 sm:$0xff]  }
 0x37c   :  { %v3913_v15 = vmax.f32 %v3905_v36, %v3909_v7  ;;  %v3915_v18 = vmax.f32 %v3907_v40, %v3911_v11  ;;  %v5452_v36 = vld [vmem:[#allocation11 + $0x20] ss:$8 sps:$4 sm:$0xff]   ;;  %v5455_v40 = vld [vmem:[#allocation11 + $0x30] ss:$8 sps:$4 sm:$0xff]  }
 0x37d   :  { %v3938_v17 = vadd.f32 %v3921_v1, %v3912_v10  ;;  %v3940_v46 = vadd.f32 %v3929_v6, %v3914_v14  ;;  %v5493_v21 = vld [vmem:[#allocation14 + $0x74] ss:$8 sps:$4 sm:$0xff]   ;;  %v5491_v0 = vld [vmem:[#allocation14 + $0x70] ss:$8 sps:$4 sm:$0xff]   ;;  %v5496_v1 = vld [vmem:[#allocation14 + $0x84] ss:$8 sps:$4 sm:$0xff]  }
 0x37e   :  { %v3939_v26 = vadd.f32 %v3925_v8, %v3913_v15  ;;  %v3941_v30 = vadd.f32 %v3933_v12, %v3915_v18  ;;  %v5499_v4 = vld [vmem:[#allocation14 + $0x94] ss:$8 sps:$4 sm:$0xff]   ;;  %v5497_v5 = vld [vmem:[#allocation14 + $0x90] ss:$8 sps:$4 sm:$0xff]   ;;  %v5502_v6 = vld [vmem:[#allocation14 + $0xa4] ss:$8 sps:$4 sm:$0xff]  }
 0x37f   :  { %v3942_v31 = vmax.f32 %v3938_v17, 0.0  ;;  %v3944_v19 = vmax.f32 %v3940_v46, 0.0  ;;  %v5500_v7 = vld [vmem:[#allocation14 + $0xa0] ss:$8 sps:$4 sm:$0xff]   ;;  %v5505_v8 = vld [vmem:[#allocation14 + $0xb4] ss:$8 sps:$4 sm:$0xff]  }
 0x380   :  { %v3943_v20 = vmax.f32 %v3939_v26, 0.0  ;;  %v3945_v22 = vmax.f32 %v3941_v30, 0.0  ;;  %v5503_v9 = vld [vmem:[#allocation14 + $0xb0] ss:$8 sps:$4 sm:$0xff]   ;;  %v5506_v10 = vld [vmem:[#allocation14 + $0xc0] ss:$8 sps:$4 sm:$0xff]  }
 0x381   :  { %v3946_v56 = vpack.c.bf16 %v3942_v31, %v3942_v31  ;;  %v3948_v52 = vpack.c.bf16 %v3944_v19, %v3944_v19  ;;  %v5511_v11 = vld [vmem:[#allocation14 + $0xd4] ss:$8 sps:$4 sm:$0xff]   ;;  %v5509_v12 = vld [vmem:[#allocation14 + $0xd0] ss:$8 sps:$4 sm:$0xff]  }
 0x382   :  { %v3947_v23 = vpack.c.bf16 %v3943_v20, %v3943_v20  ;;  %v3949_v35 = vpack.c.bf16 %v3945_v22, %v3945_v22  ;;  %v5239_v14 = vld [vmem:[#allocation10] ss:$0 sm:$0xff] }
 0x384   :  { %4245 = vmatprep.mubr.bf16.mxu0 %v3947_v23  ;;  %4285 = vmatprep.mubr.bf16.mxu1 %v3949_v35  ;;  %v5517_v35 = vld [vmem:[#allocation14 + $0xf4] ss:$8 sps:$4 sm:$0xff]  }
 0x385   :  { %4246 = vmatmul.mubr.bf16.vlgmr.msra.gmra.mrb[16].mxu0 %v3946_v56  ;;  %4286 = vmatmul.mubr.bf16.vlgmr.msra.gmra.mrb[16].mxu1 %v3948_v52  ;;  %v5512_v56 = vld [vmem:[#allocation14 + $0xe0] ss:$8 sps:$4 sm:$0xff]   ;;  %v4311_v52 = vld [vmem:[#allocation13] sm:$0x3] }
 0x386   :  { %4404 = vmatpush1.bf16.msra.mxu0 %v5446_v51  ;;  %4435 = vmatprep.mubr.bf16.mxu0 %v5765_v41  ;;  %v5514_v51 = vld [vmem:[#allocation14 + $0xe4] ss:$8 sps:$4 sm:$0xff]  }
 0x387   :  { %4405 = vmatprep.subr.bf16.mxu0 %v5451_v24  ;;  %4653 = vmatpush1.bf16.msra.mxu1 %v5470_v42  ;;  %v5515_v24 = vld [vmem:[#allocation14 + $0xf0] ss:$8 sps:$4 sm:$0xff]  }
 0x388   :  { %4654 = vmatprep.subr.bf16.mxu1 %v5475_v44 }
 0x38a   :  { %4406 = vmatpush1.bf16.msra.mxu0 %v5449_v55  ;;  %v4316_v55 = vrot.slane %v4311_v52, %v6006_v58 }
 0x38b   :  { %4407 = vmatprep.subr.bf16.mxu0 %v5454_v59  ;;  %4655 = vmatpush1.bf16.msra.mxu1 %v5473_v45  ;;  %v4320_v59 = vrot.slane %v4311_v52, %v6010_v62 }
 0x38c   :  { %4656 = vmatprep.subr.bf16.mxu1 %v5478_v48 }
 0x38e   :  { %4408 = vmatpush1.bf16.msra.mxu0 %v5452_v36 }
 0x38f   :  { %4409 = vmatprep.subr.bf16.mxu0 %v5457_v37  ;;  %4657 = vmatpush1.bf16.msra.mxu1 %v5476_v49 }
 0x390   :  { %4658 = vmatprep.subr.bf16.mxu1 %v5481_v50 }
 0x392   :  { %4410 = vmatpush1.bf16.msra.mxu0 %v5455_v40 }
 0x393   :  { %4411 = vmatprep.subr.bf16.mxu0 %v5460_v25  ;;  %4659 = vmatpush1.bf16.msra.mxu1 %v5479_v53 }
 0x394   :  { %4660 = vmatprep.subr.bf16.mxu1 %v5484_v54 }
 0x396   :  { %4412 = vmatpush1.bf16.msra.mxu0 %v5458_v27 }
 0x397   :  { %4413 = vmatprep.subr.bf16.mxu0 %v5463_v28  ;;  %4661 = vmatpush1.bf16.msra.mxu1 %v5482_v57 }
 0x398   :  { %4662 = vmatprep.subr.bf16.mxu1 %v5487_v3 }
 0x39a   :  { %4414 = vmatpush1.bf16.msra.mxu0 %v5461_v29 }
 0x39b   :  { %4415 = vmatprep.subr.bf16.mxu0 %v5466_v33  ;;  %4663 = vmatpush1.bf16.msra.mxu1 %v5485_v60 }
 0x39c   :  { %4664 = vmatprep.subr.bf16.mxu1 %v5490_v61 }
 0x39e   :  { %4416 = vmatpush1.bf16.msra.mxu0 %v5464_v34 }
 0x39f   :  { %4417 = vmatprep.subr.bf16.mxu0 %v5469_v38  ;;  %4665 = vmatpush1.bf16.msra.mxu1 %v5488_v63 }
 0x3a0   :  { %4666 = vmatprep.subr.bf16.mxu1 %v5493_v21 }
 0x3a2   :  { %4418 = vmatpush1.bf16.msra.mxu0 %v5467_v39  ;;  %v4480_v39 = vld [vmem:[#allocation16] sm:$0x3] }
 0x3a3   :  { %4667 = vmatpush1.bf16.msra.mxu1 %v5491_v0  ;;  %v4485_v41 = vrot.slane %v4480_v39, %v6006_v58  ;;  %v4489_v42 = vrot.slane %v4480_v39, %v6010_v62 }
 0x3a4   :  { %4668 = vmatprep.subr.bf16.mxu1 %v5496_v1 }
 0x3a7   :  { %4669 = vmatpush1.bf16.msra.mxu1 %v5494_v2 }
 0x3a8   :  { %4670 = vmatprep.subr.bf16.mxu1 %v5499_v4 }
 0x3ab   :  { %4671 = vmatpush1.bf16.msra.mxu1 %v5497_v5 }
 0x3ac   :  { %4672 = vmatprep.subr.bf16.mxu1 %v5502_v6 }
 0x3af   :  { %4673 = vmatpush1.bf16.msra.mxu1 %v5500_v7 }
 0x3b0   :  { %4674 = vmatprep.subr.bf16.mxu1 %v5505_v8 }
 0x3b3   :  { %4675 = vmatpush1.bf16.msra.mxu1 %v5503_v9 }
 0x3b4   :  { %4676 = vmatprep.subr.bf16.mxu1 %v5508_v32 }
 0x3b7   :  { %4677 = vmatpush1.bf16.msra.mxu1 %v5506_v10 }
 0x3b8   :  { %4678 = vmatprep.subr.bf16.mxu1 %v5511_v11 }
 0x3bb   :  { %4679 = vmatpush1.bf16.msra.mxu1 %v5509_v12 }
 0x3bc   :  { %4680 = vmatprep.subr.bf16.mxu1 %v5514_v51 }
 0x3bf   :  { %4681 = vmatpush1.bf16.msra.mxu1 %v5512_v56 }
 0x3c0   :  { %4682 = vmatprep.subr.bf16.mxu1 %v5517_v35 }
 0x3c3   :  { %4683 = vmatpush1.bf16.msra.mxu1 %v5515_v24 }
 0x458   :  { %v5337_v47 = vpop.f32.mrb[16].mxu0  ;;  %v5359_v13 = vpop.f32.mrb[16].mxu1 }
 0x459   :  { %v5338_v15 = vpop.f32.mrb[17].mxu0  ;;  %v5360_v17 = vpop.f32.mrb[17].mxu1 }
 0x45a   :  { %v5339_v16 = vadd.f32 %v5338_v15, %v5337_v47  ;;  %v5340_v18 = vpop.f32.mrb[18].mxu0  ;;  %v5361_v46 = vadd.f32 %v5360_v17, %v5359_v13  ;;  %v5362_v26 = vpop.f32.mrb[18].mxu1 }
 0x45b   :  { %v5341_v31 = vpop.f32.mrb[19].mxu0  ;;  %v5363_v19 = vpop.f32.mrb[19].mxu1 }
 0x45c   :  { %v4248_v30 = vadd.f32 %v5339_v16, %v5239_v14 }
 0x45e   :  { %v4288_v20 = vadd.f32 %v5361_v46, %v4248_v30 }
 0x460   :  { %v4293_v22 = vmax.f32 %v4288_v20, 0.0 }
 0x462   :  { %v4294_v23 = vpack.c.bf16 %v4293_v22, %v4293_v22 }
 0x464   :  { %4436 = vmatmul.mubr.bf16.vlgmr.msra.gmra.mrb[20].mxu0 %v4294_v23 }
 0x537   :  { %v4437_v36 = vpop.f32.mrb[20].mxu0 }
 0x538   :  { %v4438_v37 = vadd.f32 %v4437_v36, %v4316_v55  ;;  %v4439_v40 = vpop.f32.mrb[21].mxu0 }
 0x539   :  { %v4440_v25 = vadd.f32 %v4439_v40, %v4320_v59  ;;  %v4441_v27 = vpop.f32.mrb[22].mxu0 }
 0x53a   :  { %v4444_v28 = vmax.f32 %v4438_v37, 0.0  ;;  %v4442_v29 = vpop.f32.mrb[23].mxu0 }
 0x53b   :  { %v4445_v33 = vmax.f32 %v4440_v25, 0.0 }
 0x53c   :  { %v4446_v38 = vpack.c.bf16 %v4444_v28, %v4444_v28 }
 0x53d   :  { %v4447_v34 = vpack.c.bf16 %v4445_v33, %v4445_v33 }
 0x53f   :  { %4684 = vmatprep.mubr.bf16.mxu1 %v4447_v34 }
 0x540   :  { %4685 = vmatmul.mubr.bf16.vlgmr.msra.gmra.mrb[20].mxu1 %v4446_v38 }
 0x613   :  { %v4686_v43 = vpop.f32.mrb[20].mxu1 }
 0x614   :  { %v4687_v44 = vadd.f32 %v4686_v43, %v4485_v41  ;;  %v4688_v45 = vpop.f32.mrb[21].mxu1 }
 0x615   :  { %v4689_v48 = vadd.f32 %v4688_v45, %v4489_v42  ;;  %v4690_v49 = vpop.f32.mrb[22].mxu1 }
 0x616   :  { %v4693_v50 = vmax.f32 %v4687_v44, 0.0  ;;  %v4691_v53 = vpop.f32.mrb[23].mxu1 }
 0x617   :  { %v4694_v54 = vmax.f32 %v4689_v48, 0.0 }
 0x619   :  { %v4697_v57 = vcombine.low %v4693_v50, %v4694_v54 }
 0x61b   :  { %5320 = vst.sshfl [vmem:[#allocation17] sm:$0x33 pattern:$0x76325410] %v4697_v57 }
 0x61c   :  { %5727 = shalt.err (!%p5724_p6)
}
 0x61d   :  { %s5728_s26 = scalar_lea.hbm %s6052_s9, 64 }
 0x61e   :  { %p5729_p7 = scmp.ne.s32.totalorder %s6052_s9, %s5728_s26  ;;  %p5732_p8 = scmp.lt.u32.totalorder %s5728_s26, %s6052_s9 }
 0x620   :  { %p5734_p9 = pnand %p5732_p8, %p5729_p7 }
 0x622   :  { %5737 = shalt.err (!%p5734_p9)
}
 0x623   :  { %4716 = dma.vmem_to_hbm [thread:$0]  %s4714_s23, 64, %s6052_s9, [#allocation4]  }
 0x624   :  { %5748 = dma.done.wait [#allocation4], 64  }
 0x625   :  { %5749 = vsyncadd [#allocation4], 4294967232 }
 0x626   :  { %4720 = vsyncpa [#allocation3], 1 }
 0x627   :  { %4721 = vsyncpa [#allocation6], 1 }
 0x628   :  { %4722 = vsyncpa [#allocation9], 1 }
 0x629   :  { %4723 = vsyncpa [#allocation12], 1 }
 0x62a   :  { %4724 = vsyncpa [#allocation15], 1 }
 0x62b   :  { %4725 = vsyncpa [#allocation4], 1 }

</bundles_post_ra>
